<compile_context>
chip_gen: v7x
topology: tpu7x:2x2x1
jax: 0.10.0
libtpu: 0.0.40
codegen_flags: <defaults>
</compile_context>

<pallas_src>
import math
import functools

import jax
import jax.numpy as jnp
from jax.experimental import pallas as pl
from jax.experimental.pallas import tpu as pltpu


def _round_up(x, m):
    return (x + m - 1) // m * m


# ----------------------------- in-kernel math helpers (f32) -----------------------

def _erf(x):
    # Abramowitz & Stegun 7.1.26 (|abs err| < 1.5e-7).  Exact division (not the
    # approx EUP reciprocal) so GELU parity with PyTorch holds.
    a1, a2, a3, a4, a5 = 0.254829592, -0.284496736, 1.421413741, -1.453152027, 1.061405429
    p = 0.3275911
    s = jnp.where(x < 0.0, -1.0, 1.0)
    ax = jnp.abs(x)
    t = 1.0 / (1.0 + p * ax)
    poly = ((((a5 * t + a4) * t + a3) * t + a2) * t + a1) * t
    return s * (1.0 - poly * jnp.exp(-ax * ax))


def _gelu_exact(x):
    # PyTorch nn.GELU() default (erf-based).
    return 0.5 * x * (1.0 + _erf(x * (1.0 / math.sqrt(2.0))))


def _layernorm(x, gamma, beta, eps=1e-5):
    # Single-pass: var = E[x^2] - mu^2 (halves the reduction dependency chain).
    mu = jnp.mean(x, axis=-1, keepdims=True)
    ms = jnp.mean(x * x, axis=-1, keepdims=True)
    var = ms - mu * mu
    return (x - mu) * jax.lax.rsqrt(var + eps) * gamma + beta


def _softmax_last(x):
    m = jnp.max(x, axis=-1, keepdims=True)
    e = jnp.exp(x - m)
    return e / jnp.sum(e, axis=-1, keepdims=True)   # exact division (parity)


# ----------------------------- patch-embedding linear kernel ----------------------

def _linear_kernel(x_ref, w_ref, b_ref, o_ref):
    o_ref[...] = jnp.dot(x_ref[...], w_ref[...],
                         preferred_element_type=jnp.float32) + b_ref[...]


def linear(x2d, w, b, *, tile_r=256):
    """x2d: [R, K] (bf16), w: [K, N] (bf16), b: [1, N] (f32) -> [R, N] f32.

    Row-tiled grid; K may be any size (full-array block), N must be a 128-multiple
    or the full dim.  Rows are padded to the tile size and sliced back.
    """
    R, K = x2d.shape
    K2, N = w.shape
    assert K == K2
    Rp = _round_up(max(R, 8), 8)
    tile_r = min(tile_r, Rp)
    Rp = _round_up(Rp, tile_r)
    if Rp != R:
        x2d = jnp.pad(x2d, ((0, Rp - R), (0, 0)))
    out = pl.pallas_call(
        _linear_kernel,
        out_shape=jax.ShapeDtypeStruct((Rp, N), jnp.float32),
        grid=(Rp // tile_r,),
        in_specs=[
            pl.BlockSpec((tile_r, K), lambda i: (i, 0)),
            pl.BlockSpec((K, N), lambda i: (0, 0)),
            pl.BlockSpec((1, N), lambda i: (0, 0)),
        ],
        out_specs=pl.BlockSpec((tile_r, N), lambda i: (i, 0)),
        compiler_params=pltpu.CompilerParams(dimension_semantics=("parallel",)),
    )(x2d, w, b)
    return out[:R]


# ----------------------------- fused encoder-stack (+head) kernel -----------------

def _encoder_stack_kernel(num_head, s_valid,
                          x_ref,
                          wqkv_ref, bqkv_ref, wo_ref, bo_ref,
                          g1_ref, be1_ref,
                          w1_ref, c1_ref, w2_ref, c2_ref,
                          g2_ref, be2_ref,
                          head_w_ref, head_b_ref,
                          logits_ref,
                          res_ref):
    l = pl.program_id(1)
    n_blocks = pl.num_programs(1)
    bb, s_pad, d = x_ref.shape
    dk = d // num_head
    scale = 1.0 / math.sqrt(dk)
    bf16 = jnp.bfloat16

    # Residual stream lives in VMEM scratch across the block axis.
    @pl.when(l == 0)
    def _():
        res_ref[...] = x_ref[...].reshape(bb * s_pad, d)

    x = res_ref[...]                                             # (M, D) f32, M = bb*s_pad

    # --- attention branch: x + out_proj(MHA(LN1(x))) ---
    xn = _layernorm(x, g1_ref[...], be1_ref[...])
    qkv = jnp.dot(xn.astype(bf16), wqkv_ref[...],
                  preferred_element_type=jnp.float32) + bqkv_ref[...]   # (M, 3D)

    # Additive key-padding bias: 0 for valid keys, -1e9 for padded key positions.
    key_ids = jax.lax.broadcasted_iota(jnp.int32, (1, 1, s_pad), 2)
    key_bias = jnp.where(key_ids < s_valid, 0.0, -1e9).astype(jnp.float32)

    q = qkv[:, 0:d].reshape(bb, s_pad, d)
    k = qkv[:, d:2 * d].reshape(bb, s_pad, d)
    v = qkv[:, 2 * d:3 * d].reshape(bb, s_pad, d)

    # Batch rows stay a leading einsum batch dim; small static head loop over
    # lane slices (heads live in lanes, dk = D/H), avoiding minor-dim transposes.
    ctx_heads = []
    for h in range(num_head):
        sl = slice(h * dk, (h + 1) * dk)
        qh = q[:, :, sl].astype(bf16)
        kh = k[:, :, sl].astype(bf16)
        vh = v[:, :, sl].astype(bf16)
        s_h = jnp.einsum("bqc,bkc->bqk", qh, kh,
                         preferred_element_type=jnp.float32) * scale + key_bias
        p_h = _softmax_last(s_h)
        c_h = jnp.einsum("bqk,bkc->bqc", p_h.astype(bf16), vh,
                         preferred_element_type=jnp.float32)     # (bb, S, dk)
        ctx_heads.append(c_h)
    ctx = jnp.concatenate(ctx_heads, axis=-1).reshape(bb * s_pad, d)

    attn = jnp.dot(ctx.astype(bf16), wo_ref[...],
                   preferred_element_type=jnp.float32) + bo_ref[...]
    # TODO(synk): nn.Dropout(p=0.1) treated as identity (deterministic / eval mode).
    x = x + attn

    # --- FFN branch: x + W2(GELU(W1(LN2(x)))) ---
    # TODO(synk): tile the 4*D hidden dim here when scaling to ViT-Base on v7x.
    xn2 = _layernorm(x, g2_ref[...], be2_ref[...])
    h1 = jnp.dot(xn2.astype(bf16), w1_ref[...],
                 preferred_element_type=jnp.float32) + c1_ref[...]
    h1 = _gelu_exact(h1)
    ffn = jnp.dot(h1.astype(bf16), w2_ref[...],
                  preferred_element_type=jnp.float32) + c2_ref[...]
    x = x + ffn

    res_ref[...] = x

    # Classification head fused into the last block step (cls token = row 0).
    @pl.when(l == n_blocks - 1)
    def _():
        n_cls = head_w_ref.shape[1]
        logits_all = jnp.dot(x.astype(bf16), head_w_ref[...],
                             preferred_element_type=jnp.float32) + head_b_ref[...]
        logits_ref[...] = logits_all.reshape(bb, s_pad, n_cls)[:, 0:1, :]


def encoder_stack_and_head(x, stack, head_w, head_b, *, num_head, s_valid, block_b):
    """x: [B_pad, S_pad, D] f32 -> logits [B_pad, 1, n_cls_pad] f32 (all blocks + head)."""
    B_pad, S_pad, D = x.shape
    n_cls_pad = head_w.shape[1]
    names = ("wqkv", "bqkv", "wo", "bo", "g1", "be1",
             "w1", "c1", "w2", "c2", "g2", "be2")
    weights = [stack[n] for n in names]
    L = weights[0].shape[0]
    assert B_pad % block_b == 0

    def stk_spec(a):
        r, c = a.shape[1], a.shape[2]
        return pl.BlockSpec((None, r, c), lambda i, l: (l, 0, 0))

    # VMEM budget: per-block weight slab (double-buffered across the block axis),
    # the x input block, the residual scratch, head weights, and f32 intermediates.
    per_block_w = sum(int(a.nbytes) for a in weights) // L
    x_blk = block_b * S_pad * D * 4
    vmem_est = (2 * per_block_w + 2 * x_blk + x_blk
                + 2 * (int(head_w.nbytes) + int(head_b.nbytes))
                + 2 * block_b * n_cls_pad * 4
                + 8 * x_blk)                      # qkv / h1 / scores headroom
    vmem_limit = int(min(max(2 * vmem_est, 32 * 1024 * 1024), 64 * 1024 * 1024))

    return pl.pallas_call(
        functools.partial(_encoder_stack_kernel, num_head, s_valid),
        out_shape=jax.ShapeDtypeStruct((B_pad, 1, n_cls_pad), jnp.float32),
        grid=(B_pad // block_b, L),
        in_specs=[pl.BlockSpec((block_b, S_pad, D), lambda i, l: (i, 0, 0))]
                 + [stk_spec(a) for a in weights]
                 + [pl.BlockSpec((D, n_cls_pad), lambda i, l: (0, 0)),
                    pl.BlockSpec((1, n_cls_pad), lambda i, l: (0, 0))],
        out_specs=pl.BlockSpec((block_b, 1, n_cls_pad), lambda i, l: (i, 0, 0)),
        scratch_shapes=[pltpu.VMEM((block_b * S_pad, D), jnp.float32)],
        compiler_params=pltpu.CompilerParams(
            dimension_semantics=("parallel", "arbitrary"),
            vmem_limit_bytes=vmem_limit,
        ),
    )(x, *weights, head_w, head_b)


# ----------------------------- parameter init (deterministic) ---------------------

def init_vit_params(key, *, class_num, d_model, num_head, img_size, patch_size, num_block):
    del num_head
    num_patch = (img_size // patch_size) ** 2
    keys = iter(jax.random.split(key, 20))

    def nrm(shape, scale=0.02, dtype=jnp.float32):
        # NOTE: the reference __init__ zero-inits MHA.out and FFN[-1]; small random
        # values are used so every matmul exercises real data (forward semantics
        # are identical; parameters are just inputs).
        return (jax.random.normal(next(keys), shape, jnp.float32) * scale).astype(dtype)

    k_patch = 3 * patch_size * patch_size
    n_cls_pad = _round_up(class_num, 128)
    L = num_block

    head_w = jnp.zeros((d_model, n_cls_pad), jnp.float32).at[:, :class_num].set(
        jax.random.normal(next(keys), (d_model, class_num), jnp.float32) * 0.02)
    head_b = jnp.zeros((1, n_cls_pad), jnp.float32).at[:, :class_num].set(
        jax.random.normal(next(keys), (1, class_num), jnp.float32) * 0.02)

    # Per-block weights stacked along a leading block axis (indexed by the block
    # grid axis inside the fused kernel).  Fused QKV: [Wq | Wk | Wv] along lanes.
    stack = {
        "wqkv": nrm((L, d_model, 3 * d_model), dtype=jnp.bfloat16),
        "bqkv": nrm((L, 1, 3 * d_model)),
        "wo":   nrm((L, d_model, d_model), dtype=jnp.bfloat16),
        "bo":   nrm((L, 1, d_model)),
        "g1":   jnp.ones((L, 1, d_model), jnp.float32),
        "be1":  jnp.zeros((L, 1, d_model), jnp.float32),
        "w1":   nrm((L, d_model, 4 * d_model), dtype=jnp.bfloat16),
        "c1":   nrm((L, 1, 4 * d_model)),
        "w2":   nrm((L, 4 * d_model, d_model), dtype=jnp.bfloat16),
        "c2":   nrm((L, 1, d_model)),
        "g2":   jnp.ones((L, 1, d_model), jnp.float32),
        "be2":  jnp.zeros((L, 1, d_model), jnp.float32),
    }
    return {
        "patch_w": nrm((k_patch, d_model), dtype=jnp.bfloat16),   # Conv2d(3,D,p,p) as matmul
        "patch_b": nrm((1, d_model)),
        "cls_token": nrm((1, 1, d_model)),
        "pos_embedding": nrm((1, num_patch + 1, d_model)),
        "head_w": head_w.astype(jnp.bfloat16),
        "head_b": head_b,
        "stack": stack,
    }


# ----------------------------- full ViT forward ------------------------------------

def vit_forward(x_nchw, params, *, patch_size, d_model, num_head, class_num):
    B, C, H, W = x_nchw.shape
    hp, wp = H // patch_size, W // patch_size
    num_patch = hp * wp

    # im2col glue: [B,C,H,W] -> [B*num_patch, C*p*p], feature order (c, ph, pw)
    # matching Conv2d weight flattening; bf16 to halve DMA bytes, K kept unpadded.
    patches = x_nchw.reshape(B, C, hp, patch_size, wp, patch_size)
    patches = patches.transpose(0, 2, 4, 1, 3, 5)
    patches = patches.reshape(B * num_patch, C * patch_size * patch_size)
    patches = patches.astype(jnp.bfloat16)

    # patch embedding (strided conv == matmul), Pallas row-tiled kernel.
    emb = linear(patches, params["patch_w"], params["patch_b"])
    emb = emb.reshape(B, num_patch, d_model)

    # cls token prepend + positional embedding (cheap elementwise XLA glue).
    cls = jnp.broadcast_to(params["cls_token"], (B, 1, d_model))
    x = jnp.concatenate([cls, emb], axis=1) + params["pos_embedding"]   # (B, S, D)

    # Pad sequence to a sublane-friendly length; padded keys masked in-kernel.
    S = num_patch + 1
    S_pad = _round_up(S, 32)
    x = jnp.pad(x, ((0, 0), (0, S_pad - S), (0, 0)))

    # block_b targets MXU M-fill (~256 rows per grid step); batch padded to a
    # multiple of block_b (padded batch rows are sliced off after the kernel).
    target_m = 256
    block_b = max(1, min(B, target_m // S_pad))
    B_pad = _round_up(B, block_b)
    if B_pad != B:
        x = jnp.pad(x, ((0, B_pad - B), (0, 0), (0, 0)))

    # fused encoder stack (all blocks) + classification head: one pallas_call.
    logits_pad = encoder_stack_and_head(
        x, params["stack"], params["head_w"], params["head_b"],
        num_head=num_head, s_valid=S, block_b=block_b)          # (B_pad, 1, n_cls_pad)

    return logits_pad[:B, 0, :class_num]


# ----------------------------- main -------------------------------------------------

if __name__ == "__main__":
    # small config consistent with ViT.__init__ constraints:
    # d_model % num_head == 0, num_patch = (img_size // patch_size) ** 2, seq = num_patch + 1.
    class_num, d_model, num_head = 10, 128, 4
    img_size, patch_size, num_block = 16, 4, 2
    B = 2

    key = jax.random.PRNGKey(0)
    kx, kp = jax.random.split(key)
    x = jax.random.normal(kx, (B, 3, img_size, img_size), jnp.float32)
    params = init_vit_params(
        kp, class_num=class_num, d_model=d_model, num_head=num_head,
        img_size=img_size, patch_size=patch_size, num_block=num_block)

    fwd = jax.jit(functools.partial(
        vit_forward, patch_size=patch_size, d_model=d_model,
        num_head=num_head, class_num=class_num))
    logits = fwd(x, params)
    jax.block_until_ready(logits)
    assert logits.shape == (B, class_num) and logits.dtype == jnp.float32
    print("KERNEL_OK")
</pallas_src>

<mosaic_0001>
module attributes {stable_mosaic.version = 11 : i64} {
  func.func @_linear_kernel(%arg0: i32, %arg1: memref<32x48xbf16, #tpu.memory_space<vmem>>, %arg2: memref<48x128xbf16, #tpu.memory_space<vmem>>, %arg3: memref<1x128xf32, #tpu.memory_space<vmem>>, %arg4: memref<32x128xf32, #tpu.memory_space<vmem>>) attributes {dimension_semantics = [#tpu.dimension_semantics<parallel>], iteration_bounds = array<i64: 1>, scalar_prefetch = 0 : i64, scratch_operands = 0 : i64, tpu.core_type = #tpu.core_type<tc>, window_params = [{transform_indices = @transform_0, window_bounds = array<i64: 32, 48>}, {pipeline_mode = #tpu.pipeline_mode<synchronous>, transform_indices = @transform_1, window_bounds = array<i64: 48, 128>}, {pipeline_mode = #tpu.pipeline_mode<synchronous>, transform_indices = @transform_2, window_bounds = array<i64: 1, 128>}, {transform_indices = @transform_3, window_bounds = array<i64: 32, 128>}]} {
    %c0 = arith.constant 0 : index
    %c0_0 = arith.constant 0 : index
    %0 = vector.load %arg1[%c0, %c0_0] : memref<32x48xbf16, #tpu.memory_space<vmem>>, vector<32x48xbf16>
    %c0_1 = arith.constant 0 : index
    %c0_2 = arith.constant 0 : index
    %1 = vector.load %arg2[%c0_1, %c0_2] : memref<48x128xbf16, #tpu.memory_space<vmem>>, vector<48x128xbf16>
    %cst = arith.constant dense<0.000000e+00> : vector<32x128xf32>
    %2 = tpu.matmul %0, %1, %cst {dimension_numbers = #tpu.dot_dimension_numbers<[1], [0], [0], [1], [0, 0, 1, 1], [], []>} : vector<32x48xbf16>, vector<48x128xbf16>, vector<32x128xf32> -> vector<32x128xf32>
    %c0_3 = arith.constant 0 : index
    %c0_4 = arith.constant 0 : index
    %3 = vector.load %arg3[%c0_3, %c0_4] : memref<1x128xf32, #tpu.memory_space<vmem>>, vector<1x128xf32>
    %4 = vector.broadcast %3 : vector<1x128xf32> to vector<32x128xf32>
    %5 = arith.addf %2, %4 : vector<32x128xf32>
    %c0_5 = arith.constant 0 : index
    %c0_6 = arith.constant 0 : index
    %6 = vector.load %arg4[%c0_5, %c0_6] : memref<32x128xf32, #tpu.memory_space<vmem>>, vector<32x128xf32>
    tpu.vector_store %arg4[%c0_5, %c0_6], %5 {strides = array<i32>} : memref<32x128xf32, #tpu.memory_space<vmem>>, vector<32x128xf32>,
    return
  }
  func.func @transform_0(%arg0: i32) -> (i32, i32) {
    %c0_i32 = arith.constant 0 : i32
    %c0_i32_0 = arith.constant 0 : i32
    return %arg0, %c0_i32 : i32, i32
  }
  func.func @transform_1(%arg0: i32) -> (i32, i32) {
    %c0_i32 = arith.constant 0 : i32
    %c0_i32_0 = arith.constant 0 : i32
    %c0_i32_1 = arith.constant 0 : i32
    return %c0_i32, %c0_i32_0 : i32, i32
  }
  func.func @transform_2(%arg0: i32) -> (i32, i32) {
    %c0_i32 = arith.constant 0 : i32
    %c0_i32_0 = arith.constant 0 : i32
    %c0_i32_1 = arith.constant 0 : i32
    return %c0_i32, %c0_i32_0 : i32, i32
  }
  func.func @transform_3(%arg0: i32) -> (i32, i32) {
    %c0_i32 = arith.constant 0 : i32
    %c0_i32_0 = arith.constant 0 : i32
    return %arg0, %c0_i32 : i32, i32
  }
}

module attributes {stable_mosaic.version = 11 : i64} {
  func.func @_encoder_stack_kernel(%arg0: i32, %arg1: i32, %arg2: memref<2x32x128xf32, #tpu.memory_space<vmem>>, %arg3: memref<1x128x384xbf16, #tpu.memory_space<vmem>>, %arg4: memref<1x1x384xf32, #tpu.memory_space<vmem>>, %arg5: memref<1x128x128xbf16, #tpu.memory_space<vmem>>, %arg6: memref<1x1x128xf32, #tpu.memory_space<vmem>>, %arg7: memref<1x1x128xf32, #tpu.memory_space<vmem>>, %arg8: memref<1x1x128xf32, #tpu.memory_space<vmem>>, %arg9: memref<1x128x512xbf16, #tpu.memory_space<vmem>>, %arg10: memref<1x1x512xf32, #tpu.memory_space<vmem>>, %arg11: memref<1x512x128xbf16, #tpu.memory_space<vmem>>, %arg12: memref<1x1x128xf32, #tpu.memory_space<vmem>>, %arg13: memref<1x1x128xf32, #tpu.memory_space<vmem>>, %arg14: memref<1x1x128xf32, #tpu.memory_space<vmem>>, %arg15: memref<128x128xbf16, #tpu.memory_space<vmem>>, %arg16: memref<1x128xf32, #tpu.memory_space<vmem>>, %arg17: memref<2x1x128xf32, #tpu.memory_space<vmem>>, %arg18: memref<64x128xf32, #tpu.memory_space<vmem>>) attributes {dimension_semantics = [#tpu.dimension_semantics<parallel>, #tpu.dimension_semantics<arbitrary>], iteration_bounds = array<i64: 1, 2>, scalar_prefetch = 0 : i64, scratch_operands = 1 : i64, tpu.core_type = #tpu.core_type<tc>, window_params = [{transform_indices = @transform_0, window_bounds = array<i64: 2, 32, 128>}, {transform_indices = @transform_1, window_bounds = array<i64: 1, 128, 384>}, {transform_indices = @transform_2, window_bounds = array<i64: 1, 1, 384>}, {transform_indices = @transform_3, window_bounds = array<i64: 1, 128, 128>}, {transform_indices = @transform_4, window_bounds = array<i64: 1, 1, 128>}, {transform_indices = @transform_5, window_bounds = array<i64: 1, 1, 128>}, {transform_indices = @transform_6, window_bounds = array<i64: 1, 1, 128>}, {transform_indices = @transform_7, window_bounds = array<i64: 1, 128, 512>}, {transform_indices = @transform_8, window_bounds = array<i64: 1, 1, 512>}, {transform_indices = @transform_9, window_bounds = array<i64: 1, 512, 128>}, {transform_indices = @transform_10, window_bounds = array<i64: 1, 1, 128>}, {transform_indices = @transform_11, window_bounds = array<i64: 1, 1, 128>}, {transform_indices = @transform_12, window_bounds = array<i64: 1, 1, 128>}, {pipeline_mode = #tpu.pipeline_mode<synchronous>, transform_indices = @transform_13, window_bounds = array<i64: 128, 128>}, {pipeline_mode = #tpu.pipeline_mode<synchronous>, transform_indices = @transform_14, window_bounds = array<i64: 1, 128>}, {transform_indices = @transform_15, window_bounds = array<i64: 2, 1, 128>}]} {
    %c0_i32 = arith.constant 0 : i32
    %0 = arith.cmpi eq, %arg1, %c0_i32 : i32
    %1 = arith.extui %0 : i1 to i32
    %c0_i32_0 = arith.constant 0 : i32
    %2 = arith.cmpi ne, %1, %c0_i32_0 : i32
    scf.if %2 {
      %c0_92 = arith.constant 0 : index
      %c0_93 = arith.constant 0 : index
      %c0_94 = arith.constant 0 : index
      %237 = vector.load %arg2[%c0_92, %c0_93, %c0_94] : memref<2x32x128xf32, #tpu.memory_space<vmem>>, vector<2x32x128xf32>
      %238 = vector.shape_cast %237 : vector<2x32x128xf32> to vector<64x128xf32>
      %c0_95 = arith.constant 0 : index
      %c0_96 = arith.constant 0 : index
      %239 = vector.load %arg18[%c0_95, %c0_96] : memref<64x128xf32, #tpu.memory_space<vmem>>, vector<64x128xf32>
      tpu.vector_store %arg18[%c0_95, %c0_96], %238 {strides = array<i32>} : memref<64x128xf32, #tpu.memory_space<vmem>>, vector<64x128xf32>,
    } else {
    }
    %c0 = arith.constant 0 : index
    %c0_1 = arith.constant 0 : index
    %3 = vector.load %arg18[%c0, %c0_1] : memref<64x128xf32, #tpu.memory_space<vmem>>, vector<64x128xf32>
    %c0_2 = arith.constant 0 : index
    %c0_3 = arith.constant 0 : index
    %c0_4 = arith.constant 0 : index
    %4 = vector.load %arg7[%c0_2, %c0_3, %c0_4] : memref<1x1x128xf32, #tpu.memory_space<vmem>>, vector<1x1x128xf32>
    %5 = vector.shape_cast %4 : vector<1x1x128xf32> to vector<1x128xf32>
    %c0_5 = arith.constant 0 : index
    %c0_6 = arith.constant 0 : index
    %c0_7 = arith.constant 0 : index
    %6 = vector.load %arg8[%c0_5, %c0_6, %c0_7] : memref<1x1x128xf32, #tpu.memory_space<vmem>>, vector<1x1x128xf32>
    %7 = vector.shape_cast %6 : vector<1x1x128xf32> to vector<1x128xf32>
    %cst = arith.constant dense<0.000000e+00> : vector<64xf32>
    %8 = vector.multi_reduction <add>, %3, %cst [1] : vector<64x128xf32> to vector<64xf32>
    %9 = vector.shape_cast %8 : vector<64xf32> to vector<64x1xf32>
    %cst_8 = arith.constant 1.280000e+02 : f32
    %10 = vector.broadcast %cst_8 : f32 to vector<64x1xf32>
    %11 = arith.divf %9, %10 : vector<64x1xf32>
    %12 = arith.mulf %3, %3 : vector<64x128xf32>
    %cst_9 = arith.constant dense<0.000000e+00> : vector<64xf32>
    %13 = vector.multi_reduction <add>, %12, %cst_9 [1] : vector<64x128xf32> to vector<64xf32>
    %14 = vector.shape_cast %13 : vector<64xf32> to vector<64x1xf32>
    %cst_10 = arith.constant 1.280000e+02 : f32
    %15 = vector.broadcast %cst_10 : f32 to vector<64x1xf32>
    %16 = arith.divf %14, %15 : vector<64x1xf32>
    %17 = arith.mulf %11, %11 : vector<64x1xf32>
    %18 = arith.subf %16, %17 : vector<64x1xf32>
    %19 = vector.broadcast %11 : vector<64x1xf32> to vector<64x128xf32>
    %20 = arith.subf %3, %19 : vector<64x128xf32>
    %cst_11 = arith.constant 9.99999974E-6 : f32
    %21 = vector.broadcast %cst_11 : f32 to vector<64x1xf32>
    %22 = arith.addf %18, %21 : vector<64x1xf32>
    %23 = math.rsqrt %22 : vector<64x1xf32>
    %24 = vector.broadcast %23 : vector<64x1xf32> to vector<64x128xf32>
    %25 = arith.mulf %20, %24 : vector<64x128xf32>
    %26 = vector.broadcast %5 : vector<1x128xf32> to vector<64x128xf32>
    %27 = arith.mulf %25, %26 : vector<64x128xf32>
    %28 = vector.broadcast %7 : vector<1x128xf32> to vector<64x128xf32>
    %29 = arith.addf %27, %28 : vector<64x128xf32>
    %30 = arith.truncf %29 : vector<64x128xf32> to vector<64x128xbf16>
    %c0_12 = arith.constant 0 : index
    %c0_13 = arith.constant 0 : index
    %c0_14 = arith.constant 0 : index
    %31 = vector.load %arg3[%c0_12, %c0_13, %c0_14] : memref<1x128x384xbf16, #tpu.memory_space<vmem>>, vector<1x128x384xbf16>
    %32 = vector.shape_cast %31 : vector<1x128x384xbf16> to vector<128x384xbf16>
    %cst_15 = arith.constant dense<0.000000e+00> : vector<64x384xf32>
    %33 = tpu.matmul %30, %32, %cst_15 {dimension_numbers = #tpu.dot_dimension_numbers<[1], [0], [0], [1], [0, 0, 1, 1], [], []>} : vector<64x128xbf16>, vector<128x384xbf16>, vector<64x384xf32> -> vector<64x384xf32>
    %c0_16 = arith.constant 0 : index
    %c0_17 = arith.constant 0 : index
    %c0_18 = arith.constant 0 : index
    %34 = vector.load %arg4[%c0_16, %c0_17, %c0_18] : memref<1x1x384xf32, #tpu.memory_space<vmem>>, vector<1x1x384xf32>
    %35 = vector.shape_cast %34 : vector<1x1x384xf32> to vector<1x384xf32>
    %36 = vector.broadcast %35 : vector<1x384xf32> to vector<64x384xf32>
    %37 = arith.addf %33, %36 : vector<64x384xf32>
    %38 = tpu.iota {dimensions = array<i32: 2>} : vector<1x1x32xi32>
    %c17_i32 = arith.constant 17 : i32
    %39 = vector.broadcast %c17_i32 : i32 to vector<1x1x32xi32>
    %40 = arith.cmpi slt, %38, %39 : vector<1x1x32xi32>
    %cst_19 = arith.constant 0.000000e+00 : f32
    %cst_20 = arith.constant -1.000000e+09 : f32
    %41 = vector.broadcast %cst_19 : f32 to vector<1x1x32xf32>
    %42 = vector.broadcast %cst_20 : f32 to vector<1x1x32xf32>
    %43 = arith.select %40, %41, %42 : vector<1x1x32xi1>, vector<1x1x32xf32>
    %44 = vector.extract_strided_slice %37 {offsets = [0, 0], sizes = [64, 128], strides = [1, 1]} : vector<64x384xf32> to vector<64x128xf32>
    %45 = vector.shape_cast %44 : vector<64x128xf32> to vector<2x32x128xf32>
    %46 = vector.extract_strided_slice %37 {offsets = [0, 128], sizes = [64, 128], strides = [1, 1]} : vector<64x384xf32> to vector<64x128xf32>
    %47 = vector.shape_cast %46 : vector<64x128xf32> to vector<2x32x128xf32>
    %48 = vector.extract_strided_slice %37 {offsets = [0, 256], sizes = [64, 128], strides = [1, 1]} : vector<64x384xf32> to vector<64x128xf32>
    %49 = vector.shape_cast %48 : vector<64x128xf32> to vector<2x32x128xf32>
    %50 = vector.extract_strided_slice %45 {offsets = [0, 0, 0], sizes = [2, 32, 32], strides = [1, 1, 1]} : vector<2x32x128xf32> to vector<2x32x32xf32>
    %51 = arith.truncf %50 : vector<2x32x32xf32> to vector<2x32x32xbf16>
    %52 = vector.extract_strided_slice %47 {offsets = [0, 0, 0], sizes = [2, 32, 32], strides = [1, 1, 1]} : vector<2x32x128xf32> to vector<2x32x32xf32>
    %53 = arith.truncf %52 : vector<2x32x32xf32> to vector<2x32x32xbf16>
    %54 = vector.extract_strided_slice %49 {offsets = [0, 0, 0], sizes = [2, 32, 32], strides = [1, 1, 1]} : vector<2x32x128xf32> to vector<2x32x32xf32>
    %55 = arith.truncf %54 : vector<2x32x32xf32> to vector<2x32x32xbf16>
    "tpu.trace_start"() <{level = 10 : i32, message = "bqc,bkc->bqk"}> : () -> ()
    %cst_21 = arith.constant dense<0.000000e+00> : vector<2x32x32xf32>
    %56 = tpu.matmul %51, %53, %cst_21 {dimension_numbers = #tpu.dot_dimension_numbers<[2], [2], [1], [1], [0, 0, 0, 1, 1, 1], [0], [0]>} : vector<2x32x32xbf16>, vector<2x32x32xbf16>, vector<2x32x32xf32> -> vector<2x32x32xf32>
    "tpu.trace_stop"() : () -> ()
    %cst_22 = arith.constant 0.176776692 : f32
    %57 = vector.broadcast %cst_22 : f32 to vector<2x32x32xf32>
    %58 = arith.mulf %56, %57 : vector<2x32x32xf32>
    %59 = vector.broadcast %43 : vector<1x1x32xf32> to vector<2x32x32xf32>
    %60 = arith.addf %58, %59 : vector<2x32x32xf32>
    %cst_23 = arith.constant dense<0xFF800000> : vector<2x32xf32>
    %61 = vector.multi_reduction <maximumf>, %60, %cst_23 [2] : vector<2x32x32xf32> to vector<2x32xf32>
    %62 = vector.shape_cast %61 : vector<2x32xf32> to vector<2x32x1xf32>
    %63 = vector.broadcast %62 : vector<2x32x1xf32> to vector<2x32x32xf32>
    %64 = arith.subf %60, %63 : vector<2x32x32xf32>
    %65 = math.exp %64 : vector<2x32x32xf32>
    %cst_24 = arith.constant dense<0.000000e+00> : vector<2x32xf32>
    %66 = vector.multi_reduction <add>, %65, %cst_24 [2] : vector<2x32x32xf32> to vector<2x32xf32>
    %67 = vector.shape_cast %66 : vector<2x32xf32> to vector<2x32x1xf32>
    %68 = vector.broadcast %67 : vector<2x32x1xf32> to vector<2x32x32xf32>
    %69 = arith.divf %65, %68 : vector<2x32x32xf32>
    %70 = arith.truncf %69 : vector<2x32x32xf32> to vector<2x32x32xbf16>
    "tpu.trace_start"() <{level = 10 : i32, message = "bqk,bkc->bqc"}> : () -> ()
    %cst_25 = arith.constant dense<0.000000e+00> : vector<2x32x32xf32>
    %71 = tpu.matmul %70, %55, %cst_25 {dimension_numbers = #tpu.dot_dimension_numbers<[2], [1], [1], [2], [0, 0, 0, 1, 1, 2], [0], [0]>} : vector<2x32x32xbf16>, vector<2x32x32xbf16>, vector<2x32x32xf32> -> vector<2x32x32xf32>
    "tpu.trace_stop"() : () -> ()
    %72 = vector.extract_strided_slice %45 {offsets = [0, 0, 32], sizes = [2, 32, 32], strides = [1, 1, 1]} : vector<2x32x128xf32> to vector<2x32x32xf32>
    %73 = arith.truncf %72 : vector<2x32x32xf32> to vector<2x32x32xbf16>
    %74 = vector.extract_strided_slice %47 {offsets = [0, 0, 32], sizes = [2, 32, 32], strides = [1, 1, 1]} : vector<2x32x128xf32> to vector<2x32x32xf32>
    %75 = arith.truncf %74 : vector<2x32x32xf32> to vector<2x32x32xbf16>
    %76 = vector.extract_strided_slice %49 {offsets = [0, 0, 32], sizes = [2, 32, 32], strides = [1, 1, 1]} : vector<2x32x128xf32> to vector<2x32x32xf32>
    %77 = arith.truncf %76 : vector<2x32x32xf32> to vector<2x32x32xbf16>
    "tpu.trace_start"() <{level = 10 : i32, message = "bqc,bkc->bqk"}> : () -> ()
    %cst_26 = arith.constant dense<0.000000e+00> : vector<2x32x32xf32>
    %78 = tpu.matmul %73, %75, %cst_26 {dimension_numbers = #tpu.dot_dimension_numbers<[2], [2], [1], [1], [0, 0, 0, 1, 1, 1], [0], [0]>} : vector<2x32x32xbf16>, vector<2x32x32xbf16>, vector<2x32x32xf32> -> vector<2x32x32xf32>
    "tpu.trace_stop"() : () -> ()
    %cst_27 = arith.constant 0.176776692 : f32
    %79 = vector.broadcast %cst_27 : f32 to vector<2x32x32xf32>
    %80 = arith.mulf %78, %79 : vector<2x32x32xf32>
    %81 = vector.broadcast %43 : vector<1x1x32xf32> to vector<2x32x32xf32>
    %82 = arith.addf %80, %81 : vector<2x32x32xf32>
    %cst_28 = arith.constant dense<0xFF800000> : vector<2x32xf32>
    %83 = vector.multi_reduction <maximumf>, %82, %cst_28 [2] : vector<2x32x32xf32> to vector<2x32xf32>
    %84 = vector.shape_cast %83 : vector<2x32xf32> to vector<2x32x1xf32>
    %85 = vector.broadcast %84 : vector<2x32x1xf32> to vector<2x32x32xf32>
    %86 = arith.subf %82, %85 : vector<2x32x32xf32>
    %87 = math.exp %86 : vector<2x32x32xf32>
    %cst_29 = arith.constant dense<0.000000e+00> : vector<2x32xf32>
    %88 = vector.multi_reduction <add>, %87, %cst_29 [2] : vector<2x32x32xf32> to vector<2x32xf32>
    %89 = vector.shape_cast %88 : vector<2x32xf32> to vector<2x32x1xf32>
    %90 = vector.broadcast %89 : vector<2x32x1xf32> to vector<2x32x32xf32>
    %91 = arith.divf %87, %90 : vector<2x32x32xf32>
    %92 = arith.truncf %91 : vector<2x32x32xf32> to vector<2x32x32xbf16>
    "tpu.trace_start"() <{level = 10 : i32, message = "bqk,bkc->bqc"}> : () -> ()
    %cst_30 = arith.constant dense<0.000000e+00> : vector<2x32x32xf32>
    %93 = tpu.matmul %92, %77, %cst_30 {dimension_numbers = #tpu.dot_dimension_numbers<[2], [1], [1], [2], [0, 0, 0, 1, 1, 2], [0], [0]>} : vector<2x32x32xbf16>, vector<2x32x32xbf16>, vector<2x32x32xf32> -> vector<2x32x32xf32>
    "tpu.trace_stop"() : () -> ()
    %94 = vector.extract_strided_slice %45 {offsets = [0, 0, 64], sizes = [2, 32, 32], strides = [1, 1, 1]} : vector<2x32x128xf32> to vector<2x32x32xf32>
    %95 = arith.truncf %94 : vector<2x32x32xf32> to vector<2x32x32xbf16>
    %96 = vector.extract_strided_slice %47 {offsets = [0, 0, 64], sizes = [2, 32, 32], strides = [1, 1, 1]} : vector<2x32x128xf32> to vector<2x32x32xf32>
    %97 = arith.truncf %96 : vector<2x32x32xf32> to vector<2x32x32xbf16>
    %98 = vector.extract_strided_slice %49 {offsets = [0, 0, 64], sizes = [2, 32, 32], strides = [1, 1, 1]} : vector<2x32x128xf32> to vector<2x32x32xf32>
    %99 = arith.truncf %98 : vector<2x32x32xf32> to vector<2x32x32xbf16>
    "tpu.trace_start"() <{level = 10 : i32, message = "bqc,bkc->bqk"}> : () -> ()
    %cst_31 = arith.constant dense<0.000000e+00> : vector<2x32x32xf32>
    %100 = tpu.matmul %95, %97, %cst_31 {dimension_numbers = #tpu.dot_dimension_numbers<[2], [2], [1], [1], [0, 0, 0, 1, 1, 1], [0], [0]>} : vector<2x32x32xbf16>, vector<2x32x32xbf16>, vector<2x32x32xf32> -> vector<2x32x32xf32>
    "tpu.trace_stop"() : () -> ()
    %cst_32 = arith.constant 0.176776692 : f32
    %101 = vector.broadcast %cst_32 : f32 to vector<2x32x32xf32>
    %102 = arith.mulf %100, %101 : vector<2x32x32xf32>
    %103 = vector.broadcast %43 : vector<1x1x32xf32> to vector<2x32x32xf32>
    %104 = arith.addf %102, %103 : vector<2x32x32xf32>
    %cst_33 = arith.constant dense<0xFF800000> : vector<2x32xf32>
    %105 = vector.multi_reduction <maximumf>, %104, %cst_33 [2] : vector<2x32x32xf32> to vector<2x32xf32>
    %106 = vector.shape_cast %105 : vector<2x32xf32> to vector<2x32x1xf32>
    %107 = vector.broadcast %106 : vector<2x32x1xf32> to vector<2x32x32xf32>
    %108 = arith.subf %104, %107 : vector<2x32x32xf32>
    %109 = math.exp %108 : vector<2x32x32xf32>
    %cst_34 = arith.constant dense<0.000000e+00> : vector<2x32xf32>
    %110 = vector.multi_reduction <add>, %109, %cst_34 [2] : vector<2x32x32xf32> to vector<2x32xf32>
    %111 = vector.shape_cast %110 : vector<2x32xf32> to vector<2x32x1xf32>
    %112 = vector.broadcast %111 : vector<2x32x1xf32> to vector<2x32x32xf32>
    %113 = arith.divf %109, %112 : vector<2x32x32xf32>
    %114 = arith.truncf %113 : vector<2x32x32xf32> to vector<2x32x32xbf16>
    "tpu.trace_start"() <{level = 10 : i32, message = "bqk,bkc->bqc"}> : () -> ()
    %cst_35 = arith.constant dense<0.000000e+00> : vector<2x32x32xf32>
    %115 = tpu.matmul %114, %99, %cst_35 {dimension_numbers = #tpu.dot_dimension_numbers<[2], [1], [1], [2], [0, 0, 0, 1, 1, 2], [0], [0]>} : vector<2x32x32xbf16>, vector<2x32x32xbf16>, vector<2x32x32xf32> -> vector<2x32x32xf32>
    "tpu.trace_stop"() : () -> ()
    %116 = vector.extract_strided_slice %45 {offsets = [0, 0, 96], sizes = [2, 32, 32], strides = [1, 1, 1]} : vector<2x32x128xf32> to vector<2x32x32xf32>
    %117 = arith.truncf %116 : vector<2x32x32xf32> to vector<2x32x32xbf16>
    %118 = vector.extract_strided_slice %47 {offsets = [0, 0, 96], sizes = [2, 32, 32], strides = [1, 1, 1]} : vector<2x32x128xf32> to vector<2x32x32xf32>
    %119 = arith.truncf %118 : vector<2x32x32xf32> to vector<2x32x32xbf16>
    %120 = vector.extract_strided_slice %49 {offsets = [0, 0, 96], sizes = [2, 32, 32], strides = [1, 1, 1]} : vector<2x32x128xf32> to vector<2x32x32xf32>
    %121 = arith.truncf %120 : vector<2x32x32xf32> to vector<2x32x32xbf16>
    "tpu.trace_start"() <{level = 10 : i32, message = "bqc,bkc->bqk"}> : () -> ()
    %cst_36 = arith.constant dense<0.000000e+00> : vector<2x32x32xf32>
    %122 = tpu.matmul %117, %119, %cst_36 {dimension_numbers = #tpu.dot_dimension_numbers<[2], [2], [1], [1], [0, 0, 0, 1, 1, 1], [0], [0]>} : vector<2x32x32xbf16>, vector<2x32x32xbf16>, vector<2x32x32xf32> -> vector<2x32x32xf32>
    "tpu.trace_stop"() : () -> ()
    %cst_37 = arith.constant 0.176776692 : f32
    %123 = vector.broadcast %cst_37 : f32 to vector<2x32x32xf32>
    %124 = arith.mulf %122, %123 : vector<2x32x32xf32>
    %125 = vector.broadcast %43 : vector<1x1x32xf32> to vector<2x32x32xf32>
    %126 = arith.addf %124, %125 : vector<2x32x32xf32>
    %cst_38 = arith.constant dense<0xFF800000> : vector<2x32xf32>
    %127 = vector.multi_reduction <maximumf>, %126, %cst_38 [2] : vector<2x32x32xf32> to vector<2x32xf32>
    %128 = vector.shape_cast %127 : vector<2x32xf32> to vector<2x32x1xf32>
    %129 = vector.broadcast %128 : vector<2x32x1xf32> to vector<2x32x32xf32>
    %130 = arith.subf %126, %129 : vector<2x32x32xf32>
    %131 = math.exp %130 : vector<2x32x32xf32>
    %cst_39 = arith.constant dense<0.000000e+00> : vector<2x32xf32>
    %132 = vector.multi_reduction <add>, %131, %cst_39 [2] : vector<2x32x32xf32> to vector<2x32xf32>
    %133 = vector.shape_cast %132 : vector<2x32xf32> to vector<2x32x1xf32>
    %134 = vector.broadcast %133 : vector<2x32x1xf32> to vector<2x32x32xf32>
    %135 = arith.divf %131, %134 : vector<2x32x32xf32>
    %136 = arith.truncf %135 : vector<2x32x32xf32> to vector<2x32x32xbf16>
    "tpu.trace_start"() <{level = 10 : i32, message = "bqk,bkc->bqc"}> : () -> ()
    %cst_40 = arith.constant dense<0.000000e+00> : vector<2x32x32xf32>
    %137 = tpu.matmul %136, %121, %cst_40 {dimension_numbers = #tpu.dot_dimension_numbers<[2], [1], [1], [2], [0, 0, 0, 1, 1, 2], [0], [0]>} : vector<2x32x32xbf16>, vector<2x32x32xbf16>, vector<2x32x32xf32> -> vector<2x32x32xf32>
    "tpu.trace_stop"() : () -> ()
    %138 = tpu.concatenate %71, %93, %115, %137 in 2 : vector<2x32x32xf32>, vector<2x32x32xf32>, vector<2x32x32xf32>, vector<2x32x32xf32> -> vector<2x32x128xf32>
    %139 = vector.shape_cast %138 : vector<2x32x128xf32> to vector<64x128xf32>
    %140 = arith.truncf %139 : vector<64x128xf32> to vector<64x128xbf16>
    %c0_41 = arith.constant 0 : index
    %c0_42 = arith.constant 0 : index
    %c0_43 = arith.constant 0 : index
    %141 = vector.load %arg5[%c0_41, %c0_42, %c0_43] : memref<1x128x128xbf16, #tpu.memory_space<vmem>>, vector<1x128x128xbf16>
    %142 = vector.shape_cast %141 : vector<1x128x128xbf16> to vector<128x128xbf16>
    %cst_44 = arith.constant dense<0.000000e+00> : vector<64x128xf32>
    %143 = tpu.matmul %140, %142, %cst_44 {dimension_numbers = #tpu.dot_dimension_numbers<[1], [0], [0], [1], [0, 0, 1, 1], [], []>} : vector<64x128xbf16>, vector<128x128xbf16>, vector<64x128xf32> -> vector<64x128xf32>
    %c0_45 = arith.constant 0 : index
    %c0_46 = arith.constant 0 : index
    %c0_47 = arith.constant 0 : index
    %144 = vector.load %arg6[%c0_45, %c0_46, %c0_47] : memref<1x1x128xf32, #tpu.memory_space<vmem>>, vector<1x1x128xf32>
    %145 = vector.shape_cast %144 : vector<1x1x128xf32> to vector<1x128xf32>
    %146 = vector.broadcast %145 : vector<1x128xf32> to vector<64x128xf32>
    %147 = arith.addf %143, %146 : vector<64x128xf32>
    %148 = arith.addf %3, %147 : vector<64x128xf32>
    %c0_48 = arith.constant 0 : index
    %c0_49 = arith.constant 0 : index
    %c0_50 = arith.constant 0 : index
    %149 = vector.load %arg13[%c0_48, %c0_49, %c0_50] : memref<1x1x128xf32, #tpu.memory_space<vmem>>, vector<1x1x128xf32>
    %150 = vector.shape_cast %149 : vector<1x1x128xf32> to vector<1x128xf32>
    %c0_51 = arith.constant 0 : index
    %c0_52 = arith.constant 0 : index
    %c0_53 = arith.constant 0 : index
    %151 = vector.load %arg14[%c0_51, %c0_52, %c0_53] : memref<1x1x128xf32, #tpu.memory_space<vmem>>, vector<1x1x128xf32>
    %152 = vector.shape_cast %151 : vector<1x1x128xf32> to vector<1x128xf32>
    %cst_54 = arith.constant dense<0.000000e+00> : vector<64xf32>
    %153 = vector.multi_reduction <add>, %148, %cst_54 [1] : vector<64x128xf32> to vector<64xf32>
    %154 = vector.shape_cast %153 : vector<64xf32> to vector<64x1xf32>
    %cst_55 = arith.constant 1.280000e+02 : f32
    %155 = vector.broadcast %cst_55 : f32 to vector<64x1xf32>
    %156 = arith.divf %154, %155 : vector<64x1xf32>
    %157 = arith.mulf %148, %148 : vector<64x128xf32>
    %cst_56 = arith.constant dense<0.000000e+00> : vector<64xf32>
    %158 = vector.multi_reduction <add>, %157, %cst_56 [1] : vector<64x128xf32> to vector<64xf32>
    %159 = vector.shape_cast %158 : vector<64xf32> to vector<64x1xf32>
    %cst_57 = arith.constant 1.280000e+02 : f32
    %160 = vector.broadcast %cst_57 : f32 to vector<64x1xf32>
    %161 = arith.divf %159, %160 : vector<64x1xf32>
    %162 = arith.mulf %156, %156 : vector<64x1xf32>
    %163 = arith.subf %161, %162 : vector<64x1xf32>
    %164 = vector.broadcast %156 : vector<64x1xf32> to vector<64x128xf32>
    %165 = arith.subf %148, %164 : vector<64x128xf32>
    %cst_58 = arith.constant 9.99999974E-6 : f32
    %166 = vector.broadcast %cst_58 : f32 to vector<64x1xf32>
    %167 = arith.addf %163, %166 : vector<64x1xf32>
    %168 = math.rsqrt %167 : vector<64x1xf32>
    %169 = vector.broadcast %168 : vector<64x1xf32> to vector<64x128xf32>
    %170 = arith.mulf %165, %169 : vector<64x128xf32>
    %171 = vector.broadcast %150 : vector<1x128xf32> to vector<64x128xf32>
    %172 = arith.mulf %170, %171 : vector<64x128xf32>
    %173 = vector.broadcast %152 : vector<1x128xf32> to vector<64x128xf32>
    %174 = arith.addf %172, %173 : vector<64x128xf32>
    %175 = arith.truncf %174 : vector<64x128xf32> to vector<64x128xbf16>
    %c0_59 = arith.constant 0 : index
    %c0_60 = arith.constant 0 : index
    %c0_61 = arith.constant 0 : index
    %176 = vector.load %arg9[%c0_59, %c0_60, %c0_61] : memref<1x128x512xbf16, #tpu.memory_space<vmem>>, vector<1x128x512xbf16>
    %177 = vector.shape_cast %176 : vector<1x128x512xbf16> to vector<128x512xbf16>
    %cst_62 = arith.constant dense<0.000000e+00> : vector<64x512xf32>
    %178 = tpu.matmul %175, %177, %cst_62 {dimension_numbers = #tpu.dot_dimension_numbers<[1], [0], [0], [1], [0, 0, 1, 1], [], []>} : vector<64x128xbf16>, vector<128x512xbf16>, vector<64x512xf32> -> vector<64x512xf32>
    %c0_63 = arith.constant 0 : index
    %c0_64 = arith.constant 0 : index
    %c0_65 = arith.constant 0 : index
    %179 = vector.load %arg10[%c0_63, %c0_64, %c0_65] : memref<1x1x512xf32, #tpu.memory_space<vmem>>, vector<1x1x512xf32>
    %180 = vector.shape_cast %179 : vector<1x1x512xf32> to vector<1x512xf32>
    %181 = vector.broadcast %180 : vector<1x512xf32> to vector<64x512xf32>
    %182 = arith.addf %178, %181 : vector<64x512xf32>
    %cst_66 = arith.constant 5.000000e-01 : f32
    %183 = vector.broadcast %cst_66 : f32 to vector<64x512xf32>
    %184 = arith.mulf %183, %182 : vector<64x512xf32>
    %cst_67 = arith.constant 0.707106769 : f32
    %185 = vector.broadcast %cst_67 : f32 to vector<64x512xf32>
    %186 = arith.mulf %182, %185 : vector<64x512xf32>
    %cst_68 = arith.constant 0.000000e+00 : f32
    %187 = vector.broadcast %cst_68 : f32 to vector<64x512xf32>
    %188 = arith.cmpf olt, %186, %187 : vector<64x512xf32>
    %cst_69 = arith.constant -1.000000e+00 : f32
    %cst_70 = arith.constant 1.000000e+00 : f32
    %189 = vector.broadcast %cst_69 : f32 to vector<64x512xf32>
    %190 = vector.broadcast %cst_70 : f32 to vector<64x512xf32>
    %191 = arith.select %188, %189, %190 : vector<64x512xi1>, vector<64x512xf32>
    %192 = math.absf %186 : vector<64x512xf32>
    %cst_71 = arith.constant 0.327591091 : f32
    %193 = vector.broadcast %cst_71 : f32 to vector<64x512xf32>
    %194 = arith.mulf %193, %192 : vector<64x512xf32>
    %cst_72 = arith.constant 1.000000e+00 : f32
    %195 = vector.broadcast %cst_72 : f32 to vector<64x512xf32>
    %196 = arith.addf %195, %194 : vector<64x512xf32>
    %cst_73 = arith.constant 1.000000e+00 : f32
    %197 = vector.broadcast %cst_73 : f32 to vector<64x512xf32>
    %198 = arith.divf %197, %196 : vector<64x512xf32>
    %cst_74 = arith.constant 1.06140542 : f32
    %199 = vector.broadcast %cst_74 : f32 to vector<64x512xf32>
    %200 = arith.mulf %199, %198 : vector<64x512xf32>
    %cst_75 = arith.constant -1.45315206 : f32
    %201 = vector.broadcast %cst_75 : f32 to vector<64x512xf32>
    %202 = arith.addf %200, %201 : vector<64x512xf32>
    %203 = arith.mulf %202, %198 : vector<64x512xf32>
    %cst_76 = arith.constant 1.42141378 : f32
    %204 = vector.broadcast %cst_76 : f32 to vector<64x512xf32>
    %205 = arith.addf %203, %204 : vector<64x512xf32>
    %206 = arith.mulf %205, %198 : vector<64x512xf32>
    %cst_77 = arith.constant -0.284496725 : f32
    %207 = vector.broadcast %cst_77 : f32 to vector<64x512xf32>
    %208 = arith.addf %206, %207 : vector<64x512xf32>
    %209 = arith.mulf %208, %198 : vector<64x512xf32>
    %cst_78 = arith.constant 0.254829586 : f32
    %210 = vector.broadcast %cst_78 : f32 to vector<64x512xf32>
    %211 = arith.addf %209, %210 : vector<64x512xf32>
    %212 = arith.mulf %211, %198 : vector<64x512xf32>
    %cst_79 = arith.constant 0.000000e+00 : f32
    %213 = vector.broadcast %cst_79 : f32 to vector<64x512xf32>
    %214 = arith.subf %213, %192 : vector<64x512xf32>
    %215 = arith.mulf %214, %192 : vector<64x512xf32>
    %216 = math.exp %215 : vector<64x512xf32>
    %217 = arith.mulf %212, %216 : vector<64x512xf32>
    %cst_80 = arith.constant 1.000000e+00 : f32
    %218 = vector.broadcast %cst_80 : f32 to vector<64x512xf32>
    %219 = arith.subf %218, %217 : vector<64x512xf32>
    %220 = arith.mulf %191, %219 : vector<64x512xf32>
    %cst_81 = arith.constant 1.000000e+00 : f32
    %221 = vector.broadcast %cst_81 : f32 to vector<64x512xf32>
    %222 = arith.addf %221, %220 : vector<64x512xf32>
    %223 = arith.mulf %184, %222 : vector<64x512xf32>
    %224 = arith.truncf %223 : vector<64x512xf32> to vector<64x512xbf16>
    %c0_82 = arith.constant 0 : index
    %c0_83 = arith.constant 0 : index
    %c0_84 = arith.constant 0 : index
    %225 = vector.load %arg11[%c0_82, %c0_83, %c0_84] : memref<1x512x128xbf16, #tpu.memory_space<vmem>>, vector<1x512x128xbf16>
    %226 = vector.shape_cast %225 : vector<1x512x128xbf16> to vector<512x128xbf16>
    %cst_85 = arith.constant dense<0.000000e+00> : vector<64x128xf32>
    %227 = tpu.matmul %224, %226, %cst_85 {dimension_numbers = #tpu.dot_dimension_numbers<[1], [0], [0], [1], [0, 0, 1, 1], [], []>} : vector<64x512xbf16>, vector<512x128xbf16>, vector<64x128xf32> -> vector<64x128xf32>
    %c0_86 = arith.constant 0 : index
    %c0_87 = arith.constant 0 : index
    %c0_88 = arith.constant 0 : index
    %228 = vector.load %arg12[%c0_86, %c0_87, %c0_88] : memref<1x1x128xf32, #tpu.memory_space<vmem>>, vector<1x1x128xf32>
    %229 = vector.shape_cast %228 : vector<1x1x128xf32> to vector<1x128xf32>
    %230 = vector.broadcast %229 : vector<1x128xf32> to vector<64x128xf32>
    %231 = arith.addf %227, %230 : vector<64x128xf32>
    %232 = arith.addf %148, %231 : vector<64x128xf32>
    %c0_89 = arith.constant 0 : index
    %c0_90 = arith.constant 0 : index
    %233 = vector.load %arg18[%c0_89, %c0_90] : memref<64x128xf32, #tpu.memory_space<vmem>>, vector<64x128xf32>
    tpu.vector_store %arg18[%c0_89, %c0_90], %232 {strides = array<i32>} : memref<64x128xf32, #tpu.memory_space<vmem>>, vector<64x128xf32>,
    %c1_i32 = arith.constant 1 : i32
    %234 = arith.cmpi eq, %arg1, %c1_i32 : i32
    %235 = arith.extui %234 : i1 to i32
    %c0_i32_91 = arith.constant 0 : i32
    %236 = arith.cmpi ne, %235, %c0_i32_91 : i32
    scf.if %236 {
      %237 = arith.truncf %232 : vector<64x128xf32> to vector<64x128xbf16>
      %c0_92 = arith.constant 0 : index
      %c0_93 = arith.constant 0 : index
      %238 = vector.load %arg15[%c0_92, %c0_93] : memref<128x128xbf16, #tpu.memory_space<vmem>>, vector<128x128xbf16>
      %cst_94 = arith.constant dense<0.000000e+00> : vector<64x128xf32>
      %239 = tpu.matmul %237, %238, %cst_94 {dimension_numbers = #tpu.dot_dimension_numbers<[1], [0], [0], [1], [0, 0, 1, 1], [], []>} : vector<64x128xbf16>, vector<128x128xbf16>, vector<64x128xf32> -> vector<64x128xf32>
      %c0_95 = arith.constant 0 : index
      %c0_96 = arith.constant 0 : index
      %240 = vector.load %arg16[%c0_95, %c0_96] : memref<1x128xf32, #tpu.memory_space<vmem>>, vector<1x128xf32>
      %241 = vector.broadcast %240 : vector<1x128xf32> to vector<64x128xf32>
      %242 = arith.addf %239, %241 : vector<64x128xf32>
      %243 = vector.shape_cast %242 : vector<64x128xf32> to vector<2x32x128xf32>
      %244 = vector.extract_strided_slice %243 {offsets = [0, 0, 0], sizes = [2, 1, 128], strides = [1, 1, 1]} : vector<2x32x128xf32> to vector<2x1x128xf32>
      %c0_97 = arith.constant 0 : index
      %c0_98 = arith.constant 0 : index
      %c0_99 = arith.constant 0 : index
      %245 = vector.load %arg17[%c0_97, %c0_98, %c0_99] : memref<2x1x128xf32, #tpu.memory_space<vmem>>, vector<2x1x128xf32>
      tpu.vector_store %arg17[%c0_97, %c0_98, %c0_99], %244 {strides = array<i32>} : memref<2x1x128xf32, #tpu.memory_space<vmem>>, vector<2x1x128xf32>,
    } else {
    }
    return
  }
  func.func @transform_0(%arg0: i32, %arg1: i32) -> (i32, i32, i32) {
    %c0_i32 = arith.constant 0 : i32
    %c0_i32_0 = arith.constant 0 : i32
    %c0_i32_1 = arith.constant 0 : i32
    return %arg0, %c0_i32, %c0_i32_0 : i32, i32, i32
  }
  func.func @transform_1(%arg0: i32, %arg1: i32) -> (i32, i32, i32) {
    %c0_i32 = arith.constant 0 : i32
    %c0_i32_0 = arith.constant 0 : i32
    %c0_i32_1 = arith.constant 0 : i32
    return %arg1, %c0_i32, %c0_i32_0 : i32, i32, i32
  }
  func.func @transform_2(%arg0: i32, %arg1: i32) -> (i32, i32, i32) {
    %c0_i32 = arith.constant 0 : i32
    %c0_i32_0 = arith.constant 0 : i32
    %c0_i32_1 = arith.constant 0 : i32
    return %arg1, %c0_i32, %c0_i32_0 : i32, i32, i32
  }
  func.func @transform_3(%arg0: i32, %arg1: i32) -> (i32, i32, i32) {
    %c0_i32 = arith.constant 0 : i32
    %c0_i32_0 = arith.constant 0 : i32
    %c0_i32_1 = arith.constant 0 : i32
    return %arg1, %c0_i32, %c0_i32_0 : i32, i32, i32
  }
  func.func @transform_4(%arg0: i32, %arg1: i32) -> (i32, i32, i32) {
    %c0_i32 = arith.constant 0 : i32
    %c0_i32_0 = arith.constant 0 : i32
    %c0_i32_1 = arith.constant 0 : i32
    return %arg1, %c0_i32, %c0_i32_0 : i32, i32, i32
  }
  func.func @transform_5(%arg0: i32, %arg1: i32) -> (i32, i32, i32) {
    %c0_i32 = arith.constant 0 : i32
    %c0_i32_0 = arith.constant 0 : i32
    %c0_i32_1 = arith.constant 0 : i32
    return %arg1, %c0_i32, %c0_i32_0 : i32, i32, i32
  }
  func.func @transform_6(%arg0: i32, %arg1: i32) -> (i32, i32, i32) {
    %c0_i32 = arith.constant 0 : i32
    %c0_i32_0 = arith.constant 0 : i32
    %c0_i32_1 = arith.constant 0 : i32
    return %arg1, %c0_i32, %c0_i32_0 : i32, i32, i32
  }
  func.func @transform_7(%arg0: i32, %arg1: i32) -> (i32, i32, i32) {
    %c0_i32 = arith.constant 0 : i32
    %c0_i32_0 = arith.constant 0 : i32
    %c0_i32_1 = arith.constant 0 : i32
    return %arg1, %c0_i32, %c0_i32_0 : i32, i32, i32
  }
  func.func @transform_8(%arg0: i32, %arg1: i32) -> (i32, i32, i32) {
    %c0_i32 = arith.constant 0 : i32
    %c0_i32_0 = arith.constant 0 : i32
    %c0_i32_1 = arith.constant 0 : i32
    return %arg1, %c0_i32, %c0_i32_0 : i32, i32, i32
  }
  func.func @transform_9(%arg0: i32, %arg1: i32) -> (i32, i32, i32) {
    %c0_i32 = arith.constant 0 : i32
    %c0_i32_0 = arith.constant 0 : i32
    %c0_i32_1 = arith.constant 0 : i32
    return %arg1, %c0_i32, %c0_i32_0 : i32, i32, i32
  }
  func.func @transform_10(%arg0: i32, %arg1: i32) -> (i32, i32, i32) {
    %c0_i32 = arith.constant 0 : i32
    %c0_i32_0 = arith.constant 0 : i32
    %c0_i32_1 = arith.constant 0 : i32
    return %arg1, %c0_i32, %c0_i32_0 : i32, i32, i32
  }
  func.func @transform_11(%arg0: i32, %arg1: i32) -> (i32, i32, i32) {
    %c0_i32 = arith.constant 0 : i32
    %c0_i32_0 = arith.constant 0 : i32
    %c0_i32_1 = arith.constant 0 : i32
    return %arg1, %c0_i32, %c0_i32_0 : i32, i32, i32
  }
  func.func @transform_12(%arg0: i32, %arg1: i32) -> (i32, i32, i32) {
    %c0_i32 = arith.constant 0 : i32
    %c0_i32_0 = arith.constant 0 : i32
    %c0_i32_1 = arith.constant 0 : i32
    return %arg1, %c0_i32, %c0_i32_0 : i32, i32, i32
  }
  func.func @transform_13(%arg0: i32, %arg1: i32) -> (i32, i32) {
    %c0_i32 = arith.constant 0 : i32
    %c0_i32_0 = arith.constant 0 : i32
    %c0_i32_1 = arith.constant 0 : i32
    return %c0_i32, %c0_i32_0 : i32, i32
  }
  func.func @transform_14(%arg0: i32, %arg1: i32) -> (i32, i32) {
    %c0_i32 = arith.constant 0 : i32
    %c0_i32_0 = arith.constant 0 : i32
    %c0_i32_1 = arith.constant 0 : i32
    return %c0_i32, %c0_i32_0 : i32, i32
  }
  func.func @transform_15(%arg0: i32, %arg1: i32) -> (i32, i32, i32) {
    %c0_i32 = arith.constant 0 : i32
    %c0_i32_0 = arith.constant 0 : i32
    %c0_i32_1 = arith.constant 0 : i32
    return %arg0, %c0_i32, %c0_i32_0 : i32, i32, i32
  }
}

</mosaic_0001>

<bundles_post_ra>
// kernel: vit_forward.2
= control target key start
LH: loop header
LB: loop body
LE: loop exit
PB: predicated region body
PF: predicated region fallthrough
CT: control target
= control target key end

     0   :  { %vm60_vm0 = vcmask 392192   ;;  %s202_s1 = inlined_call_operand.vmem [shape: bf16[48,128], index: 1, kind: input, shape index: {}]   ;;  %s203_s0 = inlined_call_operand.vmem [shape: bf16[32,48], index: 0, kind: input, shape index: {}]   ;;  %s204_s2 = inlined_call_operand.vmem [shape: f32[1,128], index: 2, kind: input, shape index: {}]   ;;  %s205_s3 = inlined_call_operand.vmem [shape: f32[32,128], index: 3, kind: output, shape index: {}]  }
   0x1   :  { %v147_v0 = vld [vmem:[%s202_s1] sm:$0xff]   ;;  %v148_v1 = vld [vmem:[%s202_s1 + $0x8] sm:$0xff]   ;;  %v149_v3 = vld [vmem:[%s202_s1 + $0x10] sm:$0xff]  }
   0x2   :  { %137 = vmatprep.subr.bf16.mxu0 %v147_v0  ;;  %v150_v2 = vld [vmem:[%s203_s0] sm:$0xff]   ;;  %v151_v4 = vld [vmem:[%s203_s0 + $0x8] sm:$0xff]  }
   0x3   :  { %138 = vmatpush3.bf16.msra.mxu0 %v147_v0  ;;  %143 = vmatprep.mubr.msk.bf16.mxu0 %vm60_vm0, %v150_v2  ;;  %v124_v5 = vld [vmem:[%s204_s2] ss:$0 sm:$0xff] }
   0x4   :  { %139 = vmatprep.subr.bf16.mxu0 %v148_v1 }
   0x7   :  { %140 = vmatpush3.bf16.msra.mxu0 %v148_v1 }
   0x8   :  { %141 = vmatprep.subr.bf16.mxu0 %v149_v3 }
   0xb   :  { %142 = vmatpush3.bf16.msra.mxu0 %v149_v3 }
   0xe   :  { %144 = vmatmul.mubr.msk.bf16.vlgmr.msra.gmra.mrb[0].mxu0 %vm60_vm0, %v151_v4 }
  0xe1   :  { %v145_v6 = vpop.f32.mrb[0].mxu0 }
  0xe2   :  { %v110_v7 = vadd.f32 %v145_v6, %v124_v5  ;;  %v101_v8 = vpop.f32.mrb[1].mxu0 }
  0xe3   :  { %v102_v9 = vadd.f32 %v124_v5, %v101_v8  ;;  %v146_v10 = vpop.f32.mrb[2].mxu0 }
  0xe4   :  { %118 = vst [vmem:[%s205_s3 + $0x10] sm:$0xff] %v110_v7  ;;  %v113_v11 = vadd.f32 %v146_v10, %v124_v5  ;;  %v104_v12 = vpop.f32.mrb[3].mxu0 }
  0xe5   :  { %116 = vst [vmem:[%s205_s3] sm:$0xff] %v102_v9  ;;  %v105_v13 = vadd.f32 %v124_v5, %v104_v12 }
  0xe6   :  { %119 = vst [vmem:[%s205_s3 + $0x18] sm:$0xff] %v113_v11 }
  0xe7   :  { %117 = vst [vmem:[%s205_s3 + $0x8] sm:$0xff] %v105_v13 }

// kernel: vit_forward.3
= control target key start
LH: loop header
LB: loop body
LE: loop exit
PB: predicated region body
PF: predicated region fallthrough
CT: control target
= control target key end

     0   :  { %s8543_s0 = inlined_call_operand.vmem [shape: f32[2,32,128], index: 0, kind: input, shape index: {}]   ;;  %s8544_s1 = inlined_call_operand.hbm [shape: bf16[2,128,384], index: 1, kind: input, shape index: {}]   ;;  %s8545_s2 = inlined_call_operand.vmem [shape: f32[2,1,384], index: 2, kind: input, shape index: {}]   ;;  %s8546_s3 = inlined_call_operand.vmem [shape: bf16[2,128,128], index: 3, kind: input, shape index: {}]   ;;  %s8547_s4 = inlined_call_operand.vmem [shape: f32[2,1,128], index: 4, kind: input, shape index: {}]   ;;  %s8548_s5 = inlined_call_operand.vmem [shape: f32[2,1,128], index: 5, kind: input, shape index: {}]   ;;  %s8549_s6 = inlined_call_operand.vmem [shape: f32[2,1,128], index: 6, kind: input, shape index: {}]   ;;  %s8550_s7 = inlined_call_operand.vmem [shape: bf16[2,128,512], index: 7, kind: input, shape index: {}]   ;;  %s8551_s8 = inlined_call_operand.vmem [shape: f32[2,1,512], index: 8, kind: input, shape index: {}]   ;;  %s8552_s9 = inlined_call_operand.vmem [shape: bf16[2,512,128], index: 9, kind: input, shape index: {}]   ;;  %s8553_s10 = inlined_call_operand.vmem [shape: f32[2,1,128], index: 10, kind: input, shape index: {}]   ;;  %s8554_s11 = inlined_call_operand.vmem [shape: f32[2,1,128], index: 11, kind: input, shape index: {}]   ;;  %s8555_s12 = inlined_call_operand.vmem [shape: f32[2,1,128], index: 12, kind: input, shape index: {}]   ;;  %s8556_s13 = inlined_call_operand.vmem [shape: bf16[128,128], index: 13, kind: input, shape index: {}]   ;;  %s8557_s14 = inlined_call_operand.vmem [shape: f32[1,128], index: 14, kind: input, shape index: {}]   ;;  %s8558_s15 = inlined_call_operand.hbm [shape: f32[2,1,128], index: 15, kind: output, shape index: {}]  }
   0x1   :  { %8586 = sst [smem:[#allocation43_spill]] %s8544_s1 }
   0x2   :  { %8587 = sst [smem:[#allocation44_spill]] %s8545_s2 }
   0x3   :  { %8588 = sst [smem:[#allocation45_spill]] %s8546_s3 }
   0x4   :  { %8589 = sst [smem:[#allocation46_spill]] %s8550_s7 }
   0x5   :  { %8590 = sst [smem:[#allocation47_spill]] %s8556_s13 }
   0x6   :  { %8591 = sst [smem:[#allocation48_spill]] %s8557_s14 }
   0x7   :  { %8592 = sst [smem:[#allocation49_spill]] %s8558_s15 }
   0x8   :  { %20 = vsyncpa [#allocation4], 0 }
   0x9   :  { %22 = vsyncpa [#allocation4 + $0x1], 0 }
   0xa   :  { %23 = vsyncpa [#allocation5], 0  ;;  %s6418_s18 = smov 0   ;;  %s6420_s19 = smov 0  }
   0xb   :  { %s6422_s20 = smov 0   ;;  %s6424_s21 = smov 0  }
   0xc   :  { %s6426_s22 = smov 0   ;;  %s6428_s23 = smov 0  }
   0xd LB: > { %8593 = sst [smem:[#allocation9_spill]] %s6308_s19  ;;  %s8561_s24 = sadd.s32 4294967295, %s6324_s23   ;;  %s6324_s23 = sphi %s6428_s23, %s29_s23   ;;  %s6320_s22 = sphi %s6426_s22, %s8701_s22   ;;  %s6316_s21 = sphi %s6424_s21, %s8700_s21   ;;  %s6312_s20 = sphi %s6422_s20, %s8699_s20   ;;  %s6308_s19 = sphi %s6420_s19, %s8698_s19   ;;  %s6304_s18 = sphi %s6418_s18, %s8697_s18  }
   0xe   : > { %8594 = sst [smem:[#allocation10_spill]] %s6312_s20  ;;  %s38_s25 = sadd.s32 1, %s6320_s22 }
   0xf   : > { %8595 = sst [smem:[#allocation11_spill]] %s6320_s22  ;;  %p39_p0 = scmp.ge.s32.totalorder %s38_s25, 2 }
  0x10   : > { %8596 = sst [smem:[#allocation12_spill]] %s6324_s23  ;;  %s74_s26 = sadd.s32 1, %s6312_s20 }
  0x11   : > { %p81_p1 = scmp.ne.s32.totalorder %s6312_s20, %s6308_s19  ;;  %p82_p2 = scmp.eq.s32.totalorder %s6324_s23, 0 }
  0x12   : > { %s8703_s25 = smov (%p39_p0, %s38_s25), 0  ;;  %p87_p4 = scmp.ne.s32.totalorder %s6308_s19, %s6304_s18 }
  0x13   : > { %8597 = sst [smem:[#allocation13_spill]] %s8703_s25  ;;  %p83_p3 = por %p82_p2, %p81_p1 }
  0x14   : > { %s71_s27 = ssub.s32 %s6320_s22, %s8703_s25  ;;  %p88_p5 = scmp.eq.s32.totalorder %s8561_s24, 0 }
  0x15   : > { %p72_p6 = scmp.eq.s32.totalorder %s71_s27, 0  ;;  %p5668_p8 = scmp.lt.s32.totalorder %s6324_s23, 2 }
  0x16   : > { %p6459_p7 = por %p88_p5, %p87_p4  ;;  %s481_s30 = sand.u32 1, %s6312_s20  }
  0x17   : > { %s6465_s29 = scalar_select %p72_p6, %s6312_s20, %s74_s26  }
  0x18   : > { %s5655_s16 = smul.u32 3072, %s6320_s22  ;;  %s8600_s1 = sld [smem:[#allocation43_spill]] }
  0x19   : > { %8599 = sst [smem:[#allocation14_spill]] %s6465_s29  ;;  %s5654_s17 = smul.u32 192, %s481_s30 }
  0x1a   : > { %p6474_p9 = pnand %p5668_p8, %p83_p3  ;;  %s6480_s24 = scalar_lea.sflag [#allocation4], %s481_s30 }
  0x1b   : > { %s485_s26 = scalar_lea.vmem [#allocation3], %s5654_s17 }
  0x1c   : > { %s492_s27 = sshll.u32 %s485_s26, 4  ;;  %p6216_p11 = pneg %p6474_p9  ;;  %s6478_s27 = int_to_ptr.vmem [resolvable:$true] %s492_s27 }
  0x1e   : > { %s6472_s13 = scalar_lea.hbm %s8600_s1, %s5655_s16  ;;  %s6219_s16 = scalar_lea.hbm %s8600_s1, 6144 }
  0x1f   : > { %s6214_s25 = scalar_lea.hbm %s6472_s13, 3072  ;;  %p6220_p0 = scmp.lt.u32.totalorder %s6472_s13, %s8600_s1 }
  0x20   : > { %p6215_p10 = scmp.ne.s32.totalorder %s6472_s13, %s6214_s25  ;;  %p6221_p1 = scmp.lt.u32.totalorder %s6219_s16, %s6214_s25 }
  0x21   : > { %p6223_p3 = scmp.lt.u32.totalorder %s6214_s25, %s6472_s13 }
  0x22   : > { %p6217_p12 = pnand %p6216_p11, %p6215_p10  ;;  %p6222_p2 = por %p6221_p1, %p6220_p0 }
  0x24   : > { %p6218_p13 = pneg %p6217_p12  ;;  %p6224_p4 = por %p6223_p3, %p6222_p2 }
  0x26   : > { %p6225_p5 = pnand %p6224_p4, %p6218_p13 }
  0x28   : > { %6228 = shalt.err (!%p6225_p5)
}
  0x29   : > { %s6229_s30 = scalar_lea.vmem %s6478_s27, 3072  ;;  %s6326_s17 = smov [#allocation3]  }
  0x2a   : > { %p6230_p6 = scmp.ne.s32.totalorder %s6478_s27, %s6229_s30  ;;  %s6234_s26 = sshll.u32 %s6326_s17, 4  ;;  %s6235_s26 = int_to_ptr.vmem [resolvable:$false] %s6234_s26 }
  0x2b   : > { %s6236_s22 = scalar_lea.vmem %s6235_s26, 6144  ;;  %p6237_p12 = scmp.lt.s32.totalorder %s6478_s27, %s6235_s26 }
  0x2c   : > { %p6232_p8 = pnand %p6230_p6, %p6216_p11  ;;  %p6238_p0 = scmp.lt.s32.totalorder %s6236_s22, %s6229_s30 }
  0x2e   : > { %p6233_p10 = pneg %p6232_p8  ;;  %p6239_p1 = por %p6238_p0, %p6237_p12 }
  0x30   : > { %p6240_p2 = pnand %p6239_p1, %p6233_p10 }
  0x32   : > { %6243 = shalt.err (!%p6240_p2)
}
  0x33   : > { %s6327_s25 = smov 192   ;;  %s6328_s29 = smov 12  }
  0x34   : > { %5667 = dma.hbm_to_vmem [thread:$0]  (!%p6474_p9), %s6472_s13, 3072, %s6478_s27, %s6480_s24, %s6327_s25, %s6327_s25, %s6328_s29  }
  0x35   : > { %p5082_p11 = scmp.ge.s32.totalorder %s6324_s23, 1  ;;  %p574_p13 = scmp.lt.s32.totalorder %s6324_s23, 3 }
  0x37   : > { %p575_p3 = pnand %p5082_p11, %p574_p13 }
  0x39   : > { %578 = sbr.rel (%p575_p3) target bundleno = 4485 (0x1185), region = 80 }
  0x40   : > { %s580_s14 = sand.u32 1, %s6308_s19  }
  0x41   : > { %s5656_s15 = smul.u32 192, %s580_s14  ;;  %s581_s16 = scalar_lea.sflag [#allocation4], %s580_s14 }
  0x43   : > { %s6511_s30 = scalar_lea.vmem [#allocation3], %s5656_s15 }
  0x44   : > { %8602 = sst [smem:[#allocation15_spill]] %s6511_s30 }
  0x45   : > { %6295 = dma.done.wait (%p6459_p7), %s581_s16, 3072  }
  0x46   : > { %6297 = vsyncadd (%p6459_p7), %s581_s16, 4294964224  ;;  %p680_p4 = scmp.lt.s32.totalorder %s6316_s21, 1  ;;  %s8603_s3 = sld [smem:[#allocation45_spill]] }
  0x47   : > { %s8604_s2 = sld [smem:[#allocation44_spill]]  ;;  %s8605_s7 = sld [smem:[#allocation46_spill]] }
  0x48   : > { %s6519_s13 = scalar_select %p680_p4, %s6316_s21, 1 }
  0x49   : > { %p5090_p7 = scmp.ne.s32.totalorder %s6316_s21, 0 }
  0x4a   : > { %s5657_s24 = smul.u32 3, %s6519_s13  ;;  %s5239_s18 = sshll.u32 %s6519_s13, 6  ;;  %v727_v0 = vld [vmem:[%s8543_s0] sm:$0xff] (!%p5090_p7)  ;;  %v728_v1 = vld [vmem:[%s8543_s0 + $0x8] sm:$0xff] (!%p5090_p7)  ;;  %v729_v2 = vld [vmem:[%s8543_s0 + $0x10] sm:$0xff] (!%p5090_p7) }
  0x4b   : > { %s5240_s27 = sshll.u32 %s6519_s13, 8  ;;  %s5087_s26 = sshll.u32 %s6519_s13, 2  ;;  %735 = vst [vmem:[#allocation2] sm:$0xff] (!%p5090_p7), %v727_v0  ;;  %736 = vst [vmem:[#allocation2 + $0x8] sm:$0xff] (!%p5090_p7), %v728_v1  ;;  %v730_v3 = vld [vmem:[%s8543_s0 + $0x18] sm:$0xff] (!%p5090_p7)  ;;  %v731_v4 = vld [vmem:[%s8543_s0 + $0x20] sm:$0xff] (!%p5090_p7) }
  0x4c   : > { %s6526_s17 = scalar_lea.vmem %s8603_s3, %s5239_s18  ;;  %s6560_s1 = scalar_lea.vmem %s8552_s9, %s5240_s27  ;;  %737 = vst [vmem:[#allocation2 + $0x10] sm:$0xff] (!%p5090_p7), %v729_v2  ;;  %v732_v5 = vld [vmem:[%s8543_s0 + $0x28] sm:$0xff] (!%p5090_p7)  ;;  %738 = vst [vmem:[#allocation2 + $0x18] sm:$0xff] (!%p5090_p7), %v730_v3  ;;  %v733_v6 = vld [vmem:[%s8543_s0 + $0x30] sm:$0xff] (!%p5090_p7) }
  0x4d   : > { %s6535_s15 = scalar_lea.vmem %s8604_s2, %s5657_s24  ;;  %s6549_s3 = scalar_lea.vmem %s8605_s7, %s5240_s27  ;;  %739 = vst [vmem:[#allocation2 + $0x20] sm:$0xff] (!%p5090_p7), %v731_v4  ;;  %740 = vst [vmem:[#allocation2 + $0x28] sm:$0xff] (!%p5090_p7), %v732_v5  ;;  %v734_v7 = vld [vmem:[%s8543_s0 + $0x38] sm:$0xff] (!%p5090_p7) }
  0x4e   : > { %s6555_s24 = scalar_lea.vmem %s8551_s8, %s5087_s26  ;;  %s714_s23 = scalar_lea.vmem %s8553_s10, %s6519_s13  ;;  %741 = vst [vmem:[#allocation2 + $0x30] sm:$0xff] (!%p5090_p7), %v733_v6  ;;  %742 = vst [vmem:[#allocation2 + $0x38] sm:$0xff] (!%p5090_p7), %v734_v7 }
  0x4f   : > { %s717_s18 = scalar_lea.vmem %s8554_s11, %s6519_s13  ;;  %s720_s7 = scalar_lea.vmem %s8555_s12, %s6519_s13 }
  0x50   : > { %726 = sbr.rel (%p5090_p7) target bundleno = 87 (0x57), region = 88 }
  0x57 PF: > { %v6599_v8 = vld [vmem:[#allocation2] sm:$0xff]  ;;  %s8606_s29 = sld [smem:[#allocation15_spill]]  ;;  %v6601_v9 = vld [vmem:[#allocation2 + $0x8] sm:$0xff]  ;;  %v6609_v13 = vld [vmem:[#allocation2 + $0x10] sm:$0xff]  ;;  %v6329_v47 = vmov 0   ;;  %s8607_s20 = scalar_lea.vmem %s8548_s5, %s6519_s13  ;;  %vm1221_vm0 = vcmask 261120  }
  0x58   : > { %753 = vadd.xlane.f32.xlu0 %v6599_v8  ;;  %v778_v10 = vmul.f32 %v6599_v8, %v6599_v8  ;;  %v779_v11 = vmul.f32 %v6601_v9, %v6601_v9  ;;  %v6612_v14 = vld [vmem:[#allocation2 + $0x18] sm:$0xff]  ;;  %v780_v15 = vmul.f32 %v6609_v13, %v6609_v13  ;;  %v6620_v17 = vld [vmem:[#allocation2 + $0x20] sm:$0xff]  ;;  %v6623_v19 = vld [vmem:[#allocation2 + $0x28] sm:$0xff]  ;;  %1099 = vmatprep.mubr.bf16.mxu0 %v6329_v47  ;;  %s8608_s19 = scalar_lea.vmem %s8549_s6, %s6519_s13  ;;  %s6332_s28 = smov 64   ;;  %vm2782_vm2 = vcmask 523264  }
  0x59   : > { %v781_v16 = vmul.f32 %v6612_v14, %v6612_v14  ;;  %v782_v21 = vmul.f32 %v6620_v17, %v6620_v17  ;;  %v783_v23 = vmul.f32 %v6623_v19, %v6623_v19  ;;  %v6633_v24 = vld [vmem:[#allocation2 + $0x30] sm:$0xff]  ;;  %v6638_v28 = vld [vmem:[#allocation2 + $0x38] sm:$0xff]  ;;  %s6333_s25 = smov 32   ;;  %vm2791_vm3 = vcmask 785408   ;;  %s8609_s27 = scalar_lea.vmem %s8547_s4, %s6519_s13 }
  0x5a   : > { %786 = vadd.xlane.f32.xlu1 %v778_v10  ;;  %v784_v31 = vmul.f32 %v6633_v24, %v6633_v24  ;;  %v785_v33 = vmul.f32 %v6638_v28, %v6638_v28  ;;  %p5225_p9 = scmp.ne.s32.totalorder %s6316_s21, 1 }
  0x5c   : > { %755 = vadd.xlane.f32.xlu0 %v6601_v9 }
  0x5d   : > { %v5790_v12 = vld [vmem:[%s8606_s29 + $0x4] ss:$12 sps:$4 sm:$0xff]   ;;  %v5792_v18 = vld [vmem:[%s8606_s29] ss:$12 sps:$4 sm:$0xff]   ;;  %v5793_v20 = vld [vmem:[%s8606_s29 + $0x1c] ss:$12 sps:$4 sm:$0xff]  }
  0x5e   : > { %1067 = vmatprep.subr.bf16.mxu0 %v5790_v12  ;;  %788 = vadd.xlane.f32.xlu1 %v779_v11  ;;  %v5795_v22 = vld [vmem:[%s8606_s29 + $0x18] ss:$12 sps:$4 sm:$0xff]   ;;  %v5796_v25 = vld [vmem:[%s8606_s29 + $0x34] ss:$12 sps:$4 sm:$0xff]   ;;  %v5799_v27 = vld [vmem:[%s8606_s29 + $0x30] ss:$12 sps:$4 sm:$0xff]  }
  0x5f   : > { %1068 = vmatpush1.bf16.msra.mxu0 %v5792_v18  ;;  %v5798_v26 = vld [vmem:[%s8606_s29 + $0x8] ss:$12 sps:$4 sm:$0xff]   ;;  %v5800_v29 = vld [vmem:[%s8606_s29 + $0x4c] ss:$12 sps:$4 sm:$0xff]   ;;  %v5804_v34 = vld [vmem:[%s8606_s29 + $0x64] ss:$12 sps:$4 sm:$0xff]  }
  0x60   : > { %757 = vadd.xlane.f32.xlu0 %v6609_v13  ;;  %1069 = vmatprep.subr.bf16.mxu0 %v5793_v20  ;;  %v5802_v30 = vld [vmem:[%s8606_s29 + $0x20] ss:$12 sps:$4 sm:$0xff]   ;;  %v5803_v32 = vld [vmem:[%s8606_s29 + $0x48] ss:$12 sps:$4 sm:$0xff]   ;;  %v5806_v35 = vld [vmem:[%s8606_s29 + $0x38] ss:$12 sps:$4 sm:$0xff]  }
  0x61   : > { %5422 = vmatprep.subr.bf16.mxu1 %v5798_v26  ;;  %v5807_v36 = vld [vmem:[%s8606_s29 + $0x60] ss:$12 sps:$4 sm:$0xff]   ;;  %v5808_v37 = vld [vmem:[%s8606_s29 + $0x7c] ss:$12 sps:$4 sm:$0xff]   ;;  %v5811_v39 = vld [vmem:[%s8606_s29 + $0x78] ss:$12 sps:$4 sm:$0xff]  }
  0x62   : > { %759 = vadd.xlane.f32.xlu1 %v6612_v14  ;;  %5423 = vmatpush3.bf16.msra.mxu1 %v5798_v26  ;;  %v5810_v38 = vld [vmem:[%s8606_s29 + $0x50] ss:$12 sps:$4 sm:$0xff]   ;;  %v5812_v40 = vld [vmem:[%s8606_s29 + $0x94] ss:$12 sps:$4 sm:$0xff]   ;;  %v5816_v43 = vld [vmem:[%s8606_s29 + $0xac] ss:$12 sps:$4 sm:$0xff]  }
  0x63   : > { %1070 = vmatpush1.bf16.msra.mxu0 %v5795_v22  ;;  %5424 = vmatprep.subr.bf16.mxu1 %v5802_v30  ;;  %v5814_v41 = vld [vmem:[%s8606_s29 + $0x68] ss:$12 sps:$4 sm:$0xff]   ;;  %v5815_v42 = vld [vmem:[%s8606_s29 + $0x90] ss:$12 sps:$4 sm:$0xff]   ;;  %v5818_v44 = vld [vmem:[%s8606_s29 + $0x80] ss:$12 sps:$4 sm:$0xff]  }
  0x64   : > { %790 = vadd.xlane.f32.xlu0 %v780_v15  ;;  %1071 = vmatprep.subr.bf16.mxu0 %v5796_v25  ;;  %v5819_v45 = vld [vmem:[%s8606_s29 + $0xa8] ss:$12 sps:$4 sm:$0xff]   ;;  %v5820_v46 = vld [vmem:[%s8606_s29 + $0x98] ss:$12 sps:$4 sm:$0xff]   ;;  %v5821_v48 = vld [vmem:[%s8606_s29 + $0xb0] ss:$12 sps:$4 sm:$0xff]  }
  0x66   : > { %792 = vadd.xlane.f32.xlu1 %v781_v16  ;;  %5425 = vmatpush3.bf16.msra.mxu1 %v5802_v30 }
  0x67   : > { %1072 = vmatpush1.bf16.msra.mxu0 %v5799_v27  ;;  %5426 = vmatprep.subr.bf16.mxu1 %v5806_v35 }
  0x68   : > { %761 = vadd.xlane.f32.xlu0 %v6620_v17  ;;  %1073 = vmatprep.subr.bf16.mxu0 %v5800_v29 }
  0x6a   : > { %763 = vadd.xlane.f32.xlu1 %v6623_v19  ;;  %5427 = vmatpush3.bf16.msra.mxu1 %v5806_v35 }
  0x6b   : > { %1074 = vmatpush1.bf16.msra.mxu0 %v5803_v32  ;;  %5428 = vmatprep.subr.bf16.mxu1 %v5810_v38 }
  0x6c   : > { %794 = vadd.xlane.f32.xlu0 %v782_v21  ;;  %1075 = vmatprep.subr.bf16.mxu0 %v5804_v34 }
  0x6e   : > { %796 = vadd.xlane.f32.xlu1 %v783_v23  ;;  %5429 = vmatpush3.bf16.msra.mxu1 %v5810_v38 }
  0x6f   : > { %1076 = vmatpush1.bf16.msra.mxu0 %v5807_v36  ;;  %5430 = vmatprep.subr.bf16.mxu1 %v5814_v41 }
  0x70   : > { %765 = vadd.xlane.f32.xlu0 %v6633_v24  ;;  %1077 = vmatprep.subr.bf16.mxu0 %v5808_v37 }
  0x72   : > { %767 = vadd.xlane.f32.xlu1 %v6638_v28  ;;  %5431 = vmatpush3.bf16.msra.mxu1 %v5814_v41 }
  0x73   : > { %1078 = vmatpush1.bf16.msra.mxu0 %v5811_v39  ;;  %5432 = vmatprep.subr.bf16.mxu1 %v5818_v44 }
  0x74   : > { %798 = vadd.xlane.f32.xlu0 %v784_v31  ;;  %1079 = vmatprep.subr.bf16.mxu0 %v5812_v40  ;;  %v6674_v31 = vld [vmem:[%s8607_s20] ss:$0 sm:$0xff] }
  0x76   : > { %800 = vadd.xlane.f32.xlu1 %v785_v33  ;;  %5433 = vmatpush3.bf16.msra.mxu1 %v5818_v44 }
  0x77   : > { %1080 = vmatpush1.bf16.msra.mxu0 %v5815_v42  ;;  %5434 = vmatprep.subr.bf16.mxu1 %v5820_v46 }
  0x78   : > { %1081 = vmatprep.subr.bf16.mxu0 %v5816_v43  ;;  %v5092_v43 = vld [vmem:[%s8608_s19] ss:$0 sm:$0xff] }
  0x7a   : > { %5435 = vmatpush3.bf16.msra.mxu1 %v5820_v46 }
  0x7b   : > { %1082 = vmatpush1.bf16.msra.mxu0 %v5819_v45  ;;  %5436 = vmatprep.subr.bf16.mxu1 %v5821_v48 }
  0x7e   : > { %5437 = vmatpush3.bf16.msra.mxu1 %v5821_v48 }
  0xe5   : > { %v754_v49 = vpop.xlane.xlu0 %753 }
  0xe6   : > { %v770_v50 = vmul.f32 0.0078125, %v754_v49 }
  0xe7   : > { %v787_v51 = vpop.xlane.xlu1 %786 }
  0xe8   : > { %v810_v52 = vmul.f32 %v770_v50, %v770_v50  ;;  %v802_v53 = vmul.f32 0.0078125, %v787_v51  ;;  %v826_v20 = vsub.f32 %v6599_v8, %v770_v50 }
  0xe9   : > { %v756_v54 = vpop.xlane.xlu0 %755 }
  0xea   : > { %v818_v55 = vsub.f32 %v802_v53, %v810_v52  ;;  %v771_v56 = vmul.f32 0.0078125, %v756_v54 }
  0xeb   : > { %v789_v57 = vpop.xlane.xlu1 %788 }
  0xec   : > { %v834_v58 = vadd.f32 1e-05, %v818_v55  ;;  %v811_v59 = vmul.f32 %v771_v56, %v771_v56  ;;  %v803_v60 = vmul.f32 0.0078125, %v789_v57  ;;  %v827_v8 = vsub.f32 %v6601_v9, %v771_v56 }
  0xed   : > { %v758_v61 = vpop.xlane.xlu0 %757 }
  0xee   : > { %5910 = vrsqrt.f32 %v834_v58  ;;  %v819_v62 = vsub.f32 %v803_v60, %v811_v59  ;;  %v772_v63 = vmul.f32 0.0078125, %v758_v61 }
  0xef   : > { %v760_v0 = vpop.xlane.xlu1 %759 }
  0xf0   : > { %v835_v1 = vadd.f32 1e-05, %v819_v62  ;;  %v812_v2 = vmul.f32 %v772_v63, %v772_v63  ;;  %v773_v3 = vmul.f32 0.0078125, %v760_v0  ;;  %v828_v48 = vsub.f32 %v6609_v13, %v772_v63 }
  0xf1   : > { %v791_v4 = vpop.xlane.xlu0 %790 }
  0xf2   : > { %5912 = vrsqrt.f32 %v835_v1  ;;  %v804_v5 = vmul.f32 0.0078125, %v791_v4  ;;  %v813_v7 = vmul.f32 %v773_v3, %v773_v3  ;;  %v829_v55 = vsub.f32 %v6612_v14, %v773_v3 }
  0xf3   : > { %v793_v6 = vpop.xlane.xlu1 %792 }
  0xf4   : > { %v820_v10 = vsub.f32 %v804_v5, %v812_v2  ;;  %v805_v11 = vmul.f32 0.0078125, %v793_v6 }
  0xf5   : > { %v762_v12 = vpop.xlane.xlu0 %761 }
  0xf6   : > { %v836_v15 = vadd.f32 1e-05, %v820_v10  ;;  %v821_v16 = vsub.f32 %v805_v11, %v813_v7  ;;  %v6664_v18 = vmul.f32 0.0078125, %v762_v12 }
  0xf7   : > { %v764_v21 = vpop.xlane.xlu1 %763 }
  0xf8   : > { %v5911_v22 = vpop.eup %5910  ;;  %5914 = vrsqrt.f32 %v836_v15  ;;  %v837_v23 = vadd.f32 1e-05, %v821_v16  ;;  %v814_v25 = vmul.f32 %v6664_v18, %v6664_v18  ;;  %v775_v26 = vmul.f32 0.0078125, %v764_v21 }
  0xf9   : > { %v795_v27 = vpop.xlane.xlu0 %794  ;;  %v850_v29 = vmul.f32 %v5911_v22, %v826_v20  ;;  %v830_v3 = vsub.f32 %v6620_v17, %v6664_v18 }
  0xfa   : > { %5916 = vrsqrt.f32 %v837_v23  ;;  %v806_v30 = vmul.f32 0.0078125, %v795_v27  ;;  %v815_v32 = vmul.f32 %v775_v26, %v775_v26  ;;  %v831_v7 = vsub.f32 %v6623_v19, %v775_v26 }
  0xfb   : > { %v797_v33 = vpop.xlane.xlu1 %796  ;;  %v864_v39 = vmul.f32 %v6674_v31, %v850_v29 }
  0xfc   : > { %v5913_v34 = vpop.eup %5912  ;;  %v822_v35 = vsub.f32 %v806_v30, %v814_v25  ;;  %v807_v36 = vmul.f32 0.0078125, %v797_v33  ;;  %v924_v33 = vlaneseq }
  0xfd   : > { %v766_v37 = vpop.xlane.xlu0 %765  ;;  %v851_v38 = vmul.f32 %v5913_v34, %v827_v8  ;;  %v878_v51 = vadd.f32 %v5092_v43, %v864_v39 }
  0xfe   : > { %v838_v40 = vadd.f32 1e-05, %v822_v35  ;;  %v823_v41 = vsub.f32 %v807_v36, %v815_v32  ;;  %v776_v42 = vmul.f32 0.0078125, %v766_v37  ;;  %v922_v35 = vld [vmem:[%s6535_s15] sm:$0x7]  ;;  %s6331_s15 = smov 96  }
  0xff   : > { %v768_v44 = vpop.xlane.xlu1 %767  ;;  %v865_v9 = vmul.f32 %v6674_v31, %v851_v38 }
 0x100   : > { %5918 = vrsqrt.f32 %v838_v40  ;;  %v839_v45 = vadd.f32 1e-05, %v823_v41  ;;  %v816_v46 = vmul.f32 %v776_v42, %v776_v42  ;;  %v777_v49 = vmul.f32 0.0078125, %v768_v44 }
 0x101   : > { %v799_v50 = vpop.xlane.xlu0 %798  ;;  %v879_v52 = vadd.f32 %v5092_v43, %v865_v9  ;;  %v832_v17 = vsub.f32 %v6633_v24, %v776_v42 }
 0x102   : > { %v5915_v53 = vpop.eup %5914  ;;  %5920 = vrsqrt.f32 %v839_v45  ;;  %v808_v54 = vmul.f32 0.0078125, %v799_v50  ;;  %v817_v56 = vmul.f32 %v777_v49, %v777_v49  ;;  %v833_v23 = vsub.f32 %v6638_v28, %v777_v49 }
 0x103   : > { %v801_v57 = vpop.xlane.xlu1 %800  ;;  %v886_v58 = vpack.c.bf16 %v879_v52, %v878_v51  ;;  %v852_v59 = vmul.f32 %v5915_v53, %v828_v48  ;;  %v6701_v28 = vshrl.u32 %v924_v33, 7 }
 0x104   : > { %v5917_v60 = vpop.eup %5916  ;;  %v824_v61 = vsub.f32 %v808_v54, %v816_v46  ;;  %v809_v62 = vmul.f32 0.0078125, %v801_v57 }
 0x105   : > { %1100 = vmatmul.mubr.bf16.vlgmr.msra.gmra.mrb[0].mxu0 %v886_v58  ;;  %5438 = vmatprep.mubr.bf16.mxu1 %v886_v58  ;;  %v853_v0 = vmul.f32 %v5917_v60, %v829_v55  ;;  %v866_v13 = vmul.f32 %v6674_v31, %v852_v59  ;;  %v926_v34 = vsub.s32 0, %v6701_v28  ;;  %v930_v36 = vsub.s32 1, %v6701_v28 }
 0x106   : > { %v840_v63 = vadd.f32 1e-05, %v824_v61  ;;  %v825_v1 = vsub.f32 %v809_v62, %v817_v56  ;;  %1109 = vmatprep.mubr.bf16.mxu0 %v6329_v47  ;;  %v934_v44 = vsub.s32 2, %v6701_v28 }
 0x107   : > { %v867_v2 = vmul.f32 %v6674_v31, %v853_v0  ;;  %v880_v4 = vadd.f32 %v5092_v43, %v866_v13  ;;  %v6708_v37 = vrot.slane %v922_v35, %v926_v34 }
 0x108   : > { %5922 = vrsqrt.f32 %v840_v63  ;;  %v841_v14 = vadd.f32 1e-05, %v825_v1  ;;  %v935_v49 = vrot.slane %v922_v35, %v934_v44 }
 0x109   : > { %v881_v5 = vadd.f32 %v5092_v43, %v867_v2 }
 0x10a   : > { %v5919_v6 = vpop.eup %5918  ;;  %5924 = vrsqrt.f32 %v841_v14 }
 0x10b   : > { %v887_v10 = vpack.c.bf16 %v881_v5, %v880_v4  ;;  %v854_v11 = vmul.f32 %v5919_v6, %v830_v3 }
 0x10c   : > { %v5921_v12 = vpop.eup %5920 }
 0x10d   : > { %1110 = vmatmul.mubr.bf16.gmra.mrb[4].mxu0 %v887_v10  ;;  %5439 = vmatmul.mubr.bf16.vlgmr.msra.gmra.mrb[0].mxu1 %v887_v10  ;;  %v855_v15 = vmul.f32 %v5921_v12, %v831_v7  ;;  %v868_v16 = vmul.f32 %v6674_v31, %v854_v11 }
 0x10e   : > { %1119 = vmatprep.mubr.bf16.mxu0 %v6329_v47 }
 0x10f   : > { %v869_v20 = vmul.f32 %v6674_v31, %v855_v15  ;;  %v882_v18 = vadd.f32 %v5092_v43, %v868_v16 }
 0x111   : > { %v883_v21 = vadd.f32 %v5092_v43, %v869_v20 }
 0x112   : > { %v5923_v22 = vpop.eup %5922 }
 0x113   : > { %v888_v19 = vpack.c.bf16 %v883_v21, %v882_v18  ;;  %v856_v25 = vmul.f32 %v5923_v22, %v832_v17 }
 0x114   : > { %v5925_v26 = vpop.eup %5924 }
 0x115   : > { %1120 = vmatmul.mubr.bf16.gmra.mrb[8].mxu0 %v888_v19  ;;  %5442 = vmatprep.mubr.bf16.mxu1 %v888_v19  ;;  %v857_v27 = vmul.f32 %v5925_v26, %v833_v23  ;;  %v870_v29 = vmul.f32 %v6674_v31, %v856_v25 }
 0x116   : > { %1129 = vmatprep.mubr.bf16.mxu0 %v6329_v47 }
 0x117   : > { %v871_v30 = vmul.f32 %v6674_v31, %v857_v27  ;;  %v884_v8 = vadd.f32 %v5092_v43, %v870_v29  ;;  %v6712_v31 = vrot.slane %v922_v35, %v930_v36 }
 0x119   : > { %v885_v24 = vadd.f32 %v5092_v43, %v871_v30 }
 0x11b   : > { %v889_v32 = vpack.c.bf16 %v885_v24, %v884_v8 }
 0x11d   : > { %1130 = vmatmul.mubr.bf16.gmra.mrb[12].mxu0 %v889_v32  ;;  %5443 = vmatmul.mubr.bf16.gmra.mrb[4].mxu1 %v889_v32 }
 0x1d8   : > { %v1101_v38 = vpop.f32.mrb[0].mxu0 }
 0x1d9   : > { %v1103_v39 = vpop.f32.mrb[1].mxu0  ;;  %v1102_v41 = vadd.f32 %v1101_v38, %v6708_v37 }
 0x1da   : > { %v1105_v40 = vpop.f32.mrb[2].mxu0  ;;  %v1104_v9 = vadd.f32 %v1103_v39, %v6712_v31 }
 0x1db   : > { %v1106_v42 = vadd.f32 %v1105_v40, %v6708_v37  ;;  %v1107_v43 = vpop.f32.mrb[3].mxu0 }
 0x1dc   : > { %v1108_v45 = vadd.f32 %v1107_v43, %v6712_v31 }
 0x1dd   : > { %v6719_v46 = vpack.c.bf16 %v1106_v42, %v1102_v41 }
 0x1de   : > { %v6721_v48 = vpack.c.bf16 %v1108_v45, %v1104_v9 }
 0x1df   : > { %5450 = vmatprep.mubr.msk.bf16.mxu1 %vm1221_vm0, %v6719_v46 }
 0x1e0   : > { %v1111_v50 = vpop.f32.mrb[4].mxu0  ;;  %v5440_v51 = vpop.f32.mrb[0].mxu1  ;;  %5638 = vmatprep.subr.msk.bf16.mxu1 %vm1221_vm0, %v6721_v48  ;;  %v1229_v52 = vsel %vm1221_vm0, %v6721_v48, 0 }
 0x1e1   : > { %v1113_v53 = vpop.f32.mrb[5].mxu0  ;;  %v1174_v54 = vpop.f32.mrb[1].mxu1  ;;  %5447 = vmatpush3.bf16.xpose.msra.mxu1 %v1229_v52  ;;  %v1112_v57 = vadd.f32 %v1111_v50, %v6708_v37  ;;  %v1183_v58 = vadd.f32 %v5440_v51, %v935_v49  ;;  %v6330_v50 = vmov -1e+09  }
 0x1e2   : > { %v1115_v55 = vpop.f32.mrb[6].mxu0  ;;  %v5441_v56 = vpop.f32.mrb[2].mxu1  ;;  %v1114_v0 = vadd.f32 %v1113_v53, %v6712_v31  ;;  %v1175_v13 = vadd.f32 %v1174_v54, %v935_v49 }
 0x1e3   : > { %v1116_v59 = vadd.f32 %v1115_v55, %v6708_v37  ;;  %v1186_v60 = vadd.f32 %v5441_v56, %v935_v49  ;;  %v1117_v61 = vpop.f32.mrb[7].mxu0  ;;  %v1177_v62 = vpop.f32.mrb[3].mxu1 }
 0x1e4   : > { %v1118_v63 = vadd.f32 %v1117_v61, %v6712_v31  ;;  %v1178_v1 = vadd.f32 %v1177_v62, %v935_v49 }
 0x1e5   : > { %v6735_v2 = vpack.c.bf16 %v1116_v59, %v1112_v57  ;;  %v6737_v14 = vpack.c.bf16 %v1186_v60, %v1183_v58 }
 0x1e6   : > { %v6739_v3 = vpack.c.bf16 %v1118_v63, %v1114_v0  ;;  %v6741_v4 = vpack.c.bf16 %v1178_v1, %v1175_v13 }
 0x1e8   : > { %v1121_v5 = vpop.f32.mrb[8].mxu0  ;;  %5639 = vmatprep.subr.msk.bf16.mxu1 %vm1221_vm0, %v6739_v3  ;;  %v1232_v6 = vsel %vm1221_vm0, %v6739_v3, 0 }
 0x1e9   : > { %v1123_v7 = vpop.f32.mrb[9].mxu0  ;;  %5449 = vmatpush3.bf16.xpose.msra.mxu1 %v1232_v6  ;;  %v1122_v11 = vadd.f32 %v1121_v5, %v6708_v37 }
 0x1ea   : > { %v1125_v10 = vpop.f32.mrb[10].mxu0  ;;  %v1124_v16 = vadd.f32 %v1123_v7, %v6712_v31 }
 0x1eb   : > { %v1126_v12 = vadd.f32 %v1125_v10, %v6708_v37  ;;  %v1127_v15 = vpop.f32.mrb[11].mxu0 }
 0x1ec   : > { %v1128_v20 = vadd.f32 %v1127_v15, %v6712_v31 }
 0x1ed   : > { %v6751_v17 = vpack.c.bf16 %v1126_v12, %v1122_v11 }
 0x1ee   : > { %v6753_v18 = vpack.c.bf16 %v1128_v20, %v1124_v16 }
 0x1f0   : > { %v1131_v21 = vpop.f32.mrb[12].mxu0  ;;  %v5444_v22 = vpop.f32.mrb[4].mxu1  ;;  %5451 = vmatmul.mubr.msk.bf16.vlgmr.msra.gmra.mrb[8].mxu1 %vm1221_vm0, %v6735_v2  ;;  %5640 = vmatprep.subr.msk.bf16.mxu1 %vm1221_vm0, %v6753_v18  ;;  %v1290_v23 = vsel %vm1221_vm0, %v6753_v18, 0 }
 0x1f1   : > { %v1199_v19 = vadd.f32 %v5444_v22, %v935_v49  ;;  %v1133_v25 = vpop.f32.mrb[13].mxu0  ;;  %v1190_v26 = vpop.f32.mrb[5].mxu1  ;;  %5455 = vmatpush3.bf16.xpose.msra.mxu1 %v1290_v23  ;;  %5458 = vmatprep.mubr.msk.bf16.mxu1 %vm1221_vm0, %v6751_v17  ;;  %v1132_v30 = vadd.f32 %v1131_v21, %v6708_v37 }
 0x1f2   : > { %v1135_v27 = vpop.f32.mrb[14].mxu0  ;;  %v5445_v29 = vpop.f32.mrb[6].mxu1  ;;  %v1134_v38 = vadd.f32 %v1133_v25, %v6712_v31  ;;  %v1191_v39 = vadd.f32 %v1190_v26, %v935_v49 }
 0x1f3   : > { %v1136_v8 = vadd.f32 %v1135_v27, %v6708_v37  ;;  %v1202_v24 = vadd.f32 %v5445_v29, %v935_v49  ;;  %v1137_v32 = vpop.f32.mrb[15].mxu0  ;;  %v1193_v35 = vpop.f32.mrb[7].mxu1 }
 0x1f4   : > { %v1138_v40 = vadd.f32 %v1137_v32, %v6712_v31  ;;  %v1194_v41 = vadd.f32 %v1193_v35, %v935_v49  ;;  %v1206_v31 = vand.u32 127, %v924_v33 }
 0x1f5   : > { %v6767_v42 = vpack.c.bf16 %v1136_v8, %v1132_v30  ;;  %v6769_v43 = vpack.c.bf16 %v1202_v24, %v1199_v19 }
 0x1f6   : > { %v6771_v9 = vpack.c.bf16 %v1138_v40, %v1134_v38  ;;  %v6773_v45 = vpack.c.bf16 %v1194_v41, %v1191_v39  ;;  %vm1207_vm1 = vcmp.lt.s32.totalorder %v1206_v31, 17 }
 0x1f7   : > { %v6787_v51 = vsel %vm1207_vm1, 0.0, %v6330_v50 }
 0x1f8   : > { %5641 = vmatprep.subr.msk.bf16.mxu1 %vm1221_vm0, %v6771_v9  ;;  %v1293_v37 = vsel %vm1221_vm0, %v6771_v9, 0 }
 0x1f9   : > { %5457 = vmatpush3.bf16.xpose.msra.mxu1 %v1293_v37 }
 0x1fa   : > { %5462 = vmatprep.subr.bf16.mxu1 %v6741_v4 }
 0x200   : > { %5459 = vmatmul.mubr.msk.bf16.vlgmr.msra.gmra.mrb[12].mxu1 %vm1221_vm0, %v6767_v42 }
 0x201   : > { %5463 = vmatpush3.bf16.msra.mxu1 %v6741_v4 }
 0x202   : > { %5464 = vmatprep.subr.bf16.mxu1 %v6737_v14 }
 0x205   : > { %5465 = vmatpush3.bf16.msra.mxu1 %v6737_v14 }
 0x206   : > { %5470 = vmatprep.subr.bf16.mxu1 %v6773_v45 }
 0x2c3   : > { %v5452_v49 = vpop.f32.mrb[8].mxu1 }
 0x2c4   : > { %v1268_v52 = vpop.f32.mrb[9].mxu1  ;;  %v1346_v53 = vmul.f32 0.17677669, %v5452_v49 }
 0x2c5   : > { %v1344_v54 = vmul.f32 0.17677669, %v1268_v52  ;;  %v5453_v55 = vpop.f32.mrb[10].mxu1 }
 0x2c6   : > { %v1271_v56 = vpop.f32.mrb[11].mxu1  ;;  %v1347_v57 = vmul.f32 0.17677669, %v5453_v55  ;;  %v1354_v33 = vadd.f32 %v1346_v53, %v6787_v51 }
 0x2c7   : > { %v1345_v58 = vmul.f32 0.17677669, %v1271_v56  ;;  %v1352_v59 = vadd.f32 %v1344_v54, %v6787_v51 }
 0x2c8   : > { %v1355_v0 = vadd.f32 %v1347_v57, %v6787_v51  ;;  %v1366_v13 = vsel %vm1221_vm0, %v1354_v33, -inf }
 0x2c9   : > { %v1360_v60 = vsel %vm1221_vm0, %v1352_v59, -inf  ;;  %v1353_v61 = vadd.f32 %v1345_v58, %v6787_v51 }
 0x2ca   : > { %1361 = vmax.xlane.f32.xlu0 %v1360_v60  ;;  %v1369_v63 = vsel %vm1221_vm0, %v1355_v0, -inf }
 0x2cb   : > { %v1363_v62 = vsel %vm1221_vm0, %v1353_v61, -inf }
 0x2cc   : > { %1364 = vmax.xlane.f32.xlu1 %v1363_v62 }
 0x2ce   : > { %1367 = vmax.xlane.f32.xlu0 %v1366_v13 }
 0x2d0   : > { %1370 = vmax.xlane.f32.xlu1 %v1369_v63 }
 0x2d3   : > { %v5460_v1 = vpop.f32.mrb[12].mxu1 }
 0x2d4   : > { %v1329_v5 = vpop.f32.mrb[13].mxu1  ;;  %v1350_v6 = vmul.f32 0.17677669, %v5460_v1 }
 0x2d5   : > { %v1348_v7 = vmul.f32 0.17677669, %v1329_v5  ;;  %v5461_v10 = vpop.f32.mrb[14].mxu1 }
 0x2d6   : > { %v1332_v11 = vpop.f32.mrb[15].mxu1  ;;  %v1351_v12 = vmul.f32 0.17677669, %v5461_v10  ;;  %v1358_v22 = vadd.f32 %v1350_v6, %v6787_v51 }
 0x2d7   : > { %v1349_v15 = vmul.f32 0.17677669, %v1332_v11  ;;  %v6798_v16 = vadd.f32 %v1348_v7, %v6787_v51 }
 0x2d8   : > { %v1359_v19 = vadd.f32 %v1351_v12, %v6787_v51  ;;  %v1378_v25 = vsel %vm1221_vm0, %v1358_v22, -inf }
 0x2d9   : > { %v1372_v20 = vsel %vm1221_vm0, %v6798_v16, -inf  ;;  %v1357_v21 = vadd.f32 %v1349_v15, %v6787_v51 }
 0x2da   : > { %1373 = vmax.xlane.f32.xlu0 %v1372_v20  ;;  %v1381_v26 = vsel %vm1221_vm0, %v1359_v19, -inf }
 0x2db   : > { %v1375_v23 = vsel %vm1221_vm0, %v1357_v21, -inf }
 0x2dc   : > { %1376 = vmax.xlane.f32.xlu1 %v1375_v23 }
 0x2de   : > { %1379 = vmax.xlane.f32.xlu0 %v1378_v25 }
 0x2e0   : > { %1382 = vmax.xlane.f32.xlu1 %v1381_v26 }
 0x2f1   : > { %1572 = vrot.lane.b32.xlu1 %v6739_v3, %s6331_s15 }
 0x2f5   : > { %1564 = vrot.lane.b32.xlu1 %v6719_v46, %s6331_s15 }
 0x357   : > { %v1362_v27 = vpop.xlane.xlu0 %1361 }
 0x358   : > { %v1384_v29 = vsub.f32 %v1352_v59, %v1362_v27 }
 0x359   : > { %v1365_v30 = vpop.xlane.xlu1 %1364 }
 0x35a   : > { %v1385_v24 = vsub.f32 %v1353_v61, %v1365_v30  ;;  %v1392_v35 = vmul.f32 1.442695, %v1384_v29 }
 0x35b   : > { %v1368_v8 = vpop.xlane.xlu0 %1367 }
 0x35c   : > { %v1386_v32 = vsub.f32 %v1354_v33, %v1368_v8  ;;  %v1394_v41 = vmul.f32 1.442695, %v1385_v24 }
 0x35d   : > { %v1371_v38 = vpop.xlane.xlu1 %1370 }
 0x35e   : > { %v1396_v39 = vmul.f32 1.442695, %v1386_v32  ;;  %v1387_v40 = vsub.f32 %v1355_v0, %v1371_v38 }
 0x360   : > { %5926 = vpow2.f32 %v1396_v39  ;;  %v1398_v37 = vmul.f32 1.442695, %v1387_v40 }
 0x361   : > { %5928 = vpow2.f32 %v1392_v35 }
 0x362   : > { %5930 = vpow2.f32 %v1398_v37 }
 0x363   : > { %5932 = vpow2.f32 %v1394_v41 }
 0x367   : > { %v1374_v6 = vpop.xlane.xlu0 %1373 }
 0x368   : > { %v1388_v11 = vsub.f32 %v6798_v16, %v1374_v6 }
 0x369   : > { %v1377_v31 = vpop.xlane.xlu1 %1376 }
 0x36a   : > { %v6812_v49 = vpop.eup %5926  ;;  %v1389_v54 = vsub.f32 %v1357_v21, %v1377_v31  ;;  %v1400_v15 = vmul.f32 1.442695, %v1388_v11 }
 0x36b   : > { %v6814_v50 = vpop.eup %5928  ;;  %v1414_v52 = vsel %vm1221_vm0, %v6812_v49, 0.0  ;;  %v1380_v7 = vpop.xlane.xlu0 %1379 }
 0x36c   : > { %v5931_v53 = vpop.eup %5930  ;;  %1415 = vadd.xlane.f32.xlu0 %v1414_v52  ;;  %v1408_v59 = vsel %vm1221_vm0, %v6814_v50, 0.0  ;;  %v1402_v60 = vmul.f32 1.442695, %v1389_v54  ;;  %v1390_v10 = vsub.f32 %v1358_v22, %v1380_v7 }
 0x36d   : > { %v1383_v55 = vpop.xlane.xlu1 %1382  ;;  %v1417_v56 = vsel %vm1221_vm0, %v5931_v53, 0.0  ;;  %v5933_v57 = vpop.eup %5932 }
 0x36e   : > { %v1391_v58 = vsub.f32 %v1359_v19, %v1383_v55  ;;  %1418 = vadd.xlane.f32.xlu1 %v1417_v56  ;;  %v1411_v62 = vsel %vm1221_vm0, %v5933_v57, 0.0  ;;  %v1404_v12 = vmul.f32 1.442695, %v1390_v10 }
 0x370   : > { %v1406_v61 = vmul.f32 1.442695, %v1391_v58  ;;  %1409 = vadd.xlane.f32.xlu0 %v1408_v59 }
 0x371   : > { %v1573_v33 = vpop.permute.xlu1 %1572 }
 0x372   : > { %5934 = vpow2.f32 %v1406_v61  ;;  %1412 = vadd.xlane.f32.xlu1 %v1411_v62  ;;  %v1584_v38 = vsel %vm1221_vm0, %v1573_v33, 0 }
 0x373   : > { %5936 = vpow2.f32 %v1402_v60 }
 0x374   : > { %5938 = vpow2.f32 %v1404_v12 }
 0x375   : > { %v1565_v0 = vpop.permute.xlu1 %1564  ;;  %5940 = vpow2.f32 %v1400_v15 }
 0x376   : > { %5482 = vmatprep.mubr.msk.bf16.mxu0 %vm1221_vm0, %v1565_v0 }
 0x37c   : > { %v6823_v13 = vpop.eup %5934 }
 0x37d   : > { %v1429_v63 = vsel %vm1221_vm0, %v6823_v13, 0.0  ;;  %v6827_v1 = vpop.eup %5936 }
 0x37e   : > { %1430 = vadd.xlane.f32.xlu1 %v1429_v63  ;;  %v1423_v5 = vsel %vm1221_vm0, %v6827_v1, 0.0  ;;  %v5939_v20 = vpop.eup %5938 }
 0x37f   : > { %v1426_v21 = vsel %vm1221_vm0, %v5939_v20, 0.0  ;;  %v5941_v23 = vpop.eup %5940 }
 0x380   : > { %v1420_v16 = vsel %vm1221_vm0, %v5941_v23, 0.0 }
 0x382   : > { %1424 = vadd.xlane.f32.xlu1 %v1423_v5 }
 0x386   : > { %1570 = vrot.lane.b32.xlu0 %v6721_v48, %s6331_s15 }
 0x393   : > { %1566 = vrot.lane.b32.xlu1 %v6735_v2, %s6331_s15 }
 0x397   : > { %1645 = vrot.lane.b32.xlu1 %v6771_v9, %s6331_s15 }
 0x39b   : > { %1639 = vrot.lane.b32.xlu1 %v6767_v42, %s6331_s15 }
 0x3a5   : > { %1427 = vadd.xlane.f32.xlu0 %v1426_v21 }
 0x3a9   : > { %1421 = vadd.xlane.f32.xlu0 %v1420_v16 }
 0x3bf   : > { %1643 = vrot.lane.b32.xlu0 %v6753_v18, %s6331_s15 }
 0x3c3   : > { %1637 = vrot.lane.b32.xlu0 %v6751_v17, %s6331_s15 }
 0x3f9   : > { %v1416_v22 = vpop.xlane.xlu0 %1415 }
 0x3fb   : > { %v1419_v19 = vpop.xlane.xlu1 %1418 }
 0x3fc   : > { %5942 = vrcp.f32 %v1419_v19 }
 0x3fd   : > { %v1410_v25 = vpop.xlane.xlu0 %1409 }
 0x3fe   : > { %5944 = vrcp.f32 %v1410_v25 }
 0x3ff   : > { %5946 = vrcp.f32 %v1416_v22  ;;  %v1413_v26 = vpop.xlane.xlu1 %1412 }
 0x400   : > { %5948 = vrcp.f32 %v1413_v26 }
 0x401   : > { %v1571_v27 = vpop.permute.xlu0 %1570 }
 0x402   : > { %5642 = vmatprep.subr.msk.bf16.mxu0 %vm1221_vm0, %v1571_v27  ;;  %v1581_v29 = vsel %vm1221_vm0, %v1571_v27, 0 }
 0x403   : > { %5479 = vmatpush3.bf16.xpose.msra.mxu0 %v1581_v29 }
 0x404   : > { %5643 = vmatprep.subr.msk.bf16.mxu0 %vm1221_vm0, %v1573_v33 }
 0x406   : > { %v5943_v30 = vpop.eup %5942 }
 0x407   : > { %v1439_v35 = vmul.f32 %v5943_v30, %v5931_v53 }
 0x408   : > { %v5945_v8 = vpop.eup %5944 }
 0x409   : > { %v5947_v24 = vpop.eup %5946  ;;  %v1433_v40 = vmul.f32 %v5945_v8, %v6814_v50 }
 0x40a   : > { %v5949_v32 = vpop.eup %5948  ;;  %v1437_v37 = vmul.f32 %v5947_v24, %v6812_v49 }
 0x40b   : > { %5481 = vmatpush3.bf16.xpose.msra.mxu0 %v1584_v38  ;;  %v1431_v39 = vpop.xlane.xlu1 %1430  ;;  %v1435_v41 = vmul.f32 %v5949_v32, %v5933_v57 }
 0x40c   : > { %v1449_v52 = vpack.c.bf16 %v1439_v35, %v1437_v37 }
 0x40d   : > { %v1448_v31 = vpack.c.bf16 %v1435_v41, %v1433_v40 }
 0x40f   : > { %5466 = vmatprep.mubr.msk.bf16.mxu1 %vm1221_vm0, %v1448_v31  ;;  %v1425_v54 = vpop.xlane.xlu1 %1424 }
 0x410   : > { %5467 = vmatmul.mubr.msk.bf16.vlgmr.msra.gmra.mrb[16].mxu1 %vm1221_vm0, %v1449_v52 }
 0x411   : > { %5471 = vmatpush3.bf16.msra.mxu1 %v6773_v45 }
 0x412   : > { %5472 = vmatprep.subr.bf16.mxu1 %v6769_v43 }
 0x413   : > { %v1567_v53 = vpop.permute.xlu1 %1566 }
 0x414   : > { %5483 = vmatmul.mubr.msk.bf16.vlgmr.msra.gmra.mrb[16].mxu0 %vm1221_vm0, %v1567_v53 }
 0x415   : > { %5473 = vmatpush3.bf16.msra.mxu1 %v6769_v43 }
 0x417   : > { %v1646_v7 = vpop.permute.xlu1 %1645 }
 0x418   : > { %v1657_v10 = vsel %vm1221_vm0, %v1646_v7, 0 }
 0x432   : > { %v1428_v50 = vpop.xlane.xlu0 %1427 }
 0x433   : > { %5950 = vrcp.f32 %v1428_v50 }
 0x434   : > { %5952 = vrcp.f32 %v1425_v54 }
 0x435   : > { %5954 = vrcp.f32 %v1431_v39 }
 0x436   : > { %v1422_v49 = vpop.xlane.xlu0 %1421 }
 0x437   : > { %5956 = vrcp.f32 %v1422_v49 }
 0x43a   : > { %v1644_v55 = vpop.permute.xlu0 %1643 }
 0x43b   : > { %5644 = vmatprep.subr.msk.bf16.mxu1 %vm1221_vm0, %v1644_v55  ;;  %v1654_v6 = vsel %vm1221_vm0, %v1644_v55, 0 }
 0x43d   : > { %v5951_v56 = vpop.eup %5950 }
 0x43e   : > { %v5953_v57 = vpop.eup %5952  ;;  %v1445_v60 = vmul.f32 %v5951_v56, %v5939_v20  ;;  %v1638_v5 = vpop.permute.xlu0 %1637 }
 0x43f   : > { %v5955_v58 = vpop.eup %5954  ;;  %v1443_v33 = vmul.f32 %v5953_v57, %v6827_v1  ;;  %v1640_v1 = vpop.permute.xlu1 %1639 }
 0x440   : > { %v1447_v62 = vmul.f32 %v5955_v58, %v6823_v13 }
 0x441   : > { %v5957_v59 = vpop.eup %5956 }
 0x442   : > { %v1441_v61 = vmul.f32 %v5957_v59, %v5941_v23  ;;  %v1451_v63 = vpack.c.bf16 %v1447_v62, %v1445_v60 }
 0x444   : > { %v1450_v0 = vpack.c.bf16 %v1443_v33, %v1441_v61 }
 0x446   : > { %5474 = vmatprep.mubr.msk.bf16.mxu1 %vm1221_vm0, %v1450_v0 }
 0x447   : > { %5475 = vmatmul.mubr.msk.bf16.vlgmr.msra.gmra.mrb[20].mxu1 %vm1221_vm0, %v1451_v63 }
 0x448   : > { %5487 = vmatpush3.bf16.xpose.msra.mxu1 %v1654_v6  ;;  %5490 = vmatprep.mubr.msk.bf16.mxu1 %vm1221_vm0, %v1638_v5 }
 0x449   : > { %5645 = vmatprep.subr.msk.bf16.mxu1 %vm1221_vm0, %v1646_v7 }
 0x450   : > { %5489 = vmatpush3.bf16.xpose.msra.mxu1 %v1657_v10 }
 0x457   : > { %5491 = vmatmul.mubr.msk.bf16.vlgmr.msra.gmra.mrb[24].mxu1 %vm1221_vm0, %v1640_v1 }
 0x4e3   : > { %v6868_v13 = vpop.f32.mrb[16].mxu1 }
 0x4e4   : > { %v6870_v11 = vpop.f32.mrb[17].mxu1 }
 0x4e5   : > { %v6872_v12 = vpop.f32.mrb[18].mxu1 }
 0x4e6   : > { %v6874_v15 = vpop.f32.mrb[19].mxu1 }
 0x4e7   : > { %v5484_v20 = vpop.f32.mrb[16].mxu0 }
 0x4e8   : > { %v1620_v21 = vpop.f32.mrb[17].mxu0  ;;  %v1710_v23 = vmul.f32 0.17677669, %v5484_v20 }
 0x4e9   : > { %v1708_v16 = vmul.f32 0.17677669, %v1620_v21  ;;  %v5485_v22 = vpop.f32.mrb[18].mxu0 }
 0x4ea   : > { %v1623_v19 = vpop.f32.mrb[19].mxu0  ;;  %v1711_v27 = vmul.f32 0.17677669, %v5485_v22  ;;  %v1718_v8 = vadd.f32 %v1710_v23, %v6787_v51 }
 0x4eb   : > { %v1709_v25 = vmul.f32 0.17677669, %v1623_v19  ;;  %v1716_v26 = vadd.f32 %v1708_v16, %v6787_v51 }
 0x4ec   : > { %v1730_v32 = vsel %vm1221_vm0, %v1718_v8, -inf  ;;  %v1719_v35 = vadd.f32 %v1711_v27, %v6787_v51 }
 0x4ed   : > { %v1724_v29 = vsel %vm1221_vm0, %v1716_v26, -inf  ;;  %v1717_v30 = vadd.f32 %v1709_v25, %v6787_v51 }
 0x4ee   : > { %1725 = vmax.xlane.f32.xlu0 %v1724_v29  ;;  %v1733_v38 = vsel %vm1221_vm0, %v1719_v35, -inf }
 0x4ef   : > { %v1727_v24 = vsel %vm1221_vm0, %v1717_v30, -inf }
 0x4f0   : > { %1728 = vmax.xlane.f32.xlu1 %v1727_v24 }
 0x4f2   : > { %1731 = vmax.xlane.f32.xlu0 %v1730_v32 }
 0x4f6   : > { %1734 = vmax.xlane.f32.xlu0 %v1733_v38 }
 0x51a   : > { %v6884_v39 = vpop.f32.mrb[20].mxu1 }
 0x51b   : > { %v6886_v40 = vpop.f32.mrb[21].mxu1 }
 0x51c   : > { %v6888_v41 = vpop.f32.mrb[22].mxu1 }
 0x51d   : > { %v6890_v37 = vpop.f32.mrb[23].mxu1 }
 0x52a   : > { %v5492_v31 = vpop.f32.mrb[24].mxu1 }
 0x52b   : > { %v1693_v52 = vpop.f32.mrb[25].mxu1  ;;  %v1714_v54 = vmul.f32 0.17677669, %v5492_v31 }
 0x52c   : > { %v1712_v53 = vmul.f32 0.17677669, %v1693_v52  ;;  %v5493_v50 = vpop.f32.mrb[26].mxu1 }
 0x52d   : > { %v1696_v49 = vpop.f32.mrb[27].mxu1  ;;  %v1715_v55 = vmul.f32 0.17677669, %v5493_v50  ;;  %v1722_v60 = vadd.f32 %v1714_v54, %v6787_v51 }
 0x52e   : > { %v1713_v56 = vmul.f32 0.17677669, %v1696_v49  ;;  %v1720_v57 = vadd.f32 %v1712_v53, %v6787_v51 }
 0x52f   : > { %v1723_v33 = vadd.f32 %v1715_v55, %v6787_v51  ;;  %v1742_v62 = vsel %vm1221_vm0, %v1722_v60, -inf }
 0x530   : > { %v1736_v58 = vsel %vm1221_vm0, %v1720_v57, -inf  ;;  %v1721_v59 = vadd.f32 %v1713_v56, %v6787_v51 }
 0x531   : > { %1737 = vmax.xlane.f32.xlu0 %v1736_v58  ;;  %v1745_v0 = vsel %vm1221_vm0, %v1723_v33, -inf }
 0x532   : > { %v1739_v61 = vsel %vm1221_vm0, %v1721_v59, -inf }
 0x533   : > { %1740 = vmax.xlane.f32.xlu1 %v1739_v61 }
 0x535   : > { %1743 = vmax.xlane.f32.xlu0 %v1742_v62 }
 0x537   : > { %1746 = vmax.xlane.f32.xlu1 %v1745_v0 }
 0x57b   : > { %v1726_v63 = vpop.xlane.xlu0 %1725 }
 0x57c   : > { %v1748_v5 = vsub.f32 %v1716_v26, %v1726_v63 }
 0x57d   : > { %v1729_v6 = vpop.xlane.xlu1 %1728 }
 0x57e   : > { %v1756_v7 = vmul.f32 1.442695, %v1748_v5  ;;  %v1749_v10 = vsub.f32 %v1717_v30, %v1729_v6 }
 0x57f   : > { %v1732_v1 = vpop.xlane.xlu0 %1731 }
 0x580   : > { %5958 = vpow2.f32 %v1756_v7  ;;  %v1758_v20 = vmul.f32 1.442695, %v1749_v10  ;;  %v1750_v21 = vsub.f32 %v1718_v8, %v1732_v1 }
 0x582   : > { %5960 = vpow2.f32 %v1758_v20  ;;  %v1760_v23 = vmul.f32 1.442695, %v1750_v21 }
 0x583   : > { %v1735_v16 = vpop.xlane.xlu0 %1734 }
 0x584   : > { %5962 = vpow2.f32 %v1760_v23  ;;  %v1751_v22 = vsub.f32 %v1719_v35, %v1735_v16 }
 0x586   : > { %v1762_v19 = vmul.f32 1.442695, %v1751_v22 }
 0x588   : > { %5964 = vpow2.f32 %v1762_v19 }
 0x58a   : > { %v6900_v25 = vpop.eup %5958 }
 0x58b   : > { %v1772_v27 = vsel %vm1221_vm0, %v6900_v25, 0.0 }
 0x58c   : > { %v6904_v26 = vpop.eup %5960  ;;  %1773 = vadd.xlane.f32.xlu0 %v1772_v27 }
 0x58d   : > { %v1775_v29 = vsel %vm1221_vm0, %v6904_v26, 0.0 }
 0x58e   : > { %v6908_v30 = vpop.eup %5962  ;;  %1776 = vadd.xlane.f32.xlu1 %v1775_v29 }
 0x58f   : > { %v1778_v8 = vsel %vm1221_vm0, %v6908_v30, 0.0 }
 0x590   : > { %1779 = vadd.xlane.f32.xlu0 %v1778_v8 }
 0x592   : > { %v6912_v24 = vpop.eup %5964 }
 0x593   : > { %v1781_v32 = vsel %vm1221_vm0, %v6912_v24, 0.0 }
 0x594   : > { %1782 = vadd.xlane.f32.xlu1 %v1781_v32 }
 0x5a5   : > { %1820 = vrot.lane.b32.xlu1 %v6737_v14, %s6331_s15 }
 0x5a6   : > { %1818 = vrot.lane.b32.xlu0 %v6741_v4, %s6331_s15 }
 0x5a9   : > { %1881 = vrot.lane.b32.xlu1 %v6773_v45, %s6331_s15 }
 0x5aa   : > { %1946 = vrot.lane.b32.xlu0 %v6721_v48, %s6332_s28 }
 0x5ad   : > { %1948 = vrot.lane.b32.xlu1 %v6739_v3, %s6332_s28 }
 0x5ae   : > { %1883 = vrot.lane.b32.xlu0 %v6769_v43, %s6331_s15 }
 0x5b2   : > { %1942 = vrot.lane.b32.xlu0 %v6719_v46, %s6332_s28 }
 0x5be   : > { %v1738_v35 = vpop.xlane.xlu0 %1737 }
 0x5bf   : > { %v1752_v38 = vsub.f32 %v1720_v57, %v1738_v35 }
 0x5c0   : > { %v1741_v31 = vpop.xlane.xlu1 %1740 }
 0x5c1   : > { %v1764_v52 = vmul.f32 1.442695, %v1752_v38  ;;  %v1753_v49 = vsub.f32 %v1721_v59, %v1741_v31 }
 0x5c2   : > { %v1744_v54 = vpop.xlane.xlu0 %1743 }
 0x5c3   : > { %5966 = vpow2.f32 %v1764_v52  ;;  %v1754_v53 = vsub.f32 %v1722_v60, %v1744_v54  ;;  %v1766_v61 = vmul.f32 1.442695, %v1753_v49 }
 0x5c4   : > { %v1747_v50 = vpop.xlane.xlu1 %1746 }
 0x5c5   : > { %v1768_v55 = vmul.f32 1.442695, %v1754_v53  ;;  %v1755_v56 = vsub.f32 %v1723_v33, %v1747_v50 }
 0x5c7   : > { %5968 = vpow2.f32 %v1768_v55  ;;  %v1770_v58 = vmul.f32 1.442695, %v1755_v56 }
 0x5c9   : > { %5970 = vpow2.f32 %v1770_v58 }
 0x5ca   : > { %5972 = vpow2.f32 %v1766_v61 }
 0x5cd   : > { %v6930_v62 = vpop.eup %5966 }
 0x5ce   : > { %v1784_v0 = vsel %vm1221_vm0, %v6930_v62, 0.0 }
 0x5d1   : > { %v6934_v57 = vpop.eup %5968  ;;  %1785 = vadd.xlane.f32.xlu0 %v1784_v0 }
 0x5d2   : > { %v1790_v60 = vsel %vm1221_vm0, %v6934_v57, 0.0 }
 0x5d3   : > { %v6938_v63 = vpop.eup %5970  ;;  %1791 = vadd.xlane.f32.xlu1 %v1790_v60 }
 0x5d4   : > { %v1793_v59 = vsel %vm1221_vm0, %v6938_v63, 0.0  ;;  %v6942_v33 = vpop.eup %5972 }
 0x5d5   : > { %v1787_v5 = vsel %vm1221_vm0, %v6942_v33, 0.0 }
 0x5d7   : > { %1794 = vadd.xlane.f32.xlu1 %v1793_v59 }
 0x5db   : > { %1788 = vadd.xlane.f32.xlu1 %v1787_v5 }
 0x5e7   : > { %2015 = vrot.lane.b32.xlu0 %v6753_v18, %s6332_s28 }
 0x5eb   : > { %2011 = vrot.lane.b32.xlu0 %v6751_v17, %s6332_s28 }
 0x5ec   : > { %1944 = vrot.lane.b32.xlu1 %v6735_v2, %s6332_s28 }
 0x5f0   : > { %2017 = vrot.lane.b32.xlu1 %v6771_v9, %s6332_s28 }
 0x5f4   : > { %2013 = vrot.lane.b32.xlu1 %v6767_v42, %s6332_s28 }
 0x619   : > { %v1774_v6 = vpop.xlane.xlu0 %1773 }
 0x61a   : > { %5974 = vrcp.f32 %v1774_v6 }
 0x61b   : > { %v1777_v7 = vpop.xlane.xlu1 %1776 }
 0x61c   : > { %5976 = vrcp.f32 %v1777_v7 }
 0x61d   : > { %v1780_v10 = vpop.xlane.xlu0 %1779 }
 0x61e   : > { %5978 = vrcp.f32 %v1780_v10 }
 0x621   : > { %v1819_v1 = vpop.permute.xlu0 %1818  ;;  %v1783_v20 = vpop.xlane.xlu1 %1782 }
 0x622   : > { %5980 = vrcp.f32 %v1783_v20  ;;  %5494 = vmatprep.subr.bf16.mxu0 %v1819_v1 }
 0x623   : > { %5495 = vmatpush3.bf16.msra.mxu0 %v1819_v1 }
 0x624   : > { %v5975_v21 = vpop.eup %5974 }
 0x625   : > { %v1947_v23 = vpop.permute.xlu0 %1946  ;;  %v1821_v16 = vpop.permute.xlu1 %1820  ;;  %v1797_v19 = vmul.f32 %v5975_v21, %v6900_v25 }
 0x626   : > { %v5977_v22 = vpop.eup %5976  ;;  %5496 = vmatprep.subr.bf16.mxu0 %v1821_v16 }
 0x627   : > { %5497 = vmatpush3.bf16.msra.mxu0 %v1821_v16  ;;  %v1799_v27 = vmul.f32 %v5977_v22, %v6904_v26  ;;  %v1957_v26 = vsel %vm1221_vm0, %v1947_v23, 0 }
 0x628   : > { %5646 = vmatprep.subr.msk.bf16.mxu0 %vm1221_vm0, %v1947_v23  ;;  %v5979_v32 = vpop.eup %5978 }
 0x629   : > { %v1882_v29 = vpop.permute.xlu1 %1881  ;;  %v1812_v8 = vpack.c.bf16 %v1799_v27, %v1797_v19  ;;  %v1884_v35 = vpop.permute.xlu0 %1883  ;;  %v1801_v31 = vmul.f32 %v5979_v32, %v6908_v30 }
 0x62a   : > { %5502 = vmatprep.subr.bf16.mxu1 %v1882_v29 }
 0x62b   : > { %5498 = vmatprep.mubr.msk.bf16.mxu0 %vm1221_vm0, %v1812_v8  ;;  %5503 = vmatpush3.bf16.msra.mxu1 %v1882_v29 }
 0x62c   : > { %v5981_v38 = vpop.eup %5980  ;;  %5504 = vmatprep.subr.bf16.mxu1 %v1884_v35 }
 0x62d   : > { %v1803_v52 = vmul.f32 %v5981_v38, %v6912_v24  ;;  %v1943_v54 = vpop.permute.xlu0 %1942  ;;  %v1949_v53 = vpop.permute.xlu1 %1948 }
 0x62e   : > { %v1960_v50 = vsel %vm1221_vm0, %v1949_v53, 0 }
 0x62f   : > { %5505 = vmatpush3.bf16.msra.mxu1 %v1884_v35  ;;  %v1813_v25 = vpack.c.bf16 %v1803_v52, %v1801_v31 }
 0x631   : > { %5499 = vmatmul.mubr.msk.bf16.vlgmr.msra.gmra.mrb[20].mxu0 %vm1221_vm0, %v1813_v25 }
 0x632   : > { %5511 = vmatpush3.bf16.xpose.msra.mxu0 %v1957_v26  ;;  %5514 = vmatprep.mubr.msk.bf16.mxu0 %vm1221_vm0, %v1943_v54 }
 0x633   : > { %5647 = vmatprep.subr.msk.bf16.mxu0 %vm1221_vm0, %v1949_v53 }
 0x63a   : > { %5513 = vmatpush3.bf16.xpose.msra.mxu0 %v1960_v50 }
 0x65e   : > { %v1786_v49 = vpop.xlane.xlu0 %1785 }
 0x660   : > { %v1792_v30 = vpop.xlane.xlu1 %1791 }
 0x662   : > { %v2016_v55 = vpop.permute.xlu0 %2015 }
 0x663   : > { %5648 = vmatprep.subr.msk.bf16.mxu1 %vm1221_vm0, %v2016_v55  ;;  %v2026_v21 = vsel %vm1221_vm0, %v2016_v55, 0 }
 0x664   : > { %v1795_v24 = vpop.xlane.xlu1 %1794 }
 0x665   : > { %5982 = vrcp.f32 %v1795_v24 }
 0x666   : > { %5984 = vrcp.f32 %v1786_v49  ;;  %v2012_v23 = vpop.permute.xlu0 %2011 }
 0x667   : > { %5986 = vrcp.f32 %v1792_v30 }
 0x668   : > { %v1789_v56 = vpop.xlane.xlu1 %1788 }
 0x669   : > { %5988 = vrcp.f32 %v1789_v56 }
 0x66c   : > { %v1945_v58 = vpop.permute.xlu1 %1944 }
 0x66d   : > { %5515 = vmatmul.mubr.msk.bf16.vlgmr.msra.gmra.mrb[24].mxu0 %vm1221_vm0, %v1945_v58 }
 0x66f   : > { %v5983_v61 = vpop.eup %5982 }
 0x670   : > { %v5985_v0 = vpop.eup %5984  ;;  %v1811_v5 = vmul.f32 %v5983_v61, %v6938_v63  ;;  %v2018_v16 = vpop.permute.xlu1 %2017 }
 0x671   : > { %v5987_v60 = vpop.eup %5986  ;;  %v1805_v6 = vmul.f32 %v5985_v0, %v6930_v62  ;;  %v2029_v62 = vsel %vm1221_vm0, %v2018_v16, 0 }
 0x672   : > { %v1809_v10 = vmul.f32 %v5987_v60, %v6934_v57 }
 0x673   : > { %v5989_v59 = vpop.eup %5988 }
 0x674   : > { %v1807_v7 = vmul.f32 %v5989_v59, %v6942_v33  ;;  %v1815_v20 = vpack.c.bf16 %v1811_v5, %v1809_v10  ;;  %v2014_v63 = vpop.permute.xlu1 %2013 }
 0x676   : > { %v1814_v1 = vpack.c.bf16 %v1807_v7, %v1805_v6 }
 0x678   : > { %5506 = vmatprep.mubr.msk.bf16.mxu1 %vm1221_vm0, %v1814_v1 }
 0x679   : > { %5507 = vmatmul.mubr.msk.bf16.vlgmr.msra.gmra.mrb[28].mxu1 %vm1221_vm0, %v1815_v20 }
 0x67a   : > { %5519 = vmatpush3.bf16.xpose.msra.mxu1 %v2026_v21  ;;  %5522 = vmatprep.mubr.msk.bf16.mxu1 %vm1221_vm0, %v2012_v23 }
 0x67b   : > { %5649 = vmatprep.subr.msk.bf16.mxu1 %vm1221_vm0, %v2018_v16 }
 0x682   : > { %5521 = vmatpush3.bf16.xpose.msra.mxu1 %v2029_v62 }
 0x689   : > { %5523 = vmatmul.mubr.msk.bf16.vlgmr.msra.gmra.mrb[32].mxu1 %vm1221_vm0, %v2014_v63 }
 0x704   : > { %v6980_v57 = vpop.f32.mrb[20].mxu0 }
 0x705   : > { %v6982_v33 = vpop.f32.mrb[21].mxu0 }
 0x706   : > { %v6984_v22 = vpop.f32.mrb[22].mxu0 }
 0x707   : > { %v5735_v19 = vpack.i.bf16 %v6984_v22, %v6980_v57  ;;  %v6988_v27 = vpop.f32.mrb[23].mxu0 }
 0x708   : > { %v5730_v29 = vpack.i.bf16 %v6988_v27, %v6982_v33 }
 0x740   : > { %v5516_v8 = vpop.f32.mrb[24].mxu0 }
 0x741   : > { %v1996_v32 = vpop.f32.mrb[25].mxu0  ;;  %v2082_v35 = vmul.f32 0.17677669, %v5516_v8 }
 0x742   : > { %v2080_v38 = vmul.f32 0.17677669, %v1996_v32  ;;  %v5517_v31 = vpop.f32.mrb[26].mxu0 }
 0x743   : > { %v1999_v52 = vpop.f32.mrb[27].mxu0  ;;  %v2083_v54 = vmul.f32 0.17677669, %v5517_v31  ;;  %v2090_v49 = vadd.f32 %v2082_v35, %v6787_v51 }
 0x744   : > { %v2081_v25 = vmul.f32 0.17677669, %v1999_v52  ;;  %v2088_v26 = vadd.f32 %v2080_v38, %v6787_v51 }
 0x745   : > { %v2102_v55 = vsel %vm1221_vm0, %v2090_v49, -inf  ;;  %v2091_v24 = vadd.f32 %v2083_v54, %v6787_v51 }
 0x746   : > { %v2096_v53 = vsel %vm1221_vm0, %v2088_v26, -inf  ;;  %v2089_v50 = vadd.f32 %v2081_v25, %v6787_v51 }
 0x747   : > { %2097 = vmax.xlane.f32.xlu0 %v2096_v53  ;;  %v2105_v0 = vsel %vm1221_vm0, %v2091_v24, -inf }
 0x748   : > { %v2099_v30 = vsel %vm1221_vm0, %v2089_v50, -inf }
 0x749   : > { %2100 = vmax.xlane.f32.xlu1 %v2099_v30 }
 0x74b   : > { %2103 = vmax.xlane.f32.xlu0 %v2102_v55 }
 0x74c   : > { %v6999_v56 = vpop.f32.mrb[28].mxu1 }
 0x74d   : > { %v7001_v58 = vpop.f32.mrb[29].mxu1 }
 0x74e   : > { %v7003_v61 = vpop.f32.mrb[30].mxu1 }
 0x74f   : > { %v5765_v60 = vpack.i.bf16 %v7003_v61, %v6999_v56  ;;  %v7008_v59 = vpop.f32.mrb[31].mxu1  ;;  %2106 = vmax.xlane.f32.xlu0 %v2105_v0 }
 0x750   : > { %v5760_v5 = vpack.i.bf16 %v7008_v59, %v7001_v58 }
 0x75c   : > { %v5524_v6 = vpop.f32.mrb[32].mxu1 }
 0x75d   : > { %v2065_v7 = vpop.f32.mrb[33].mxu1  ;;  %v2086_v10 = vmul.f32 0.17677669, %v5524_v6 }
 0x75e   : > { %v2084_v1 = vmul.f32 0.17677669, %v2065_v7  ;;  %v5525_v20 = vpop.f32.mrb[34].mxu1 }
 0x75f   : > { %v2068_v21 = vpop.f32.mrb[35].mxu1  ;;  %v2087_v23 = vmul.f32 0.17677669, %v5525_v20  ;;  %v2094_v32 = vadd.f32 %v2086_v10, %v6787_v51 }
 0x760   : > { %v2085_v16 = vmul.f32 0.17677669, %v2068_v21  ;;  %v2092_v62 = vadd.f32 %v2084_v1, %v6787_v51 }
 0x761   : > { %v2095_v38 = vadd.f32 %v2087_v23, %v6787_v51  ;;  %v2114_v31 = vsel %vm1221_vm0, %v2094_v32, -inf }
 0x762   : > { %v2108_v63 = vsel %vm1221_vm0, %v2092_v62, -inf  ;;  %v2093_v8 = vadd.f32 %v2085_v16, %v6787_v51 }
 0x763   : > { %2109 = vmax.xlane.f32.xlu0 %v2108_v63  ;;  %v2117_v52 = vsel %vm1221_vm0, %v2095_v38, -inf }
 0x764   : > { %v2111_v35 = vsel %vm1221_vm0, %v2093_v8, -inf }
 0x765   : > { %2112 = vmax.xlane.f32.xlu1 %v2111_v35 }
 0x767   : > { %2115 = vmax.xlane.f32.xlu0 %v2114_v31 }
 0x769   : > { %2118 = vmax.xlane.f32.xlu1 %v2117_v52 }
 0x7d4   : > { %v2098_v25 = vpop.xlane.xlu0 %2097 }
 0x7d5   : > { %v2120_v54 = vsub.f32 %v2088_v26, %v2098_v25 }
 0x7d6   : > { %v2101_v53 = vpop.xlane.xlu1 %2100 }
 0x7d7   : > { %v2128_v30 = vmul.f32 1.442695, %v2120_v54  ;;  %v2121_v55 = vsub.f32 %v2089_v50, %v2101_v53 }
 0x7d8   : > { %v2104_v0 = vpop.xlane.xlu0 %2103 }
 0x7d9   : > { %5990 = vpow2.f32 %v2128_v30  ;;  %v2130_v6 = vmul.f32 1.442695, %v2121_v55  ;;  %v2122_v7 = vsub.f32 %v2090_v49, %v2104_v0 }
 0x7db   : > { %5992 = vpow2.f32 %v2130_v6  ;;  %v2132_v10 = vmul.f32 1.442695, %v2122_v7 }
 0x7dc   : > { %v2107_v1 = vpop.xlane.xlu0 %2106 }
 0x7dd   : > { %5994 = vpow2.f32 %v2132_v10  ;;  %v2123_v20 = vsub.f32 %v2091_v24, %v2107_v1 }
 0x7df   : > { %v2134_v21 = vmul.f32 1.442695, %v2123_v20 }
 0x7e1   : > { %5996 = vpow2.f32 %v2134_v21 }
 0x7e3   : > { %v7020_v23 = vpop.eup %5990 }
 0x7e4   : > { %v2144_v16 = vsel %vm1221_vm0, %v7020_v23, 0.0 }
 0x7e5   : > { %v7024_v26 = vpop.eup %5992  ;;  %2145 = vadd.xlane.f32.xlu0 %v2144_v16 }
 0x7e6   : > { %v2147_v50 = vsel %vm1221_vm0, %v7024_v26, 0.0 }
 0x7e7   : > { %v7028_v63 = vpop.eup %5994  ;;  %2148 = vadd.xlane.f32.xlu1 %v2147_v50 }
 0x7e8   : > { %v2150_v49 = vsel %vm1221_vm0, %v7028_v63, 0.0 }
 0x7e9   : > { %2151 = vadd.xlane.f32.xlu0 %v2150_v49 }
 0x7eb   : > { %v7032_v24 = vpop.eup %5996 }
 0x7ec   : > { %v2153_v35 = vsel %vm1221_vm0, %v7032_v24, 0.0 }
 0x7ed   : > { %2154 = vadd.xlane.f32.xlu1 %v2153_v35 }
 0x7f0   : > { %v2110_v31 = vpop.xlane.xlu0 %2109 }
 0x7f1   : > { %v2124_v54 = vsub.f32 %v2092_v62, %v2110_v31 }
 0x7f2   : > { %v2113_v52 = vpop.xlane.xlu1 %2112 }
 0x7f3   : > { %v2136_v55 = vmul.f32 1.442695, %v2124_v54 }
 0x7f4   : > { %v2116_v25 = vpop.xlane.xlu0 %2115 }
 0x7f5   : > { %v2126_v53 = vsub.f32 %v2094_v32, %v2116_v25  ;;  %5998 = vpow2.f32 %v2136_v55 }
 0x7f6   : > { %v2119_v30 = vpop.xlane.xlu1 %2118 }
 0x7f7   : > { %v2140_v0 = vmul.f32 1.442695, %v2126_v53  ;;  %v2127_v6 = vsub.f32 %v2095_v38, %v2119_v30 }
 0x7f9   : > { %6000 = vpow2.f32 %v2140_v0  ;;  %v2142_v7 = vmul.f32 1.442695, %v2127_v6 }
 0x7fb   : > { %6002 = vpow2.f32 %v2142_v7 }
 0x7fe   : > { %2190 = vrot.lane.b32.xlu1 %v6737_v14, %s6332_s28 }
 0x7ff   : > { %2188 = vrot.lane.b32.xlu0 %v6741_v4, %s6332_s28  ;;  %v7050_v10 = vpop.eup %5998 }
 0x802   : > { %2249 = vrot.lane.b32.xlu1 %v6773_v45, %s6332_s28 }
 0x803   : > { %2314 = vrot.lane.b32.xlu0 %v6721_v48, %s6333_s25  ;;  %v2125_v48 = vsub.f32 %v2093_v8, %v2113_v52  ;;  %v7052_v1 = vpop.eup %6000 }
 0x804   : > { %v2162_v62 = vsel %vm1221_vm0, %v7052_v1, 0.0 }
 0x805   : > { %v7058_v32 = vpop.eup %6002 }
 0x806   : > { %2316 = vrot.lane.b32.xlu1 %v6739_v3, %s6333_s25  ;;  %v2138_v3 = vmul.f32 1.442695, %v2125_v48  ;;  %v2165_v8 = vsel %vm1221_vm0, %v7058_v32, 0.0 }
 0x807   : > { %2251 = vrot.lane.b32.xlu0 %v6769_v43, %s6332_s28 }
 0x808   : > { %6004 = vpow2.f32 %v2138_v3 }
 0x80b   : > { %2310 = vrot.lane.b32.xlu0 %v6719_v46, %s6333_s25  ;;  %v2156_v46 = vsel %vm1221_vm0, %v7050_v10, 0.0 }
 0x812   : > { %v7062_v38 = vpop.eup %6004 }
 0x813   : > { %v2159_v20 = vsel %vm1221_vm0, %v7062_v38, 0.0 }
 0x82a   : > { %2157 = vadd.xlane.f32.xlu0 %v2156_v46  ;;  %2163 = vadd.xlane.f32.xlu1 %v2162_v62 }
 0x82e   : > { %2166 = vadd.xlane.f32.xlu1 %v2165_v8 }
 0x832   : > { %2160 = vadd.xlane.f32.xlu1 %v2159_v20 }
 0x840   : > { %2383 = vrot.lane.b32.xlu0 %v6753_v18, %s6333_s25 }
 0x843   : > { %2312 = vrot.lane.b32.xlu1 %v6735_v2, %s6333_s25 }
 0x844   : > { %2379 = vrot.lane.b32.xlu0 %v6751_v17, %s6333_s25 }
 0x847   : > { %2385 = vrot.lane.b32.xlu1 %v6771_v9, %s6333_s25 }
 0x84b   : > { %2381 = vrot.lane.b32.xlu1 %v6767_v42, %s6333_s25 }
 0x872   : > { %v2146_v21 = vpop.xlane.xlu0 %2145 }
 0x873   : > { %6006 = vrcp.f32 %v2146_v21 }
 0x874   : > { %v2149_v16 = vpop.xlane.xlu1 %2148 }
 0x875   : > { %6008 = vrcp.f32 %v2149_v16 }
 0x876   : > { %v2152_v50 = vpop.xlane.xlu0 %2151 }
 0x877   : > { %6010 = vrcp.f32 %v2152_v50 }
 0x87a   : > { %v2189_v49 = vpop.permute.xlu0 %2188  ;;  %v2155_v18 = vpop.xlane.xlu1 %2154 }
 0x87b   : > { %6012 = vrcp.f32 %v2155_v18  ;;  %5526 = vmatprep.subr.bf16.mxu0 %v2189_v49 }
 0x87c   : > { %5527 = vmatpush3.bf16.msra.mxu0 %v2189_v49 }
 0x87d   : > { %v6007_v2 = vpop.eup %6006 }
 0x87e   : > { %v2315_v35 = vpop.permute.xlu0 %2314  ;;  %v2191_v17 = vpop.permute.xlu1 %2190  ;;  %v2169_v9 = vmul.f32 %v6007_v2, %v7020_v23 }
 0x87f   : > { %v6009_v31 = vpop.eup %6008  ;;  %5528 = vmatprep.subr.bf16.mxu0 %v2191_v17 }
 0x880   : > { %5529 = vmatpush3.bf16.msra.mxu0 %v2191_v17  ;;  %v2171_v42 = vmul.f32 %v6009_v31, %v7024_v26  ;;  %v2325_v26 = vsel %vm1221_vm0, %v2315_v35, 0 }
 0x881   : > { %5650 = vmatprep.subr.msk.bf16.mxu0 %vm1221_vm0, %v2315_v35  ;;  %v6011_v54 = vpop.eup %6010 }
 0x882   : > { %v2250_v52 = vpop.permute.xlu1 %2249  ;;  %v2184_v25 = vpack.c.bf16 %v2171_v42, %v2169_v9  ;;  %v2252_v53 = vpop.permute.xlu0 %2251  ;;  %v2173_v55 = vmul.f32 %v6011_v54, %v7028_v63 }
 0x883   : > { %5534 = vmatprep.subr.bf16.mxu1 %v2250_v52 }
 0x884   : > { %5530 = vmatprep.mubr.msk.bf16.mxu0 %vm1221_vm0, %v2184_v25  ;;  %5535 = vmatpush3.bf16.msra.mxu1 %v2250_v52 }
 0x885   : > { %v6013_v30 = vpop.eup %6012  ;;  %5536 = vmatprep.subr.bf16.mxu1 %v2252_v53 }
 0x886   : > { %v2175_v0 = vmul.f32 %v6013_v30, %v7032_v24  ;;  %v2311_v6 = vpop.permute.xlu0 %2310  ;;  %v2317_v48 = vpop.permute.xlu1 %2316 }
 0x887   : > { %v2328_v7 = vsel %vm1221_vm0, %v2317_v48, 0 }
 0x888   : > { %5537 = vmatpush3.bf16.msra.mxu1 %v2252_v53  ;;  %v2185_v23 = vpack.c.bf16 %v2175_v0, %v2173_v55 }
 0x88a   : > { %5531 = vmatmul.mubr.msk.bf16.vlgmr.msra.gmra.mrb[28].mxu0 %vm1221_vm0, %v2185_v23 }
 0x88b   : > { %5543 = vmatpush3.bf16.xpose.msra.mxu0 %v2325_v26  ;;  %5546 = vmatprep.mubr.msk.bf16.mxu0 %vm1221_vm0, %v2311_v6 }
 0x88c   : > { %5651 = vmatprep.subr.msk.bf16.mxu0 %vm1221_vm0, %v2317_v48 }
 0x893   : > { %5545 = vmatpush3.bf16.xpose.msra.mxu0 %v2328_v7 }
 0x8b7   : > { %v2158_v3 = vpop.xlane.xlu0 %2157  ;;  %v2164_v63 = vpop.xlane.xlu1 %2163 }
 0x8bb   : > { %v2384_v46 = vpop.permute.xlu0 %2383  ;;  %v2167_v24 = vpop.xlane.xlu1 %2166 }
 0x8bc   : > { %5652 = vmatprep.subr.msk.bf16.mxu1 %vm1221_vm0, %v2384_v46  ;;  %6014 = vrcp.f32 %v2167_v24  ;;  %v2394_v9 = vsel %vm1221_vm0, %v2384_v46, 0 }
 0x8bd   : > { %6016 = vrcp.f32 %v2158_v3 }
 0x8be   : > { %6018 = vrcp.f32 %v2164_v63 }
 0x8bf   : > { %v2161_v62 = vpop.xlane.xlu1 %2160  ;;  %v2380_v42 = vpop.permute.xlu0 %2379 }
 0x8c0   : > { %6020 = vrcp.f32 %v2161_v62 }
 0x8c3   : > { %v2313_v8 = vpop.permute.xlu1 %2312 }
 0x8c4   : > { %5547 = vmatmul.mubr.msk.bf16.vlgmr.msra.gmra.mrb[32].mxu0 %vm1221_vm0, %v2313_v8 }
 0x8c6   : > { %v6015_v20 = vpop.eup %6014 }
 0x8c7   : > { %v6017_v21 = vpop.eup %6016  ;;  %v2183_v49 = vmul.f32 %v6015_v20, %v7058_v32  ;;  %v2386_v52 = vpop.permute.xlu1 %2385 }
 0x8c8   : > { %v6019_v16 = vpop.eup %6018  ;;  %v2177_v18 = vmul.f32 %v6017_v21, %v7050_v10  ;;  %v2397_v10 = vsel %vm1221_vm0, %v2386_v52, 0 }
 0x8c9   : > { %v2181_v35 = vmul.f32 %v6019_v16, %v7052_v1 }
 0x8ca   : > { %v6021_v50 = vpop.eup %6020 }
 0x8cb   : > { %v2179_v2 = vmul.f32 %v6021_v50, %v7062_v38  ;;  %v2187_v31 = vpack.c.bf16 %v2183_v49, %v2181_v35  ;;  %v2382_v32 = vpop.permute.xlu1 %2381 }
 0x8cd   : > { %v2186_v17 = vpack.c.bf16 %v2179_v2, %v2177_v18 }
 0x8cf   : > { %5538 = vmatprep.mubr.msk.bf16.mxu1 %vm1221_vm0, %v2186_v17 }
 0x8d0   : > { %5539 = vmatmul.mubr.msk.bf16.vlgmr.msra.gmra.mrb[36].mxu1 %vm1221_vm0, %v2187_v31 }
 0x8d1   : > { %5551 = vmatpush3.bf16.xpose.msra.mxu1 %v2394_v9  ;;  %5554 = vmatprep.mubr.msk.bf16.mxu1 %vm1221_vm0, %v2380_v42 }
 0x8d2   : > { %5653 = vmatprep.subr.msk.bf16.mxu1 %vm1221_vm0, %v2386_v52 }
 0x8d9   : > { %5553 = vmatpush3.bf16.xpose.msra.mxu1 %v2397_v10 }
 0x8e0   : > { %5555 = vmatmul.mubr.msk.bf16.vlgmr.msra.gmra.mrb[40].mxu1 %vm1221_vm0, %v2382_v32 }
 0x95d   : > { %v7100_v1 = vpop.f32.mrb[28].mxu0 }
 0x95e   : > { %v7102_v38 = vpop.f32.mrb[29].mxu0 }
 0x95f   : > { %v7104_v25 = vpop.f32.mrb[30].mxu0 }
 0x960   : > { %v5745_v54 = vpack.i.bf16 %v7104_v25, %v7100_v1  ;;  %v7108_v53 = vpop.f32.mrb[31].mxu0 }
 0x961   : > { %v5740_v30 = vpack.i.bf16 %v7108_v53, %v7102_v38 }
 0x997   : > { %v5548_v55 = vpop.f32.mrb[32].mxu0 }
 0x998   : > { %v2364_v0 = vpop.f32.mrb[33].mxu0  ;;  %v2450_v23 = vmul.f32 0.17677669, %v5548_v55 }
 0x999   : > { %v2448_v26 = vmul.f32 0.17677669, %v2364_v0  ;;  %v5549_v6 = vpop.f32.mrb[34].mxu0 }
 0x99a   : > { %v2367_v48 = vpop.f32.mrb[35].mxu0  ;;  %v2451_v63 = vmul.f32 0.17677669, %v5549_v6  ;;  %v2458_v62 = vadd.f32 %v2450_v23, %v6787_v51 }
 0x99b   : > { %v2449_v7 = vmul.f32 0.17677669, %v2367_v48  ;;  %v2456_v3 = vadd.f32 %v2448_v26, %v6787_v51 }
 0x99c   : > { %v2459_v20 = vadd.f32 %v2451_v63, %v6787_v51  ;;  %v2470_v21 = vsel %vm1221_vm0, %v2458_v62, -inf }
 0x99d   : > { %v2457_v46 = vadd.f32 %v2449_v7, %v6787_v51  ;;  %v2464_v24 = vsel %vm1221_vm0, %v2456_v3, -inf }
 0x99e   : > { %2465 = vmax.xlane.f32.xlu0 %v2464_v24  ;;  %v2473_v18 = vsel %vm1221_vm0, %v2459_v20, -inf }
 0x99f   : > { %v2467_v8 = vsel %vm1221_vm0, %v2457_v46, -inf }
 0x9a0   : > { %2468 = vmax.xlane.f32.xlu1 %v2467_v8 }
 0x9a2   : > { %2471 = vmax.xlane.f32.xlu0 %v2470_v21 }
 0x9a3   : > { %v7119_v16 = vpop.f32.mrb[36].mxu1 }
 0x9a4   : > { %v7121_v50 = vpop.f32.mrb[37].mxu1 }
 0x9a5   : > { %v7123_v49 = vpop.f32.mrb[38].mxu1 }
 0x9a6   : > { %v5775_v2 = vpack.i.bf16 %v7123_v49, %v7119_v16  ;;  %v7128_v35 = vpop.f32.mrb[39].mxu1  ;;  %2474 = vmax.xlane.f32.xlu0 %v2473_v18 }
 0x9a7   : > { %v5770_v17 = vpack.i.bf16 %v7128_v35, %v7121_v50 }
 0x9b3   : > { %v5556_v31 = vpop.f32.mrb[40].mxu1 }
 0x9b4   : > { %v2433_v9 = vpop.f32.mrb[41].mxu1  ;;  %v2454_v42 = vmul.f32 0.17677669, %v5556_v31 }
 0x9b5   : > { %v2452_v52 = vmul.f32 0.17677669, %v2433_v9  ;;  %v5557_v10 = vpop.f32.mrb[42].mxu1 }
 0x9b6   : > { %v2436_v32 = vpop.f32.mrb[43].mxu1  ;;  %v2455_v0 = vmul.f32 0.17677669, %v5557_v10  ;;  %v2462_v26 = vadd.f32 %v2454_v42, %v6787_v51 }
 0x9b7   : > { %v2460_v55 = vadd.f32 %v2452_v52, %v6787_v51  ;;  %v2453_v23 = vmul.f32 0.17677669, %v2436_v32 }
 0x9b8   : > { %v2463_v7 = vadd.f32 %v2455_v0, %v6787_v51  ;;  %v2482_v24 = vsel %vm1221_vm0, %v2462_v26, -inf }
 0x9b9   : > { %v2461_v6 = vadd.f32 %v2453_v23, %v6787_v51  ;;  %v2476_v48 = vsel %vm1221_vm0, %v2460_v55, -inf }
 0x9ba   : > { %2477 = vmax.xlane.f32.xlu0 %v2476_v48  ;;  %v2485_v8 = vsel %vm1221_vm0, %v2463_v7, -inf }
 0x9bb   : > { %v2479_v63 = vsel %vm1221_vm0, %v2461_v6, -inf }
 0x9bc   : > { %2480 = vmax.xlane.f32.xlu1 %v2479_v63 }
 0x9be   : > { %2483 = vmax.xlane.f32.xlu0 %v2482_v24 }
 0x9c0   : > { %2486 = vmax.xlane.f32.xlu1 %v2485_v8 }
 0xa2b   : > { %v2466_v21 = vpop.xlane.xlu0 %2465 }
 0xa2c   : > { %v2488_v18 = vsub.f32 %v2456_v3, %v2466_v21 }
 0xa2d   : > { %v2469_v31 = vpop.xlane.xlu1 %2468 }
 0xa2e   : > { %v2496_v9 = vmul.f32 1.442695, %v2488_v18  ;;  %v2489_v42 = vsub.f32 %v2457_v46, %v2469_v31 }
 0xa2f   : > { %v2472_v52 = vpop.xlane.xlu0 %2471 }
 0xa30   : > { %6022 = vpow2.f32 %v2496_v9  ;;  %v2498_v10 = vmul.f32 1.442695, %v2489_v42  ;;  %v2490_v32 = vsub.f32 %v2458_v62, %v2472_v52 }
 0xa32   : > { %6024 = vpow2.f32 %v2498_v10  ;;  %v2500_v51 = vmul.f32 1.442695, %v2490_v32 }
 0xa33   : > { %v2475_v0 = vpop.xlane.xlu0 %2474 }
 0xa34   : > { %6026 = vpow2.f32 %v2500_v51  ;;  %v2491_v23 = vsub.f32 %v2459_v20, %v2475_v0 }
 0xa36   : > { %v2502_v48 = vmul.f32 1.442695, %v2491_v23 }
 0xa38   : > { %6028 = vpow2.f32 %v2502_v48 }
 0xa3a   : > { %v6023_v63 = vpop.eup %6022 }
 0xa3b   : > { %v2512_v24 = vsel %vm1221_vm0, %v6023_v63, 0.0 }
 0xa3c   : > { %v6025_v8 = vpop.eup %6024  ;;  %2513 = vadd.xlane.f32.xlu0 %v2512_v24 }
 0xa3d   : > { %v2515_v3 = vsel %vm1221_vm0, %v6025_v8, 0.0 }
 0xa3e   : > { %v7142_v21 = vpop.eup %6026  ;;  %2516 = vadd.xlane.f32.xlu1 %v2515_v3 }
 0xa3f   : > { %v2518_v46 = vsel %vm1221_vm0, %v7142_v21, 0.0 }
 0xa40   : > { %2519 = vadd.xlane.f32.xlu0 %v2518_v46 }
 0xa42   : > { %v7146_v62 = vpop.eup %6028 }
 0xa43   : > { %v2521_v20 = vsel %vm1221_vm0, %v7146_v62, 0.0 }
 0xa44   : > { %2522 = vadd.xlane.f32.xlu1 %v2521_v20 }
 0xa47   : > { %v2478_v18 = vpop.xlane.xlu0 %2477 }
 0xa48   : > { %v2492_v31 = vsub.f32 %v2460_v55, %v2478_v18 }
 0xa49   : > { %v2481_v55 = vpop.xlane.xlu1 %2480 }
 0xa4a   : > { %v2504_v52 = vmul.f32 1.442695, %v2492_v31  ;;  %v2493_v24 = vsub.f32 %v2461_v6, %v2481_v55 }
 0xa4b   : > { %v2484_v9 = vpop.xlane.xlu0 %2483 }
 0xa4c   : > { %v2494_v42 = vsub.f32 %v2462_v26, %v2484_v9  ;;  %v2506_v3 = vmul.f32 1.442695, %v2493_v24 }
 0xa4d   : > { %v2487_v23 = vpop.xlane.xlu1 %2486 }
 0xa4e   : > { %v2508_v10 = vmul.f32 1.442695, %v2494_v42  ;;  %v2495_v48 = vsub.f32 %v2463_v7, %v2487_v23 }
 0xa50   : > { %6030 = vpow2.f32 %v2508_v10 }
 0xa51   : > { %6032 = vpow2.f32 %v2504_v52 }
 0xa55   : > { %2558 = vrot.lane.b32.xlu1 %v6737_v14, %s6333_s25  ;;  %v2510_v14 = vmul.f32 1.442695, %v2495_v48 }
 0xa57   : > { %6034 = vpow2.f32 %v2510_v14 }
 0xa58   : > { %6036 = vpow2.f32 %v2506_v3  ;;  %v5822_v3 = vld [vmem:[%s6526_s17] sm:$0xff]  }
 0xa59   : > { %2617 = vrot.lane.b32.xlu1 %v6773_v45, %s6333_s25 }
 0xa5a   : > { %v7154_v32 = vpop.eup %6030 }
 0xa5b   : > { %v2530_v51 = vsel %vm1221_vm0, %v7154_v32, 0.0  ;;  %v7158_v0 = vpop.eup %6032 }
 0xa5c   : > { %2531 = vadd.xlane.f32.xlu0 %v2530_v51  ;;  %v2524_v26 = vsel %vm1221_vm0, %v7158_v0, 0.0 }
 0xa60   : > { %2525 = vadd.xlane.f32.xlu0 %v2524_v26 }
 0xa61   : > { %v6035_v45 = vpop.eup %6034 }
 0xa62   : > { %v2533_v46 = vsel %vm1221_vm0, %v6035_v45, 0.0  ;;  %v6037_v20 = vpop.eup %6036 }
 0xa63   : > { %v2527_v6 = vsel %vm1221_vm0, %v6037_v20, 0.0 }
 0xa76   : > { %2556 = vrot.lane.b32.xlu0 %v6741_v4, %s6333_s25 }
 0xa7a   : > { %5731 = vrot.lane.b32.xlu0 %v5730_v29, %s6333_s25 }
 0xa7d   : > { %2534 = vadd.xlane.f32.xlu1 %v2533_v46  ;;  %v5823_v46 = vld [vmem:[%s6526_s17 + $0x8] sm:$0xff]  }
 0xa7e   : > { %5741 = vrot.lane.b32.xlu0 %v5740_v30, %s6332_s28 }
 0xa81   : > { %2528 = vadd.xlane.f32.xlu1 %v2527_v6  ;;  %v5828_v6 = vld [vmem:[%s6526_s17 + $0x30] sm:$0xff]  }
 0xa92   : > { %2619 = vrot.lane.b32.xlu1 %v6769_v43, %s6333_s25 }
 0xa96   : > { %5736 = vrot.lane.b32.xlu1 %v5735_v19, %s6333_s25 }
 0xa9a   : > { %5746 = vrot.lane.b32.xlu1 %v5745_v54, %s6332_s28 }
 0xac9   : > { %v2514_v4 = vpop.xlane.xlu0 %2513 }
 0xaca   : > { %6038 = vrcp.f32 %v2514_v4  ;;  %v5829_v4 = vld [vmem:[%s6526_s17 + $0x38] sm:$0xff]  }
 0xacb   : > { %v2517_v33 = vpop.xlane.xlu1 %2516 }
 0xacc   : > { %6040 = vrcp.f32 %v2517_v33 }
 0xacd   : > { %v2520_v57 = vpop.xlane.xlu0 %2519 }
 0xad1   : > { %v2523_v27 = vpop.xlane.xlu1 %2522 }
 0xad2   : > { %6042 = vrcp.f32 %v2523_v27 }
 0xad3   : > { %6044 = vrcp.f32 %v2520_v57 }
 0xad4   : > { %v6039_v29 = vpop.eup %6038 }
 0xad5   : > { %v2559_v38 = vpop.permute.xlu1 %2558  ;;  %v2537_v30 = vmul.f32 %v6039_v29, %v6023_v63 }
 0xad6   : > { %v6041_v53 = vpop.eup %6040 }
 0xad7   : > { %v2539_v43 = vmul.f32 %v6041_v53, %v6025_v8 }
 0xad9   : > { %v2618_v7 = vpop.permute.xlu1 %2617  ;;  %v2552_v18 = vpack.c.bf16 %v2539_v43, %v2537_v30 }
 0xada   : > { %5566 = vmatprep.subr.bf16.mxu1 %v2618_v7 }
 0xadb   : > { %5562 = vmatprep.mubr.msk.bf16.mxu0 %vm1221_vm0, %v2552_v18  ;;  %5567 = vmatpush3.bf16.msra.mxu1 %v2618_v7 }
 0xadc   : > { %v6043_v1 = vpop.eup %6042 }
 0xadd   : > { %v6045_v54 = vpop.eup %6044  ;;  %v2543_v31 = vmul.f32 %v6043_v1, %v7146_v62 }
 0xade   : > { %v2541_v63 = vmul.f32 %v6045_v54, %v7142_v21 }
 0xae0   : > { %v2553_v8 = vpack.c.bf16 %v2543_v31, %v2541_v63 }
 0xae9   : > { %v2532_v22 = vpop.xlane.xlu0 %2531 }
 0xaed   : > { %v2526_v19 = vpop.xlane.xlu0 %2525 }
 0xaf1   : > { %v2557_v25 = vpop.permute.xlu0 %2556 }
 0xaf2   : > { %5558 = vmatprep.subr.bf16.mxu0 %v2557_v25 }
 0xaf3   : > { %5559 = vmatpush3.bf16.msra.mxu0 %v2557_v25 }
 0xaf4   : > { %5560 = vmatprep.subr.bf16.mxu0 %v2559_v38 }
 0xaf5   : > { %v5732_v59 = vpop.permute.xlu0 %5731 }
 0xaf6   : > { %v5734_v16 = vunpack.i.h.bf16 %v5732_v59  ;;  %v5733_v49 = vunpack.i.l.bf16 %v5732_v59 }
 0xaf7   : > { %5561 = vmatpush3.bf16.msra.mxu0 %v2559_v38 }
 0xaf8   : > { %5574 = vmatprep.subr.bf16.mxu0 %v5822_v3  ;;  %v2775_v1 = vsel %vm1221_vm0, %v6874_v15, %v5734_v16  ;;  %v2774_v25 = vsel %vm1221_vm0, %v6870_v11, %v5733_v49 }
 0xafa   : > { %5563 = vmatmul.mubr.msk.bf16.vlgmr.msra.gmra.mrb[36].mxu0 %vm1221_vm0, %v2553_v8 }
 0xafb   : > { %5575 = vmatpush3.bf16.msra.mxu0 %v5822_v3 }
 0xafc   : > { %5576 = vmatprep.subr.bf16.mxu0 %v5823_v46 }
 0xaff   : > { %5577 = vmatpush3.bf16.msra.mxu0 %v5823_v46 }
 0xb0a   : > { %v2535_v9 = vpop.xlane.xlu1 %2534 }
 0xb0b   : > { %6046 = vrcp.f32 %v2535_v9 }
 0xb0c   : > { %6048 = vrcp.f32 %v2526_v19 }
 0xb0d   : > { %6050 = vrcp.f32 %v2532_v22 }
 0xb0e   : > { %v2529_v42 = vpop.xlane.xlu1 %2528 }
 0xb0f   : > { %6052 = vrcp.f32 %v2529_v42 }
 0xb12   : > { %v2620_v52 = vpop.permute.xlu1 %2619 }
 0xb13   : > { %5568 = vmatprep.subr.bf16.mxu1 %v2620_v52 }
 0xb14   : > { %5569 = vmatpush3.bf16.msra.mxu1 %v2620_v52 }
 0xb15   : > { %v6047_v10 = vpop.eup %6046 }
 0xb16   : > { %v6049_v62 = vpop.eup %6048  ;;  %v2551_v55 = vmul.f32 %v6047_v10, %v6035_v45  ;;  %v5826_v45 = vld [vmem:[%s6526_s17 + $0x20] sm:$0xff]   ;;  %v5737_v58 = vpop.permute.xlu1 %5736 }
 0xb17   : > { %v6051_v51 = vpop.eup %6050  ;;  %v2545_v26 = vmul.f32 %v6049_v62, %v7158_v0  ;;  %v5824_v0 = vld [vmem:[%s6526_s17 + $0x10] sm:$0xff]   ;;  %v5739_v57 = vunpack.i.h.bf16 %v5737_v58  ;;  %v5738_v22 = vunpack.i.l.bf16 %v5737_v58 }
 0xb18   : > { %v2549_v48 = vmul.f32 %v6051_v51, %v7154_v32  ;;  %5578 = vmatprep.subr.bf16.mxu0 %v5824_v0  ;;  %v5825_v32 = vld [vmem:[%s6526_s17 + $0x18] sm:$0xff]  }
 0xb19   : > { %v6053_v21 = vpop.eup %6052  ;;  %5579 = vmatpush3.bf16.msra.mxu0 %v5824_v0  ;;  %v2777_v31 = vsel %vm1221_vm0, %v6872_v12, %v5739_v57  ;;  %v2776_v63 = vsel %vm1221_vm0, %v6868_v13, %v5738_v22 }
 0xb1a   : > { %v2547_v23 = vmul.f32 %v6053_v21, %v6037_v20  ;;  %v2555_v14 = vpack.c.bf16 %v2551_v55, %v2549_v48  ;;  %5580 = vmatprep.subr.bf16.mxu0 %v5825_v32  ;;  %v5827_v20 = vld [vmem:[%s6526_s17 + $0x28] sm:$0xff]  }
 0xb1c   : > { %v2554_v24 = vpack.c.bf16 %v2547_v23, %v2545_v26 }
 0xb1d   : > { %5581 = vmatpush3.bf16.msra.mxu0 %v5825_v32 }
 0xb1e   : > { %5570 = vmatprep.mubr.msk.bf16.mxu1 %vm1221_vm0, %v2554_v24  ;;  %5582 = vmatprep.subr.bf16.mxu0 %v5826_v45 }
 0xb1f   : > { %5571 = vmatmul.mubr.msk.bf16.vlgmr.msra.gmra.mrb[44].mxu1 %vm1221_vm0, %v2555_v14 }
 0xb20   : > { %3332 = vmatprep.mubr.bf16.mxu1 %v6329_v47 }
 0xb21   : > { %5583 = vmatpush3.bf16.msra.mxu0 %v5826_v45 }
 0xb22   : > { %5584 = vmatprep.subr.bf16.mxu0 %v5827_v20 }
 0xb25   : > { %5585 = vmatpush3.bf16.msra.mxu0 %v5827_v20 }
 0xb26   : > { %5586 = vmatprep.subr.bf16.mxu0 %v5828_v6 }
 0xb29   : > { %5587 = vmatpush3.bf16.msra.mxu0 %v5828_v6 }
 0xb2a   : > { %5588 = vmatprep.subr.bf16.mxu0 %v5829_v4 }
 0xb2d   : > { %5589 = vmatpush3.bf16.msra.mxu0 %v5829_v4 }
 0xbcd   : > { %v5564_v33 = vpop.f32.mrb[36].mxu0 }
 0xbce   : > { %v2602_v27 = vpop.f32.mrb[37].mxu0 }
 0xbcf   : > { %v5565_v29 = vpop.f32.mrb[38].mxu0 }
 0xbd0   : > { %v5755_v38 = vpack.i.bf16 %v5565_v29, %v5564_v33  ;;  %v2605_v53 = vpop.f32.mrb[39].mxu0 }
 0xbd1   : > { %v5750_v30 = vpack.i.bf16 %v2605_v53, %v2602_v27 }
 0xbd2   : > { %5756 = vrot.lane.b32.xlu1 %v5755_v38, %s6331_s15 }
 0xbd3   : > { %5751 = vrot.lane.b32.xlu0 %v5750_v30, %s6331_s15 }
 0xbd6   : > { %5766 = vrot.lane.b32.xlu1 %v5765_v60, %s6333_s25 }
 0xbd7   : > { %5761 = vrot.lane.b32.xlu0 %v5760_v5, %s6333_s25  ;;  %v5747_v5 = vpop.permute.xlu1 %5746 }
 0xbd8   : > { %v5749_v50 = vunpack.i.h.bf16 %v5747_v5  ;;  %v5748_v35 = vunpack.i.l.bf16 %v5747_v5 }
 0xbda   : > { %5776 = vrot.lane.b32.xlu1 %v5775_v2, %s6332_s28  ;;  %v5742_v2 = vpop.permute.xlu0 %5741  ;;  %v2785_v52 = vsel %vm2782_vm2, %v2776_v63, %v5748_v35  ;;  %v2786_v10 = vsel %vm2782_vm2, %v2777_v31, %v5749_v50  ;;  %v6199_v31 = vld [vmem:[#allocation2 + $0x8] sm:$0xff] }
 0xbdb   : > { %5771 = vrot.lane.b32.xlu0 %v5770_v17, %s6332_s28  ;;  %v5744_v17 = vunpack.i.h.bf16 %v5742_v2  ;;  %v5743_v19 = vunpack.i.l.bf16 %v5742_v2  ;;  %v7259_v2 = vld [vmem:[%s8609_s27] ss:$0 sm:$0xff] }
 0xbdd   : > { %v2783_v11 = vsel %vm2782_vm2, %v2774_v25, %v5743_v19  ;;  %v2784_v51 = vsel %vm2782_vm2, %v2775_v1, %v5744_v17  ;;  %v6198_v19 = vld [vmem:[#allocation2] sm:$0xff] }
 0xbf2   : > { %v5572_v43 = vpop.f32.mrb[44].mxu1 }
 0xbf3   : > { %v2663_v7 = vpop.f32.mrb[45].mxu1 }
 0xbf4   : > { %v5573_v18 = vpop.f32.mrb[46].mxu1 }
 0xbf5   : > { %v5785_v56 = vpack.i.bf16 %v5573_v18, %v5572_v43  ;;  %v2666_v61 = vpop.f32.mrb[47].mxu1 }
 0xbf6   : > { %v5780_v60 = vpack.i.bf16 %v2666_v61, %v2663_v7 }
 0xbf7   : > { %5786 = vrot.lane.b32.xlu1 %v5785_v56, %s6331_s15 }
 0xbf8   : > { %5781 = vrot.lane.b32.xlu0 %v5780_v60, %s6331_s15 }
 0xc44   : > { %v5757_v54 = vpop.permute.xlu1 %5756 }
 0xc45   : > { %v5759_v8 = vunpack.i.h.bf16 %v5757_v54  ;;  %v5758_v9 = vunpack.i.l.bf16 %v5757_v54  ;;  %v5752_v42 = vpop.permute.xlu0 %5751 }
 0xc46   : > { %v5754_v15 = vunpack.i.h.bf16 %v5752_v42  ;;  %v5753_v62 = vunpack.i.l.bf16 %v5752_v42 }
 0xc47   : > { %v2794_v21 = vsel %vm2791_vm3, %v2785_v52, %v5758_v9  ;;  %v2795_v12 = vsel %vm2791_vm3, %v2786_v10, %v5759_v8  ;;  %v6200_v9 = vld [vmem:[#allocation2 + $0x18] sm:$0xff] }
 0xc48   : > { %v2801_v55 = vpack.c.bf16 %v2795_v12, %v2794_v21  ;;  %v2792_v13 = vsel %vm2791_vm3, %v2783_v11, %v5753_v62  ;;  %v2793_v26 = vsel %vm2791_vm3, %v2784_v51, %v5754_v15  ;;  %v5767_v48 = vpop.permute.xlu1 %5766  ;;  %v6201_v62 = vld [vmem:[#allocation2 + $0x10] sm:$0xff]  ;;  %v5835_v21 = vld [vmem:[%s6549_s3 + $0xc] ss:$16 sps:$4 sm:$0xff]  }
 0xc49   : > { %v2800_v23 = vpack.c.bf16 %v2793_v26, %v2792_v13  ;;  %v5762_v24 = vpop.permute.xlu0 %5761  ;;  %v5769_v3 = vunpack.i.h.bf16 %v5767_v48  ;;  %v5768_v46 = vunpack.i.l.bf16 %v5767_v48  ;;  %v5832_v51 = vld [vmem:[%s6549_s3 + $0x4] ss:$16 sps:$4 sm:$0xff]   ;;  %v5833_v13 = vld [vmem:[%s6549_s3 + $0x8] ss:$16 sps:$4 sm:$0xff]   ;;  %3373 = vmatprep.subr.bf16.mxu0 %v5835_v21  ;;  %v5836_v48 = vld [vmem:[%s6549_s3 + $0x20] ss:$16 sps:$4 sm:$0xff]  }
 0xc4a   : > { %v5764_v32 = vunpack.i.h.bf16 %v5762_v24  ;;  %v5763_v45 = vunpack.i.l.bf16 %v5762_v24  ;;  %3300 = vmatprep.subr.bf16.mxu1 %v5832_v51  ;;  %v5838_v26 = vld [vmem:[%s6549_s3 + $0x24] ss:$16 sps:$4 sm:$0xff]   ;;  %v5839_v24 = vld [vmem:[%s6549_s3 + $0x28] ss:$16 sps:$4 sm:$0xff]  }
 0xc4b   : > { %5590 = vmatprep.mubr.bf16.mxu0 %v2800_v23  ;;  %v2781_v27 = vsel %vm1221_vm0, %v6888_v41, %v5769_v3  ;;  %v2780_v29 = vsel %vm1221_vm0, %v6884_v39, %v5768_v46  ;;  %v5841_v23 = vld [vmem:[%s6549_s3 + $0x2c] ss:$16 sps:$4 sm:$0xff]   ;;  %v5842_v46 = vld [vmem:[%s6549_s3 + $0x40] ss:$16 sps:$4 sm:$0xff]  }
 0xc4c   : > { %5591 = vmatmul.mubr.bf16.vlgmr.msra.gmra.mrb[40].mxu0 %v2801_v55  ;;  %v5777_v14 = vpop.permute.xlu1 %5776  ;;  %v2779_v53 = vsel %vm1221_vm0, %v6890_v37, %v5764_v32  ;;  %v2778_v30 = vsel %vm1221_vm0, %v6886_v40, %v5763_v45  ;;  %v5830_v55 = vld [vmem:[%s6549_s3] ss:$16 sps:$4 sm:$0xff]   ;;  %v5847_v3 = vld [vmem:[%s6549_s3 + $0x4c] ss:$16 sps:$4 sm:$0xff]   ;;  %v5850_v32 = vld [vmem:[%s6549_s3 + $0x64] ss:$16 sps:$4 sm:$0xff]  }
 0xc4d   : > { %v5772_v0 = vpop.permute.xlu0 %5771  ;;  %v5779_v20 = vunpack.i.h.bf16 %v5777_v14  ;;  %v5778_v6 = vunpack.i.l.bf16 %v5777_v14  ;;  %3301 = vmatpush1.bf16.msra.mxu1 %v5830_v55  ;;  %3374 = vmatpush1.bf16.msra.mxu0 %v5833_v13  ;;  %v5844_v14 = vld [vmem:[%s6549_s3 + $0x44] ss:$16 sps:$4 sm:$0xff]   ;;  %v5853_v45 = vld [vmem:[%s6549_s3 + $0x6c] ss:$16 sps:$4 sm:$0xff]  }
 0xc4e   : > { %v5774_v4 = vunpack.i.h.bf16 %v5772_v0  ;;  %v5773_v33 = vunpack.i.l.bf16 %v5772_v0  ;;  %3302 = vmatprep.subr.bf16.mxu1 %v5838_v26  ;;  %3375 = vmatprep.subr.bf16.mxu0 %v5841_v23  ;;  %v5845_v0 = vld [vmem:[%s6549_s3 + $0x48] ss:$16 sps:$4 sm:$0xff]  }
 0xc4f   : > { %v2789_v56 = vsel %vm2782_vm2, %v2780_v29, %v5778_v6  ;;  %v2790_v61 = vsel %vm2782_vm2, %v2781_v27, %v5779_v20  ;;  %v5848_v20 = vld [vmem:[%s6549_s3 + $0x60] ss:$16 sps:$4 sm:$0xff]   ;;  %v5851_v6 = vld [vmem:[%s6549_s3 + $0x68] ss:$16 sps:$4 sm:$0xff]  }
 0xc50   : > { %v2787_v58 = vsel %vm2782_vm2, %v2778_v30, %v5773_v33  ;;  %v2788_v39 = vsel %vm2782_vm2, %v2779_v53, %v5774_v4  ;;  %v5856_v4 = vld [vmem:[%s6549_s3 + $0x84] ss:$16 sps:$4 sm:$0xff]   ;;  %v5859_v33 = vld [vmem:[%s6549_s3 + $0x8c] ss:$16 sps:$4 sm:$0xff]   ;;  %v5854_v27 = vld [vmem:[%s6549_s3 + $0x80] ss:$16 sps:$4 sm:$0xff]  }
 0xc51   : > { %3303 = vmatpush1.bf16.msra.mxu1 %v5836_v48  ;;  %3376 = vmatpush1.bf16.msra.mxu0 %v5839_v24  ;;  %v5857_v29 = vld [vmem:[%s6549_s3 + $0x88] ss:$16 sps:$4 sm:$0xff]  }
 0xc52   : > { %3304 = vmatprep.subr.bf16.mxu1 %v5844_v14  ;;  %3377 = vmatprep.subr.bf16.mxu0 %v5847_v3 }
 0xc55   : > { %3305 = vmatpush1.bf16.msra.mxu1 %v5842_v46  ;;  %3378 = vmatpush1.bf16.msra.mxu0 %v5845_v0 }
 0xc56   : > { %3306 = vmatprep.subr.bf16.mxu1 %v5850_v32  ;;  %3379 = vmatprep.subr.bf16.mxu0 %v5853_v45 }
 0xc59   : > { %3307 = vmatpush1.bf16.msra.mxu1 %v5848_v20  ;;  %3380 = vmatpush1.bf16.msra.mxu0 %v5851_v6 }
 0xc5a   : > { %3308 = vmatprep.subr.bf16.mxu1 %v5856_v4  ;;  %3381 = vmatprep.subr.bf16.mxu0 %v5859_v33 }
 0xc5d   : > { %3309 = vmatpush1.bf16.msra.mxu1 %v5854_v27  ;;  %3382 = vmatpush1.bf16.msra.mxu0 %v5857_v29 }
 0xc69   : > { %v5787_v38 = vpop.permute.xlu1 %5786 }
 0xc6a   : > { %v5789_v43 = vunpack.i.h.bf16 %v5787_v38  ;;  %v5788_v7 = vunpack.i.l.bf16 %v5787_v38  ;;  %v5782_v18 = vpop.permute.xlu0 %5781 }
 0xc6b   : > { %v5784_v60 = vunpack.i.h.bf16 %v5782_v18  ;;  %v5783_v41 = vunpack.i.l.bf16 %v5782_v18  ;;  %v5865_v18 = vld [vmem:[%s6549_s3 + $0xac] ss:$16 sps:$4 sm:$0xff]  }
 0xc6c   : > { %v2798_v59 = vsel %vm2791_vm3, %v2789_v56, %v5788_v7  ;;  %v2799_v37 = vsel %vm2791_vm3, %v2790_v61, %v5789_v43  ;;  %v5862_v7 = vld [vmem:[%s6549_s3 + $0xa4] ss:$16 sps:$4 sm:$0xff]   ;;  %v5860_v61 = vld [vmem:[%s6549_s3 + $0xa0] ss:$16 sps:$4 sm:$0xff]   ;;  %3383 = vmatprep.subr.bf16.mxu0 %v5865_v18 }
 0xc6d   : > { %v2796_v40 = vsel %vm2791_vm3, %v2787_v58, %v5783_v41  ;;  %v2797_v5 = vsel %vm2791_vm3, %v2788_v39, %v5784_v60  ;;  %v2803_v16 = vpack.c.bf16 %v2799_v37, %v2798_v59  ;;  %v5863_v60 = vld [vmem:[%s6549_s3 + $0xa8] ss:$16 sps:$4 sm:$0xff]   ;;  %v6202_v41 = vld [vmem:[#allocation2 + $0x20] sm:$0xff]  ;;  %3310 = vmatprep.subr.bf16.mxu1 %v5862_v7 }
 0xc6e   : > { %v2802_v49 = vpack.c.bf16 %v2797_v5, %v2796_v40  ;;  %3311 = vmatpush1.bf16.msra.mxu1 %v5860_v61  ;;  %v5866_v59 = vld [vmem:[%s6549_s3 + $0xc0] ss:$16 sps:$4 sm:$0xff]   ;;  %v5868_v37 = vld [vmem:[%s6549_s3 + $0xc4] ss:$16 sps:$4 sm:$0xff]   ;;  %v6203_v40 = vld [vmem:[#allocation2 + $0x28] sm:$0xff]  ;;  %3384 = vmatpush1.bf16.msra.mxu0 %v5863_v60 }
 0xc6f   : > { %3312 = vmatprep.subr.bf16.mxu1 %v5868_v37  ;;  %v7347_v60 = vld [vmem:[%s717_s18] ss:$0 sm:$0xff] }
 0xc70   : > { %5594 = vmatprep.mubr.bf16.mxu0 %v2802_v49  ;;  %v5871_v49 = vld [vmem:[%s6549_s3 + $0xcc] ss:$16 sps:$4 sm:$0xff]  }
 0xc71   : > { %5595 = vmatmul.mubr.bf16.gmra.mrb[44].mxu0 %v2803_v16  ;;  %v5869_v16 = vld [vmem:[%s6549_s3 + $0xc8] ss:$16 sps:$4 sm:$0xff]   ;;  %3385 = vmatprep.subr.bf16.mxu0 %v5871_v49 }
 0xc72   : > { %3405 = vmatprep.mubr.bf16.mxu0 %v6329_v47  ;;  %3313 = vmatpush1.bf16.msra.mxu1 %v5866_v59 }
 0xc73   : > { %3386 = vmatpush1.bf16.msra.mxu0 %v5869_v16  ;;  %v7356_v16 = vld [vmem:[%s720_s7] ss:$0 sm:$0xff]  ;;  %s8691_s7 = sld [smem:[#allocation48_spill]] (!%p5225_p9) }
 0xd1f   : > { %v5592_v57 = vpop.f32.mrb[40].mxu0 }
 0xd20   : > { %v2909_v22 = vpop.f32.mrb[41].mxu0  ;;  %v2918_v52 = vadd.f32 %v5592_v57, %v7259_v2  ;;  %v5874_v57 = vld [vmem:[%s6549_s3 + $0xe4] ss:$16 sps:$4 sm:$0xff]  }
 0xd21   : > { %v2910_v50 = vadd.f32 %v7259_v2, %v2909_v22  ;;  %v5593_v35 = vpop.f32.mrb[42].mxu0  ;;  %v5877_v22 = vld [vmem:[%s6549_s3 + $0xec] ss:$16 sps:$4 sm:$0xff]   ;;  %3314 = vmatprep.subr.bf16.mxu1 %v5874_v57 }
 0xd22   : > { %v2912_v17 = vpop.f32.mrb[43].mxu0  ;;  %v2921_v54 = vadd.f32 %v5593_v35, %v7259_v2  ;;  %v7280_v11 = vadd.f32 %v6201_v62, %v2918_v52  ;;  %3387 = vmatprep.subr.bf16.mxu0 %v5877_v22 }
 0xd23   : > { %v7262_v1 = vadd.f32 %v6198_v19, %v2910_v50  ;;  %v2913_v25 = vadd.f32 %v7259_v2, %v2912_v17  ;;  %v5872_v17 = vld [vmem:[%s6549_s3 + $0xe0] ss:$16 sps:$4 sm:$0xff]  }
 0xd24   : > { %v7272_v42 = vadd.f32 %v6200_v9, %v2921_v54  ;;  %8613 = vst [vmem:[#allocation19_spill] sm:$0xff] %v7280_v11  ;;  %v2976_v12 = vmul.f32 %v7280_v11, %v7280_v11  ;;  %v5875_v54 = vld [vmem:[%s6549_s3 + $0xe8] ss:$16 sps:$4 sm:$0xff]   ;;  %3315 = vmatpush1.bf16.msra.mxu1 %v5872_v17 }
 0xd25   : > { %8610 = vst [vmem:[#allocation16_spill] sm:$0xff] %v7262_v1  ;;  %v7266_v63 = vadd.f32 %v6199_v31, %v2913_v25  ;;  %2950 = vadd.xlane.f32.xlu0 %v7262_v1  ;;  %v2974_v8 = vmul.f32 %v7262_v1, %v7262_v1  ;;  %v6204_v31 = vld [vmem:[#allocation2 + $0x30] sm:$0xff]  ;;  %v6205_v9 = vld [vmem:[#allocation2 + $0x38] sm:$0xff]  ;;  %3388 = vmatpush1.bf16.msra.mxu0 %v5875_v54 }
 0xd26   : > { %8612 = vst [vmem:[#allocation18_spill] sm:$0xff] %v7272_v42  ;;  %v2977_v15 = vmul.f32 %v7272_v42, %v7272_v42 }
 0xd27   : > { %8611 = vst [vmem:[#allocation17_spill] sm:$0xff] %v7266_v63  ;;  %2952 = vadd.xlane.f32.xlu1 %v7266_v63  ;;  %v2975_v10 = vmul.f32 %v7266_v63, %v7266_v63 }
 0xd29   : > { %2982 = vadd.xlane.f32.xlu0 %v2974_v8 }
 0xd2b   : > { %2956 = vadd.xlane.f32.xlu1 %v7272_v42 }
 0xd2d   : > { %2984 = vadd.xlane.f32.xlu0 %v2975_v10 }
 0xd2f   : > { %2988 = vadd.xlane.f32.xlu1 %v2977_v15 }
 0xd31   : > { %2954 = vadd.xlane.f32.xlu0 %v7280_v11 }
 0xd35   : > { %2986 = vadd.xlane.f32.xlu0 %v2976_v12 }
 0xd44   : > { %v5596_v38 = vpop.f32.mrb[44].mxu0 }
 0xd45   : > { %v2925_v53 = vpop.f32.mrb[45].mxu0  ;;  %v2934_v50 = vadd.f32 %v5596_v38, %v7259_v2 }
 0xd46   : > { %v2926_v30 = vadd.f32 %v7259_v2, %v2925_v53  ;;  %v5597_v43 = vpop.f32.mrb[46].mxu0 }
 0xd47   : > { %v2928_v56 = vpop.f32.mrb[47].mxu0  ;;  %v2937_v19 = vadd.f32 %v5597_v43, %v7259_v2  ;;  %v7331_v8 = vadd.f32 %v6204_v31, %v2934_v50 }
 0xd48   : > { %v7310_v58 = vadd.f32 %v6202_v41, %v2926_v30  ;;  %v2929_v39 = vadd.f32 %v7259_v2, %v2928_v56 }
 0xd49   : > { %8616 = vst [vmem:[#allocation22_spill] sm:$0xff] %v7331_v8  ;;  %v7333_v52 = vadd.f32 %v6205_v9, %v2937_v19  ;;  %v2980_v2 = vmul.f32 %v7331_v8, %v7331_v8 }
 0xd4a   : > { %8614 = vst [vmem:[#allocation20_spill] sm:$0xff] %v7310_v58  ;;  %v7315_v5 = vadd.f32 %v6203_v40, %v2929_v39  ;;  %2958 = vadd.xlane.f32.xlu0 %v7310_v58  ;;  %v2978_v35 = vmul.f32 %v7310_v58, %v7310_v58 }
 0xd4b   : > { %8617 = vst [vmem:[#allocation23_spill] sm:$0xff] %v7333_v52  ;;  %v2981_v10 = vmul.f32 %v7333_v52, %v7333_v52 }
 0xd4c   : > { %8615 = vst [vmem:[#allocation21_spill] sm:$0xff] %v7315_v5  ;;  %2960 = vadd.xlane.f32.xlu1 %v7315_v5  ;;  %v2979_v25 = vmul.f32 %v7315_v5, %v7315_v5 }
 0xd4e   : > { %2990 = vadd.xlane.f32.xlu0 %v2978_v35 }
 0xd50   : > { %2992 = vadd.xlane.f32.xlu1 %v2979_v25 }
 0xd52   : > { %2962 = vadd.xlane.f32.xlu0 %v7331_v8 }
 0xd54   : > { %2964 = vadd.xlane.f32.xlu1 %v7333_v52 }
 0xd56   : > { %2994 = vadd.xlane.f32.xlu0 %v2980_v2 }
 0xd58   : > { %2996 = vadd.xlane.f32.xlu1 %v2981_v10 }
 0xdb2   : > { %v2951_v15 = vpop.xlane.xlu0 %2950 }
 0xdb3   : > { %v2966_v62 = vmul.f32 0.0078125, %v2951_v15 }
 0xdb4   : > { %v2953_v51 = vpop.xlane.xlu1 %2952 }
 0xdb5   : > { %v3006_v12 = vmul.f32 %v2966_v62, %v2966_v62  ;;  %v2967_v55 = vmul.f32 0.0078125, %v2953_v51  ;;  %v3022_v7 = vsub.f32 %v7262_v1, %v2966_v62 }
 0xdb6   : > { %v2983_v21 = vpop.xlane.xlu0 %2982 }
 0xdb7   : > { %v2998_v13 = vmul.f32 0.0078125, %v2983_v21  ;;  %v3007_v14 = vmul.f32 %v2967_v55, %v2967_v55  ;;  %v3023_v41 = vsub.f32 %v7266_v63, %v2967_v55 }
 0xdb8   : > { %v2957_v26 = vpop.xlane.xlu1 %2956 }
 0xdb9   : > { %v3014_v23 = vsub.f32 %v2998_v13, %v3006_v12  ;;  %v2969_v48 = vmul.f32 0.0078125, %v2957_v26 }
 0xdba   : > { %v2985_v24 = vpop.xlane.xlu0 %2984 }
 0xdbb   : > { %v3030_v3 = vadd.f32 1e-05, %v3014_v23  ;;  %v2999_v46 = vmul.f32 0.0078125, %v2985_v24  ;;  %v3009_v32 = vmul.f32 %v2969_v48, %v2969_v48  ;;  %v3025_v49 = vsub.f32 %v7272_v42, %v2969_v48 }
 0xdbc   : > { %v2989_v0 = vpop.xlane.xlu1 %2988 }
 0xdbd   : > { %6054 = vrsqrt.f32 %v3030_v3  ;;  %v3015_v45 = vsub.f32 %v2999_v46, %v3007_v14  ;;  %v3001_v20 = vmul.f32 0.0078125, %v2989_v0 }
 0xdbe   : > { %v2955_v6 = vpop.xlane.xlu0 %2954 }
 0xdbf   : > { %v3031_v4 = vadd.f32 1e-05, %v3015_v45  ;;  %v3017_v33 = vsub.f32 %v3001_v20, %v3009_v32  ;;  %v2968_v27 = vmul.f32 0.0078125, %v2955_v6 }
 0xdc1   : > { %6056 = vrsqrt.f32 %v3031_v4  ;;  %v3033_v29 = vadd.f32 1e-05, %v3017_v33  ;;  %v3008_v53 = vmul.f32 %v2968_v27, %v2968_v27  ;;  %v3024_v17 = vsub.f32 %v7280_v11, %v2968_v27 }
 0xdc2   : > { %v2987_v38 = vpop.xlane.xlu0 %2986 }
 0xdc3   : > { %6058 = vrsqrt.f32 %v3033_v29  ;;  %v3000_v30 = vmul.f32 0.0078125, %v2987_v38 }
 0xdc5   : > { %v3016_v43 = vsub.f32 %v3000_v30, %v3008_v53 }
 0xdc7   : > { %v6055_v18 = vpop.eup %6054  ;;  %v3032_v56 = vadd.f32 1e-05, %v3016_v43 }
 0xdc8   : > { %v3046_v61 = vmul.f32 %v6055_v18, %v3022_v7 }
 0xdc9   : > { %6060 = vrsqrt.f32 %v3032_v56 }
 0xdca   : > { %v3060_v37 = vmul.f32 %v7347_v60, %v3046_v61 }
 0xdcb   : > { %v6057_v39 = vpop.eup %6056 }
 0xdcc   : > { %v3047_v59 = vmul.f32 %v6057_v39, %v3023_v41  ;;  %v3074_v22 = vadd.f32 %v7356_v16, %v3060_v37 }
 0xdcd   : > { %v6059_v40 = vpop.eup %6058 }
 0xdce   : > { %v3061_v57 = vmul.f32 %v7347_v60, %v3047_v59  ;;  %v3049_v35 = vmul.f32 %v6059_v40, %v3025_v49 }
 0xdd0   : > { %v3075_v50 = vadd.f32 %v7356_v16, %v3061_v57  ;;  %v3063_v31 = vmul.f32 %v7347_v60, %v3049_v35 }
 0xdd2   : > { %v3082_v19 = vpack.c.bf16 %v3075_v50, %v3074_v22  ;;  %v3077_v62 = vadd.f32 %v7356_v16, %v3063_v31 }
 0xdd3   : > { %v6061_v25 = vpop.eup %6060 }
 0xdd4   : > { %3333 = vmatmul.mubr.bf16.vlgmr.msra.gmra.mrb[48].mxu1 %v3082_v19  ;;  %3406 = vmatmul.mubr.bf16.vlgmr.msra.gmra.mrb[48].mxu0 %v3082_v19  ;;  %v3048_v54 = vmul.f32 %v6061_v25, %v3024_v17 }
 0xdd5   : > { %3342 = vmatprep.mubr.bf16.mxu1 %v6329_v47  ;;  %3415 = vmatprep.mubr.bf16.mxu0 %v6329_v47 }
 0xdd6   : > { %v3062_v9 = vmul.f32 %v7347_v60, %v3048_v54 }
 0xdd7   : > { %v2959_v2 = vpop.xlane.xlu0 %2958 }
 0xdd8   : > { %v2970_v10 = vmul.f32 0.0078125, %v2959_v2  ;;  %v3076_v15 = vadd.f32 %v7356_v16, %v3062_v9 }
 0xdd9   : > { %v2961_v51 = vpop.xlane.xlu1 %2960 }
 0xdda   : > { %v2971_v21 = vmul.f32 0.0078125, %v2961_v51  ;;  %v3083_v12 = vpack.c.bf16 %v3077_v62, %v3076_v15  ;;  %v3010_v13 = vmul.f32 %v2970_v10, %v2970_v10  ;;  %v3026_v56 = vsub.f32 %v7310_v58, %v2970_v10  ;;  %v5878_v51 = vld [vmem:[%s6560_s1 + $0x40] sm:$0xff]  }
 0xddb   : > { %v2991_v55 = vpop.xlane.xlu0 %2990  ;;  %5330 = vmatprep.subr.bf16.mxu1 %v5878_v51 }
 0xddc   : > { %3343 = vmatmul.mubr.bf16.gmra.mrb[52].mxu1 %v3083_v12  ;;  %3416 = vmatmul.mubr.bf16.gmra.mrb[52].mxu0 %v3083_v12  ;;  %v3002_v26 = vmul.f32 0.0078125, %v2991_v55  ;;  %v3011_v48 = vmul.f32 %v2971_v21, %v2971_v21  ;;  %v3027_v41 = vsub.f32 %v7315_v5, %v2971_v21  ;;  %v5879_v21 = vld [vmem:[%s6560_s1 + $0xc0] sm:$0xff]  }
 0xddd   : > { %v2993_v23 = vpop.xlane.xlu1 %2992  ;;  %3352 = vmatprep.mubr.bf16.mxu1 %v6329_v47  ;;  %3425 = vmatprep.mubr.bf16.mxu0 %v6329_v47  ;;  %v5880_v12 = vld [vmem:[%s6560_s1] sm:$0xff]  }
 0xdde   : > { %v3018_v24 = vsub.f32 %v3002_v26, %v3010_v13  ;;  %v3003_v14 = vmul.f32 0.0078125, %v2993_v23  ;;  %v5881_v55 = vld [vmem:[%s6560_s1 + $0x80] sm:$0xff]   ;;  %5370 = vmatprep.subr.bf16.mxu0 %v5879_v21  ;;  %5331 = vmatpush3.bf16.msra.mxu1 %v5880_v12  ;;  %v5885_v13 = vld [vmem:[%s6560_s1 + $0x88] sm:$0xff]   ;;  %v5886_v26 = vld [vmem:[%s6560_s1 + $0x50] sm:$0xff]  }
 0xddf   : > { %v2963_v3 = vpop.xlane.xlu0 %2962  ;;  %5371 = vmatpush3.bf16.msra.mxu0 %v5881_v55  ;;  %v5887_v23 = vld [vmem:[%s6560_s1 + $0xd0] sm:$0xff]  }
 0xde0   : > { %v3034_v46 = vadd.f32 1e-05, %v3018_v24  ;;  %v3019_v0 = vsub.f32 %v3003_v14, %v3011_v48  ;;  %v2972_v32 = vmul.f32 0.0078125, %v2963_v3  ;;  %v5888_v48 = vld [vmem:[%s6560_s1 + $0x10] sm:$0xff]   ;;  %v5890_v14 = vld [vmem:[%s6560_s1 + $0x58] sm:$0xff]  }
 0xde1   : > { %v2965_v45 = vpop.xlane.xlu1 %2964  ;;  %v5889_v24 = vld [vmem:[%s6560_s1 + $0x90] sm:$0xff]   ;;  %v5891_v3 = vld [vmem:[%s6560_s1 + $0xd8] sm:$0xff]  }
 0xde2   : > { %6062 = vrsqrt.f32 %v3034_v46  ;;  %v3035_v20 = vadd.f32 1e-05, %v3019_v0  ;;  %v2973_v6 = vmul.f32 0.0078125, %v2965_v45  ;;  %v3012_v33 = vmul.f32 %v2972_v32, %v2972_v32  ;;  %v5892_v46 = vld [vmem:[%s6560_s1 + $0x18] sm:$0xff]  }
 0xde3   : > { %v2995_v4 = vpop.xlane.xlu0 %2994  ;;  %v3028_v57 = vsub.f32 %v7331_v8, %v2972_v32  ;;  %v5893_v0 = vld [vmem:[%s6560_s1 + $0x98] sm:$0xff]   ;;  %v3118_v32 = vld [vmem:[%s6555_s24] sm:$0xf]  ;;  %v3134_v45 = vsub.s32 3, %v6701_v28 }
 0xde4   : > { %6064 = vrsqrt.f32 %v3035_v20  ;;  %v3004_v27 = vmul.f32 0.0078125, %v2995_v4  ;;  %v3013_v38 = vmul.f32 %v2973_v6, %v2973_v6  ;;  %v3029_v17 = vsub.f32 %v7333_v52, %v2973_v6 }
 0xde5   : > { %v2997_v29 = vpop.xlane.xlu1 %2996  ;;  %v7405_v20 = vrot.slane %v3118_v32, %v926_v34  ;;  %v7409_v6 = vrot.slane %v3118_v32, %v934_v44  ;;  %v7413_v4 = vrot.slane %v3118_v32, %v930_v36 }
 0xde6   : > { %v3020_v53 = vsub.f32 %v3004_v27, %v3012_v33  ;;  %v3005_v30 = vmul.f32 0.0078125, %v2997_v29  ;;  %v7415_v33 = vrot.slane %v3118_v32, %v3134_v45 }
 0xde8   : > { %v3036_v43 = vadd.f32 1e-05, %v3020_v53  ;;  %v3021_v7 = vsub.f32 %v3005_v30, %v3013_v38 }
 0xdea   : > { %6066 = vrsqrt.f32 %v3036_v43  ;;  %v3037_v18 = vadd.f32 1e-05, %v3021_v7 }
 0xdec   : > { %v6063_v61 = vpop.eup %6062  ;;  %6068 = vrsqrt.f32 %v3037_v18 }
 0xded   : > { %v3050_v39 = vmul.f32 %v6063_v61, %v3026_v56 }
 0xdee   : > { %v6065_v59 = vpop.eup %6064 }
 0xdef   : > { %v3051_v37 = vmul.f32 %v6065_v59, %v3027_v41  ;;  %v3064_v40 = vmul.f32 %v7347_v60, %v3050_v39 }
 0xdf1   : > { %v3065_v49 = vmul.f32 %v7347_v60, %v3051_v37  ;;  %v3078_v22 = vadd.f32 %v7356_v16, %v3064_v40 }
 0xdf3   : > { %v3079_v50 = vadd.f32 %v7356_v16, %v3065_v49 }
 0xdf4   : > { %v6067_v35 = vpop.eup %6066 }
 0xdf5   : > { %v3084_v19 = vpack.c.bf16 %v3079_v50, %v3078_v22  ;;  %v3052_v25 = vmul.f32 %v6067_v35, %v3028_v57 }
 0xdf6   : > { %v6069_v54 = vpop.eup %6068 }
 0xdf7   : > { %3353 = vmatmul.mubr.bf16.gmra.mrb[56].mxu1 %v3084_v19  ;;  %3426 = vmatmul.mubr.bf16.gmra.mrb[56].mxu0 %v3084_v19  ;;  %v3053_v31 = vmul.f32 %v6069_v54, %v3029_v17  ;;  %v3066_v9 = vmul.f32 %v7347_v60, %v3052_v25  ;;  %v5894_v25 = vld [vmem:[%s6560_s1 + $0x60] sm:$0xff]  }
 0xdf8   : > { %3362 = vmatprep.mubr.bf16.mxu1 %v6329_v47  ;;  %3435 = vmatprep.mubr.bf16.mxu0 %v6329_v47  ;;  %v5882_v47 = vld [vmem:[%s6560_s1 + $0x48] sm:$0xff]   ;;  %v5895_v54 = vld [vmem:[%s6560_s1 + $0xe0] sm:$0xff]  }
 0xdf9   : > { %v3067_v2 = vmul.f32 %v7347_v60, %v3053_v31  ;;  %v3080_v10 = vadd.f32 %v7356_v16, %v3066_v9  ;;  %v5883_v60 = vld [vmem:[%s6560_s1 + $0xc8] sm:$0xff]   ;;  %5332 = vmatprep.subr.bf16.mxu1 %v5882_v47 }
 0xdfa   : > { %5372 = vmatprep.subr.bf16.mxu0 %v5883_v60 }
 0xdfb   : > { %v3081_v15 = vadd.f32 %v7356_v16, %v3067_v2  ;;  %v5884_v16 = vld [vmem:[%s6560_s1 + $0x8] sm:$0xff]   ;;  %5373 = vmatpush3.bf16.msra.mxu0 %v5885_v13  ;;  %v5897_v13 = vld [vmem:[%s6560_s1 + $0xa0] sm:$0xff]  }
 0xdfc   : > { %5333 = vmatpush3.bf16.msra.mxu1 %v5884_v16  ;;  %5374 = vmatprep.subr.bf16.mxu0 %v5887_v23  ;;  %v5896_v16 = vld [vmem:[%s6560_s1 + $0x20] sm:$0xff]  }
 0xdfd   : > { %v3085_v62 = vpack.c.bf16 %v3081_v15, %v3080_v10  ;;  %5334 = vmatprep.subr.bf16.mxu1 %v5886_v26 }
 0xdff   : > { %3363 = vmatmul.mubr.bf16.gmra.mrb[60].mxu1 %v3085_v62  ;;  %3436 = vmatmul.mubr.bf16.gmra.mrb[60].mxu0 %v3085_v62 }
 0xe00   : > { %5335 = vmatpush3.bf16.msra.mxu1 %v5888_v48  ;;  %5375 = vmatpush3.bf16.msra.mxu0 %v5889_v24 }
 0xe01   : > { %5336 = vmatprep.subr.bf16.mxu1 %v5890_v14  ;;  %5376 = vmatprep.subr.bf16.mxu0 %v5891_v3 }
 0xe04   : > { %5337 = vmatpush3.bf16.msra.mxu1 %v5892_v46  ;;  %5377 = vmatpush3.bf16.msra.mxu0 %v5893_v0 }
 0xe05   : > { %5338 = vmatprep.subr.bf16.mxu1 %v5894_v25  ;;  %5378 = vmatprep.subr.bf16.mxu0 %v5895_v54 }
 0xe08   : > { %5339 = vmatpush3.bf16.msra.mxu1 %v5896_v16  ;;  %5379 = vmatpush3.bf16.msra.mxu0 %v5897_v13 }
 0xea7   : > { %v3334_v27 = vpop.f32.mrb[48].mxu1  ;;  %v3407_v29 = vpop.f32.mrb[48].mxu0 }
 0xea8   : > { %v7418_v38 = vadd.f32 %v3334_v27, %v7405_v20  ;;  %v7421_v53 = vadd.f32 %v3407_v29, %v7409_v6  ;;  %v3336_v34 = vpop.f32.mrb[49].mxu1  ;;  %v3409_v30 = vpop.f32.mrb[49].mxu0 }
 0xea9   : > { %v7424_v43 = vadd.f32 %v3336_v34, %v7413_v4  ;;  %v7427_v44 = vadd.f32 %v3409_v30, %v7415_v33  ;;  %v3338_v28 = vpop.f32.mrb[50].mxu1  ;;  %v3411_v36 = vpop.f32.mrb[50].mxu0 }
 0xeaa   : > { %v7430_v7 = vmul.f32 0.70710677, %v7418_v38  ;;  %v7433_v18 = vmul.f32 0.70710677, %v7421_v53  ;;  %v3340_v37 = vpop.f32.mrb[51].mxu1  ;;  %v3413_v22 = vpop.f32.mrb[51].mxu0  ;;  %v7464_v15 = vadd.f32 %v3338_v28, %v7405_v20  ;;  %v7477_v47 = vadd.f32 %v3411_v36, %v7409_v6 }
 0xeab   : > { %v7436_v56 = vmul.f32 0.70710677, %v7424_v43  ;;  %v7446_v59 = vmul.f32 0.70710677, %v7427_v44  ;;  %v7484_v26 = vadd.f32 %v3340_v37, %v7413_v4  ;;  %v7495_v45 = vadd.f32 %v3413_v22, %v7415_v33 }
 0xeac   : > { %v3574_v61 = vand.u32 2147483647, %v7430_v7  ;;  %v7440_v41 = vand.u32 2147483647, %v7433_v18  ;;  %v7474_v55 = vmul.f32 0.70710677, %v7464_v15 }
 0xead   : > { %v7443_v39 = vand.u32 2147483647, %v7436_v56  ;;  %v7457_v31 = vand.u32 2147483647, %v7446_v59  ;;  %v7488_v24 = vmul.f32 0.70710677, %v7477_v47 }
 0xeae   : > { %v3606_v40 = vmul.f32 0.3275911, %v3574_v61  ;;  %v3608_v49 = vmul.f32 0.3275911, %v7440_v41  ;;  %v3578_v48 = vand.u32 2147483647, %v7474_v55 }
 0xeaf   : > { %v3607_v57 = vmul.f32 0.3275911, %v7443_v39  ;;  %v7450_v17 = vpop.f32.mrb[52].mxu1  ;;  %v7452_v19 = vpop.f32.mrb[52].mxu0  ;;  %v3609_v21 = vmul.f32 0.3275911, %v7457_v31 }
 0xeb0   : > { %v3638_v50 = vadd.f32 1.0, %v3606_v40  ;;  %v3640_v35 = vadd.f32 1.0, %v3608_v49  ;;  %v7459_v9 = vpop.f32.mrb[53].mxu1  ;;  %v7461_v2 = vpop.f32.mrb[53].mxu0  ;;  %v3610_v14 = vmul.f32 0.3275911, %v3578_v48 }
 0xeb1   : > { %v3639_v10 = vadd.f32 1.0, %v3607_v57  ;;  %v7466_v62 = vpop.f32.mrb[54].mxu1  ;;  %v7468_v51 = vpop.f32.mrb[54].mxu0  ;;  %v3641_v23 = vadd.f32 1.0, %v3609_v21  ;;  %v4022_v3 = vsub.f32 0.0, %v3574_v61  ;;  %v4024_v30 = vsub.f32 0.0, %v7440_v41 }
 0xeb2   : > { %6070 = vrcp.f32 %v3638_v50  ;;  %v7471_v12 = vpop.f32.mrb[55].mxu1  ;;  %v7479_v60 = vpop.f32.mrb[55].mxu0  ;;  %v3580_v46 = vand.u32 2147483647, %v7488_v24  ;;  %v7492_v0 = vmul.f32 0.70710677, %v7484_v26 }
 0xeb3   : > { %6072 = vrcp.f32 %v3640_v35  ;;  %v3642_v32 = vadd.f32 1.0, %v3610_v14  ;;  %v4054_v37 = vmul.f32 %v4022_v3, %v3574_v61  ;;  %v7509_v22 = vmul.f32 0.70710677, %v7495_v45  ;;  %v5898_v14 = vld [vmem:[%s6560_s1 + $0x68] sm:$0xff]  }
 0xeb4   : > { %6074 = vrcp.f32 %v3639_v10  ;;  %v3612_v27 = vmul.f32 0.3275911, %v3580_v46  ;;  %v7498_v29 = vand.u32 2147483647, %v7492_v0  ;;  %v7514_v54 = vmul.f32 0.5, %v7418_v38  ;;  %v5899_v3 = vld [vmem:[%s6560_s1 + $0xe8] sm:$0xff]   ;;  %5340 = vmatprep.subr.bf16.mxu1 %v5898_v14 }
 0xeb5   : > { %6076 = vrcp.f32 %v3641_v23  ;;  %v7517_v61 = vand.u32 2147483647, %v7509_v22  ;;  %v4086_v16 = vmul.f32 1.442695, %v4054_v37  ;;  %v4056_v13 = vmul.f32 %v4024_v30, %v7440_v41  ;;  %5380 = vmatprep.subr.bf16.mxu0 %v5899_v3 }
 0xeb6   : > { %6078 = vrcp.f32 %v3642_v32  ;;  %v3644_v40 = vadd.f32 1.0, %v3612_v27  ;;  %v3611_v49 = vmul.f32 0.3275911, %v7498_v29  ;;  %v4026_v23 = vsub.f32 0.0, %v3578_v48 }
 0xeb7   : > { %v3613_v38 = vmul.f32 0.3275911, %v7517_v61  ;;  %v7533_v37 = vmul.f32 0.5, %v7427_v44  ;;  %vm3510_vm4 = vcmp.lt.f32.partialorder %v7430_v7, 0.0  ;;  %vm3512_vm5 = vcmp.lt.f32.partialorder %v7433_v18, 0.0 }
 0xeb8   : > { %6080 = vrcp.f32 %v3644_v40  ;;  %v3643_v35 = vadd.f32 1.0, %v3611_v49  ;;  %v7527_v40 = vmul.f32 0.5, %v7421_v53  ;;  %v7530_v49 = vmul.f32 0.5, %v7424_v43 }
 0xeb9   : > { %8618 = vst [vmem:[#allocation24_spill] sm:$0xff] %v7533_v37  ;;  %v4090_v53 = vmul.f32 1.442695, %v4056_v13  ;;  %v7542_v43 = vadd.f32 %v7450_v17, %v7405_v20  ;;  %v4058_v14 = vmul.f32 %v4026_v23, %v3578_v48  ;;  %v4025_v13 = vsub.f32 0.0, %v7457_v31 }
 0xeba   : > { %6082 = vrcp.f32 %v3643_v35  ;;  %vm3514_vm6 = vcmp.lt.f32.partialorder %v7474_v55, 0.0  ;;  %vm3516_vm7 = vcmp.lt.f32.partialorder %v7488_v24, 0.0  ;;  %vm3511_vm8 = vcmp.lt.f32.partialorder %v7436_v56, 0.0 }
 0xebb   : > { %6084 = vpow2.f32 %v4086_v16  ;;  %v7555_v48 = vmul.f32 0.70710677, %v7542_v43  ;;  %vm3513_vm9 = vcmp.lt.f32.partialorder %v7446_v59, 0.0  ;;  %vm3515_vm10 = vcmp.lt.f32.partialorder %v7492_v0, 0.0 }
 0xebc   : > { %v7500_v34 = vpop.eup %6070  ;;  %v7707_v56 = vadd.f32 %v7468_v51, %v7409_v6  ;;  %vm3517_vm11 = vcmp.lt.f32.partialorder %v7509_v22, 0.0  ;;  %v5906_v51 = vld [vmem:[%s6560_s1 + $0x78] sm:$0xff]  }
 0xebd   : > { %v7503_v28 = vpop.eup %6072  ;;  %v3734_v36 = vmul.f32 1.0614054, %v7500_v34  ;;  %v7573_v63 = vand.u32 2147483647, %v7555_v48  ;;  %vm3518_vm12 = vcmp.lt.f32.partialorder %v7555_v48, 0.0 }
 0xebe   : > { %v3736_v57 = vmul.f32 1.0614054, %v7503_v28  ;;  %v7511_v25 = vpop.eup %6074 }
 0xebf   : > { %v3766_v50 = vadd.f32 -1.4531521, %v3734_v36  ;;  %v3735_v27 = vmul.f32 1.0614054, %v7511_v25  ;;  %v7535_v41 = vpop.eup %6076  ;;  %v4030_v22 = vsub.f32 0.0, %v7573_v63 }
 0xec0   : > { %v3768_v10 = vadd.f32 -1.4531521, %v3736_v57  ;;  %v4028_v57 = vsub.f32 0.0, %v3580_v46  ;;  %v7544_v44 = vpop.eup %6078 }
 0xec1   : > { %v3798_v21 = vmul.f32 %v7500_v34, %v3766_v50  ;;  %v3645_v50 = vadd.f32 1.0, %v3613_v38  ;;  %v3738_v38 = vmul.f32 1.0614054, %v7544_v44 }
 0xec2   : > { %v3800_v32 = vmul.f32 %v7503_v28, %v3768_v10  ;;  %v4060_v52 = vmul.f32 %v4028_v57, %v3580_v46  ;;  %v7551_v17 = vpop.eup %6080 }
 0xec3   : > { %v3830_v36 = vadd.f32 1.4214138, %v3798_v21  ;;  %v3767_v21 = vadd.f32 -1.4531521, %v3735_v27  ;;  %6086 = vrcp.f32 %v3645_v50  ;;  %v4094_v50 = vmul.f32 1.442695, %v4058_v14 }
 0xec4   : > { %v3832_v30 = vadd.f32 1.4214138, %v3800_v32  ;;  %v3737_v32 = vmul.f32 1.0614054, %v7535_v41  ;;  %6088 = vpow2.f32 %v4090_v53  ;;  %v7569_v58 = vpop.eup %6082 }
 0xec5   : > { %v3862_v35 = vmul.f32 %v7500_v34, %v3830_v36  ;;  %v4023_v36 = vsub.f32 0.0, %v7443_v39  ;;  %v3799_v27 = vmul.f32 %v7511_v25, %v3767_v21  ;;  %v4098_v21 = vmul.f32 1.442695, %v4060_v52 }
 0xec6   : > { %v3864_v10 = vmul.f32 %v7503_v28, %v3832_v30  ;;  %v3770_v30 = vadd.f32 -1.4531521, %v3738_v38  ;;  %v3769_v57 = vadd.f32 -1.4531521, %v3737_v32  ;;  %6090 = vpow2.f32 %v4094_v50  ;;  %v5900_v50 = vld [vmem:[%s6560_s1 + $0x28] sm:$0xff]  }
 0xec7   : > { %v3894_v3 = vadd.f32 -0.28449672, %v3862_v35  ;;  %v3740_v35 = vmul.f32 1.0614054, %v7551_v17  ;;  %6092 = vpow2.f32 %v4098_v21  ;;  %5341 = vmatpush3.bf16.msra.mxu1 %v5900_v50 }
 0xec8   : > { %v3896_v16 = vadd.f32 -0.28449672, %v3864_v10 }
 0xec9   : > { %v3926_v8 = vmul.f32 %v7500_v34, %v3894_v3  ;;  %v3802_v3 = vmul.f32 %v7544_v44, %v3770_v30  ;;  %v3772_v42 = vadd.f32 -1.4531521, %v3740_v35  ;;  %v3831_v30 = vadd.f32 1.4214138, %v3799_v27 }
 0xeca   : > { %v3928_v23 = vmul.f32 %v7503_v28, %v3896_v16  ;;  %v7560_v10 = vpop.f32.mrb[56].mxu1  ;;  %v7562_v5 = vpop.f32.mrb[56].mxu0 }
 0xecb   : > { %8619 = vst [vmem:[#allocation25_spill] sm:$0xff] %v7562_v5  ;;  %v3958_v46 = vadd.f32 0.2548296, %v3926_v8  ;;  %v7565_v53 = vpop.f32.mrb[57].mxu1  ;;  %v7567_v38 = vpop.f32.mrb[57].mxu0  ;;  %v3804_v1 = vmul.f32 %v7551_v17, %v3772_v42  ;;  %v5901_v42 = vld [vmem:[%s6560_s1 + $0xa8] sm:$0xff]  }
 0xecc   : > { %8620 = vst [vmem:[#allocation26_spill] sm:$0xff] %v7565_v53  ;;  %8621 = vst [vmem:[#allocation27_spill] sm:$0xff] %v7567_v38  ;;  %v3960_v16 = vadd.f32 0.2548296, %v3928_v23  ;;  %v3834_v11 = vadd.f32 1.4214138, %v3802_v3  ;;  %5381 = vmatpush3.bf16.msra.mxu0 %v5901_v42 }
 0xecd   : > { %v3990_v14 = vmul.f32 %v7500_v34, %v3958_v46  ;;  %v7575_v8 = vpop.f32.mrb[58].mxu1  ;;  %v7577_v32 = vpop.f32.mrb[58].mxu0  ;;  %v3739_v23 = vmul.f32 1.0614054, %v7569_v58  ;;  %v8576_v46 = vmov 1.0  }
 0xece   : > { %8622 = vst [vmem:[#allocation28_spill] sm:$0xff] %v7575_v8  ;;  %8623 = vst [vmem:[#allocation29_spill] sm:$0xff] %v7577_v32  ;;  %v7581_v35 = vpop.f32.mrb[59].mxu1  ;;  %v7583_v52 = vpop.f32.mrb[59].mxu0  ;;  %v3542_v3 = vsel %vm3510_vm4, -1.0, %v8576_v46  ;;  %v4055_v8 = vmul.f32 %v4023_v36, %v7443_v39  ;;  %v3801_v32 = vmul.f32 %v7535_v41, %v3769_v57  ;;  %v3866_v27 = vmul.f32 %v7544_v44, %v3834_v11 }
 0xecf   : > { %8624 = vst [vmem:[#allocation30_spill] sm:$0xff] %v7581_v35  ;;  %8625 = vst [vmem:[#allocation31_spill] sm:$0xff] %v7583_v52  ;;  %v6085_v34 = vpop.eup %6084  ;;  %v3544_v52 = vsel %vm3512_vm5, -1.0, %v8576_v46  ;;  %v3992_v35 = vmul.f32 %v7503_v28, %v3960_v16  ;;  %v3836_v53 = vadd.f32 1.4214138, %v3804_v1  ;;  %v3863_v11 = vmul.f32 %v7511_v25, %v3831_v30 }
 0xed0   : > { %v7593_v38 = vpop.eup %6086  ;;  %v3771_v5 = vadd.f32 -1.4531521, %v3739_v23  ;;  %v4150_v7 = vmul.f32 %v6085_v34, %v3990_v14  ;;  %v3898_v37 = vadd.f32 -0.28449672, %v3866_v27  ;;  %v3614_v39 = vmul.f32 0.3275911, %v7573_v63 }
 0xed1   : > { %v4057_v36 = vmul.f32 %v4025_v13, %v7457_v31  ;;  %v3868_v57 = vmul.f32 %v7551_v17, %v3836_v53  ;;  %v3741_v18 = vmul.f32 1.0614054, %v7593_v38  ;;  %v6089_v1 = vpop.eup %6088  ;;  %v4088_v16 = vmul.f32 1.442695, %v4055_v8 }
 0xed2   : > { %v7604_v46 = vpop.f32.mrb[60].mxu1  ;;  %v7606_v28 = vpop.f32.mrb[60].mxu0  ;;  %v3833_v14 = vadd.f32 1.4214138, %v3801_v32  ;;  %v3930_v21 = vmul.f32 %v7544_v44, %v3898_v37  ;;  %v4152_v30 = vmul.f32 %v6089_v1, %v3992_v35  ;;  %v3803_v31 = vmul.f32 %v7569_v58, %v3771_v5 }
 0xed3   : > { %8626 = vst [vmem:[#allocation32_spill] sm:$0xff] %v7604_v46  ;;  %8627 = vst [vmem:[#allocation33_spill] sm:$0xff] %v7606_v28  ;;  %v7609_v23 = vpop.f32.mrb[61].mxu1  ;;  %v7611_v34 = vpop.f32.mrb[61].mxu0  ;;  %v3900_v27 = vadd.f32 -0.28449672, %v3868_v57  ;;  %6094 = vpow2.f32 %v4088_v16 }
 0xed4   : > { %8628 = vst [vmem:[#allocation34_spill] sm:$0xff] %v7609_v23  ;;  %v3773_v13 = vadd.f32 -1.4531521, %v3741_v18  ;;  %v4182_v53 = vsub.f32 1.0, %v4150_v7  ;;  %v3962_v50 = vadd.f32 0.2548296, %v3930_v21  ;;  %v3865_v35 = vmul.f32 %v7535_v41, %v3833_v14  ;;  %v6091_v55 = vpop.eup %6090 }
 0xed5   : > { %v3646_v42 = vadd.f32 1.0, %v3614_v39  ;;  %v7615_v28 = vpop.f32.mrb[62].mxu1  ;;  %v3895_v8 = vadd.f32 -0.28449672, %v3863_v11  ;;  %v4092_v32 = vmul.f32 1.442695, %v4057_v36  ;;  %v3932_v23 = vmul.f32 %v7551_v17, %v3900_v27  ;;  %v6093_v27 = vpop.eup %6092 }
 0xed6   : > { %v3450_v37 = vmul.f32 0.5, %v7464_v15  ;;  %v7619_v46 = vpop.f32.mrb[62].mxu0  ;;  %v3994_v5 = vmul.f32 %v7544_v44, %v3962_v50  ;;  %v3805_v7 = vmul.f32 %v7593_v38, %v3773_v13  ;;  %v4184_v57 = vsub.f32 1.0, %v4152_v30 }
 0xed7   : > { %v8629_v39 = vmov 1.0   ;;  %v3964_v1 = vadd.f32 0.2548296, %v3932_v23  ;;  %v3835_v11 = vadd.f32 1.4214138, %v3803_v31  ;;  %v4214_v36 = vmul.f32 %v4182_v53, %v3542_v3 }
 0xed8   : > { %v3546_v18 = vsel %vm3514_vm6, -1.0, %v8629_v39  ;;  %v4154_v21 = vmul.f32 %v6091_v55, %v3994_v5  ;;  %6096 = vrcp.f32 %v3646_v42  ;;  %v7627_v15 = vadd.f32 %v7452_v19, %v7409_v6 }
 0xed9   : > { %v3927_v16 = vmul.f32 %v7511_v25, %v3895_v8  ;;  %6098 = vpow2.f32 %v4092_v32  ;;  %v3996_v44 = vmul.f32 %v7551_v17, %v3964_v1  ;;  %v4027_v14 = vsub.f32 0.0, %v7498_v29  ;;  %v7642_v32 = vpop.f32.mrb[63].mxu1 }
 0xeda   : > { %v3897_v30 = vadd.f32 -0.28449672, %v3865_v35  ;;  %v4186_v13 = vsub.f32 1.0, %v4154_v21  ;;  %v3837_v23 = vadd.f32 1.4214138, %v3805_v7  ;;  %v4216_v3 = vmul.f32 %v4184_v57, %v3544_v52 }
 0xedb   : > { %v4156_v31 = vmul.f32 %v6093_v27, %v3996_v44  ;;  %v3867_v53 = vmul.f32 %v7569_v58, %v3835_v11  ;;  %v4029_v19 = vsub.f32 0.0, %v7517_v61  ;;  %v4246_v50 = vadd.f32 1.0, %v4214_v36  ;;  %v7661_v27 = vpop.f32.mrb[63].mxu0 }
 0xedc   : > { %v4218_v42 = vmul.f32 %v4186_v13, %v3546_v18  ;;  %v7636_v8 = vmul.f32 0.70710677, %v7627_v15  ;;  %v7640_v17 = vadd.f32 %v7459_v9, %v7413_v4  ;;  %v3959_v35 = vadd.f32 0.2548296, %v3927_v16 }
 0xedd   : > { %v3548_v24 = vsel %vm3516_vm7, -1.0, %v8629_v39  ;;  %v4188_v52 = vsub.f32 1.0, %v4156_v31  ;;  %v4059_v5 = vmul.f32 %v4027_v14, %v7498_v29  ;;  %v3929_v7 = vmul.f32 %v7535_v41, %v3897_v30  ;;  %v6095_v21 = vpop.eup %6094 }
 0xede   : > { %v4250_v55 = vadd.f32 1.0, %v4218_v42  ;;  %v3869_v57 = vmul.f32 %v7593_v38, %v3837_v23  ;;  %v7649_v18 = vand.u32 2147483647, %v7636_v8  ;;  %v4248_v1 = vadd.f32 1.0, %v4216_v3 }
 0xedf   : > { %v4220_v11 = vmul.f32 %v4188_v52, %v3548_v24  ;;  %v3899_v9 = vadd.f32 -0.28449672, %v3867_v53  ;;  %v4061_v36 = vmul.f32 %v4029_v19, %v7517_v61  ;;  %v7653_v16 = vmul.f32 %v4246_v50, %v7514_v54 }
 0xee0   : > { %v7655_v44 = vmul.f32 %v4250_v55, %v3450_v37  ;;  %v3616_v29 = vmul.f32 0.3275911, %v7649_v18  ;;  %v7659_v14 = vmul.f32 0.70710677, %v7640_v17  ;;  %v3991_v30 = vmul.f32 %v7511_v25, %v3959_v35  ;;  %v5903_v55 = vld [vmem:[%s6560_s1 + $0xf0] sm:$0xff]  }
 0xee1   : > { %8630 = vst [vmem:[#allocation35_spill] sm:$0xff] %v7653_v16  ;;  %v3452_v13 = vmul.f32 0.5, %v7477_v47  ;;  %v4252_v23 = vadd.f32 1.0, %v4220_v11  ;;  %v4096_v3 = vmul.f32 1.442695, %v4059_v5  ;;  %v7670_v50 = vmul.f32 %v4248_v1, %v7527_v40  ;;  %5382 = vmatprep.subr.bf16.mxu0 %v5903_v55 }
 0xee2   : > { %8631 = vst [vmem:[#allocation36_spill] sm:$0xff] %v7655_v44  ;;  %v7665_v61 = vpop.eup %6096  ;;  %v3961_v31 = vadd.f32 0.2548296, %v3929_v7  ;;  %v3901_v37 = vadd.f32 -0.28449672, %v3869_v57  ;;  %v3648_v53 = vadd.f32 1.0, %v3616_v29  ;;  %v3931_v42 = vmul.f32 %v7569_v58, %v3899_v9 }
 0xee3   : > { %v6099_v19 = vpop.eup %6098  ;;  %8632 = vst [vmem:[#allocation37_spill] sm:$0xff] %v7670_v50  ;;  %v7673_v25 = vmul.f32 %v4252_v23, %v3452_v13  ;;  %v4100_v47 = vmul.f32 1.442695, %v4061_v36  ;;  %v7677_v35 = vand.u32 2147483647, %v7659_v14  ;;  %v7681_v24 = vadd.f32 %v7461_v2, %v7415_v33  ;;  %v5902_v7 = vld [vmem:[%s6560_s1 + $0x70] sm:$0xff]  }
 0xee4   : > { %6100 = vrcp.f32 %v3648_v53  ;;  %v4151_v52 = vmul.f32 %v6095_v21, %v3991_v30  ;;  %v3742_v5 = vmul.f32 1.0614054, %v7665_v61  ;;  %v3993_v57 = vmul.f32 %v7535_v41, %v3961_v31  ;;  %v5904_v9 = vld [vmem:[%s6560_s1 + $0x30] sm:$0xff]   ;;  %5342 = vmatprep.subr.bf16.mxu1 %v5902_v7  ;;  %v5907_v53 = vld [vmem:[%s6560_s1 + $0xf8] sm:$0xff]  }
 0xee5   : > { %8633 = vst [vmem:[#allocation38_spill] sm:$0xff] %v7673_v25  ;;  %6102 = vpow2.f32 %v4096_v3  ;;  %v3933_v1 = vmul.f32 %v7593_v38, %v3901_v37  ;;  %v3615_v11 = vmul.f32 0.3275911, %v7677_v35  ;;  %v5905_v2 = vld [vmem:[%s6560_s1 + $0xb0] sm:$0xff]   ;;  %v3543_v36 = vsel %vm3511_vm8, -1.0, %v8629_v39  ;;  %5343 = vmatpush3.bf16.msra.mxu1 %v5904_v9 }
 0xee6   : > { %6104 = vpow2.f32 %v4100_v47  ;;  %v7699_v21 = vmul.f32 0.70710677, %v7681_v24  ;;  %v3963_v41 = vadd.f32 0.2548296, %v3931_v42  ;;  %v7703_v30 = vadd.f32 %v7466_v62, %v7405_v20  ;;  %5383 = vmatpush3.bf16.msra.mxu0 %v5905_v2  ;;  %5344 = vmatprep.subr.bf16.mxu1 %v5906_v51 }
 0xee7   : > { %v3647_v29 = vadd.f32 1.0, %v3615_v11  ;;  %v4183_v13 = vsub.f32 1.0, %v4151_v52  ;;  %v3545_v23 = vsel %vm3513_vm9, -1.0, %v8629_v39  ;;  %v3774_v3 = vadd.f32 -1.4531521, %v3742_v5  ;;  %v5908_v52 = vld [vmem:[%s6560_s1 + $0x38] sm:$0xff]   ;;  %5384 = vmatprep.subr.bf16.mxu0 %v5907_v53 }
 0xee8   : > { %v7713_v31 = vand.u32 2147483647, %v7699_v21  ;;  %v4153_v37 = vmul.f32 %v6099_v19, %v3993_v57  ;;  %v3965_v62 = vadd.f32 0.2548296, %v3933_v1  ;;  %v7719_v47 = vmul.f32 0.5, %v7484_v26  ;;  %v5909_v5 = vld [vmem:[%s6560_s1 + $0xb8] sm:$0xff]  }
 0xee9   : > { %6106 = vrcp.f32 %v3647_v29  ;;  %v7724_v42 = vsel %vm3515_vm10, -1.0, %v8629_v39  ;;  %v3995_v19 = vmul.f32 %v7569_v58, %v3963_v41  ;;  %v7731_v7 = vmul.f32 0.5, %v7495_v45  ;;  %5345 = vmatpush3.bf16.msra.mxu1 %v5908_v52 }
 0xeea   : > { %v3617_v59 = vmul.f32 0.3275911, %v7713_v31  ;;  %v7734_v55 = vmul.f32 0.70710677, %v7703_v30  ;;  %v7737_v26 = vmul.f32 0.70710677, %v7707_v56  ;;  %v4215_v0 = vmul.f32 %v4183_v13, %v3543_v36  ;;  %5385 = vmatpush3.bf16.msra.mxu0 %v5909_v5 }
 0xeeb   : > { %v3549_v57 = vsel %vm3517_vm11, -1.0, %v8629_v39  ;;  %v3806_v1 = vmul.f32 %v7665_v61, %v3774_v3  ;;  %v4185_v45 = vsub.f32 1.0, %v4153_v37  ;;  %v3997_v9 = vmul.f32 %v7593_v38, %v3965_v62 }
 0xeec   : > { %v3649_v11 = vadd.f32 1.0, %v3617_v59  ;;  %v7747_v2 = vand.u32 2147483647, %v7734_v55  ;;  %v7750_v41 = vand.u32 2147483647, %v7737_v26  ;;  %v7756_v13 = vadd.f32 %v7471_v12, %v7413_v4 }
 0xeed   : > { %v7759_v37 = vmul.f32 0.5, %v7542_v43  ;;  %v3838_v51 = vadd.f32 1.4214138, %v3806_v1  ;;  %v4247_v52 = vadd.f32 1.0, %v4215_v0  ;;  %v4217_v5 = vmul.f32 %v4185_v45, %v3545_v23 }
 0xeee   : > { %v7743_v58 = vpop.eup %6100  ;;  %6108 = vrcp.f32 %v3649_v11  ;;  %v3618_v38 = vmul.f32 0.3275911, %v7747_v2  ;;  %v3620_v59 = vmul.f32 0.3275911, %v7750_v41  ;;  %v4062_v12 = vmul.f32 %v4030_v22, %v7573_v63 }
 0xeef   : > { %v6103_v36 = vpop.eup %6102  ;;  %v3744_v29 = vmul.f32 1.0614054, %v7743_v58  ;;  %v7767_v43 = vmul.f32 0.70710677, %v7756_v13  ;;  %v7774_v1 = vsel %vm3518_vm12, -1.0, %v8629_v39  ;;  %v4032_v23 = vsub.f32 0.0, %v7649_v18 }
 0xef0   : > { %v4155_v3 = vmul.f32 %v6103_v36, %v3995_v19  ;;  %v6105_v62 = vpop.eup %6104  ;;  %v3650_v40 = vadd.f32 1.0, %v3618_v38  ;;  %v3652_v36 = vadd.f32 1.0, %v3620_v59  ;;  %v3870_v0 = vmul.f32 %v7665_v61, %v3838_v51 }
 0xef1   : > { %v3776_v53 = vadd.f32 -1.4531521, %v3744_v29  ;;  %v4157_v11 = vmul.f32 %v6105_v62, %v3997_v9  ;;  %v7781_v45 = vadd.f32 %v7479_v60, %v7415_v33  ;;  %v7784_v9 = vmul.f32 %v4247_v52, %v7530_v49 }
 0xef2   : > { %v4187_v50 = vsub.f32 1.0, %v4155_v3  ;;  %6110 = vrcp.f32 %v3650_v40  ;;  %v4249_v22 = vadd.f32 1.0, %v4217_v5  ;;  %v7787_v48 = vand.u32 2147483647, %v7767_v43 }
 0xef3   : > { %v3808_v19 = vmul.f32 %v7743_v58, %v3776_v53  ;;  %v7769_v54 = vpop.eup %6106  ;;  %6112 = vrcp.f32 %v3652_v36  ;;  %8634 = vst [vmem:[#allocation39_spill] sm:$0xff] %v7784_v9  ;;  %v4189_v29 = vsub.f32 1.0, %v4157_v11  ;;  %v4102_v3 = vmul.f32 1.442695, %v4062_v12 }
 0xef4   : > { %v3743_v63 = vmul.f32 1.0614054, %v7769_v54  ;;  %v7790_v40 = vmul.f32 0.5, %v7627_v15  ;;  %vm3520_vm13 = vcmp.lt.f32.partialorder %v7636_v8, 0.0  ;;  %v4064_v62 = vmul.f32 %v4032_v23, %v7649_v18 }
 0xef5   : > { %v3840_v38 = vadd.f32 1.4214138, %v3808_v19  ;;  %vm3519_vm14 = vcmp.lt.f32.partialorder %v7659_v14, 0.0  ;;  %v3619_v49 = vmul.f32 0.3275911, %v7787_v48  ;;  %v4219_v53 = vmul.f32 %v4187_v50, %v7724_v42 }
 0xef6   : > { %v3775_v60 = vadd.f32 -1.4531521, %v3743_v63  ;;  %v3902_v59 = vadd.f32 -0.28449672, %v3870_v0  ;;  %v7800_v52 = vmul.f32 0.5, %v7640_v17  ;;  %v4221_v5 = vmul.f32 %v4189_v29, %v3549_v57 }
 0xef7   : > { %v7803_v15 = vmul.f32 0.70710677, %v7781_v45  ;;  %v4031_v11 = vsub.f32 0.0, %v7677_v35  ;;  %v3651_v14 = vadd.f32 1.0, %v3619_v49  ;;  %6114 = vpow2.f32 %v4102_v3 }
 0xef8   : > { %v7796_v51 = vpop.eup %6108  ;;  %v7810_v12 = vsel %vm3520_vm13, -1.0, %v8629_v39  ;;  %v3872_v50 = vmul.f32 %v7743_v58, %v3840_v38  ;;  %v7814_v17 = vsel %vm3519_vm14, -1.0, %v8629_v39  ;;  %v4106_v42 = vmul.f32 1.442695, %v4064_v62 }
 0xef9   : > { %v3745_v18 = vmul.f32 1.0614054, %v7796_v51  ;;  %v3807_v19 = vmul.f32 %v7769_v54, %v3775_v60  ;;  %6116 = vrcp.f32 %v3651_v14  ;;  %v7819_v57 = vadd.f32 %v7560_v10, %v7405_v20  ;;  %v8635_v10 = vld [vmem:[#allocation24_spill] sm:$0xff] }
 0xefa   : > { %v4251_v36 = vadd.f32 1.0, %v4219_v53  ;;  %v3934_v23 = vmul.f32 %v7665_v61, %v3902_v59  ;;  %v7823_v8 = vmul.f32 0.5, %v7681_v24  ;;  %v7826_v0 = vand.u32 2147483647, %v7803_v15 }
 0xefb   : > { %v4253_v29 = vadd.f32 1.0, %v4221_v5  ;;  %v4063_v3 = vmul.f32 %v4031_v11, %v7677_v35  ;;  %vm3521_vm15 = vcmp.lt.f32.partialorder %v7699_v21, 0.0  ;;  %v3777_v38 = vadd.f32 -1.4531521, %v3745_v18 }
 0xefc   : > { %v7828_v63 = vpop.eup %6110  ;;  %v7835_v60 = vmul.f32 %v4249_v22, %v8635_v10  ;;  %v3904_v49 = vadd.f32 -0.28449672, %v3872_v50  ;;  %v3621_v53 = vmul.f32 0.3275911, %v7826_v0  ;;  %6118 = vpow2.f32 %v4106_v42 }
 0xefd   : > { %v7832_v62 = vpop.eup %6112  ;;  %v3746_v24 = vmul.f32 1.0614054, %v7828_v63  ;;  %v3839_v59 = vadd.f32 1.4214138, %v3807_v19  ;;  %v7841_v5 = vmul.f32 0.70710677, %v7819_v57  ;;  %v7845_v22 = vmul.f32 %v4251_v36, %v7719_v47 }
 0xefe   : > { %8636 = vst [vmem:[#allocation24_spill] sm:$0xff] %v7835_v60  ;;  %v3748_v14 = vmul.f32 1.0614054, %v7832_v62  ;;  %v3966_v35 = vadd.f32 0.2548296, %v3934_v23  ;;  %v4033_v11 = vsub.f32 0.0, %v7713_v31  ;;  %v3809_v10 = vmul.f32 %v7796_v51, %v3777_v38 }
 0xeff   : > { %v3778_v18 = vadd.f32 -1.4531521, %v3746_v24  ;;  %v3653_v25 = vadd.f32 1.0, %v3621_v53  ;;  %8637 = vst [vmem:[#allocation40_spill] sm:$0xff] %v7845_v22  ;;  %v4104_v50 = vmul.f32 1.442695, %v4063_v3  ;;  %v3936_v42 = vmul.f32 %v7743_v58, %v3904_v49 }
 0xf00   : > { %v3780_v16 = vadd.f32 -1.4531521, %v3748_v14  ;;  %v7852_v19 = vsel %vm3521_vm15, -1.0, %v8629_v39  ;;  %v7855_v23 = vmul.f32 0.5, %v7703_v30  ;;  %v3871_v24 = vmul.f32 %v7769_v54, %v3839_v59 }
 0xf01   : > { %6120 = vrcp.f32 %v3653_v25  ;;  %v3810_v47 = vmul.f32 %v7828_v63, %v3778_v18  ;;  %v4034_v36 = vsub.f32 0.0, %v7747_v2  ;;  %v7861_v3 = vand.u32 2147483647, %v7841_v5  ;;  %v6115_v38 = vpop.eup %6114 }
 0xf02   : > { %v7864_v49 = vmul.f32 %v4253_v29, %v7731_v7  ;;  %v3998_v21 = vmul.f32 %v7665_v61, %v3966_v35  ;;  %v4065_v53 = vmul.f32 %v4033_v11, %v7713_v31  ;;  %v3812_v30 = vmul.f32 %v7832_v62, %v3780_v16 }
 0xf03   : > { %v7869_v25 = vpop.eup %6116  ;;  %6122 = vpow2.f32 %v4104_v50  ;;  %v3841_v59 = vadd.f32 1.4214138, %v3809_v10  ;;  %vm3522_vm0 = vcmp.lt.f32.partialorder %v7734_v55, 0.0  ;;  %v3622_v14 = vmul.f32 0.3275911, %v7861_v3  ;;  %v8639_v10 = vld [vmem:[#allocation25_spill] sm:$0xff] }
 0xf04   : > { %8638 = vst [vmem:[#allocation41_spill] sm:$0xff] %v7864_v49  ;;  %v3968_v18 = vadd.f32 0.2548296, %v3936_v42  ;;  %vm3524_vm1 = vcmp.lt.f32.partialorder %v7737_v26, 0.0  ;;  %v4036_v7 = vsub.f32 0.0, %v7750_v41  ;;  %v4066_v31 = vmul.f32 %v4034_v36, %v7747_v2 }
 0xf05   : > { %v3747_v29 = vmul.f32 1.0614054, %v7869_v25  ;;  %v3903_v61 = vadd.f32 -0.28449672, %v3871_v24  ;;  %v3842_v35 = vadd.f32 1.4214138, %v3810_v47  ;;  %v4158_v11 = vmul.f32 %v6115_v38, %v3998_v21 }
 0xf06   : > { %v3654_v16 = vadd.f32 1.0, %v3622_v14  ;;  %v4108_v44 = vmul.f32 1.442695, %v4065_v53  ;;  %v3844_v50 = vadd.f32 1.4214138, %v3812_v30  ;;  %v7879_v49 = vadd.f32 %v8639_v10, %v7409_v6  ;;  %v6119_v60 = vpop.eup %6118 }
 0xf07   : > { %v3873_v42 = vmul.f32 %v7796_v51, %v3841_v59  ;;  %v7885_v22 = vsel %vm3522_vm0, -1.0, %v8629_v39  ;;  %v7888_v24 = vmul.f32 0.5, %v7707_v56  ;;  %v3779_v2 = vadd.f32 -1.4531521, %v3747_v29 }
 0xf08   : > { %v4000_v47 = vmul.f32 %v7743_v58, %v3968_v18  ;;  %v7894_v36 = vsel %vm3524_vm1, -1.0, %v8629_v39  ;;  %v4068_v38 = vmul.f32 %v4036_v7, %v7750_v41  ;;  %6124 = vrcp.f32 %v3654_v16 }
 0xf09   : > { %v3935_v21 = vmul.f32 %v7769_v54, %v3903_v61  ;;  %v3874_v55 = vmul.f32 %v7828_v63, %v3842_v35  ;;  %v4110_v53 = vmul.f32 1.442695, %v4066_v31  ;;  %vm3523_vm2 = vcmp.lt.f32.partialorder %v7767_v43, 0.0 }
 0xf0a   : > { %v4190_v30 = vsub.f32 1.0, %v4158_v11  ;;  %6126 = vpow2.f32 %v4108_v44  ;;  %v3876_v58 = vmul.f32 %v7832_v62, %v3844_v50  ;;  %v7904_v26 = vmul.f32 0.70710677, %v7879_v49 }
 0xf0b   : > { %v7900_v56 = vpop.eup %6120  ;;  %v3905_v59 = vadd.f32 -0.28449672, %v3873_v42  ;;  %v3811_v41 = vmul.f32 %v7869_v25, %v3779_v2  ;;  %v4035_v14 = vsub.f32 0.0, %v7787_v48  ;;  %v4160_v7 = vmul.f32 %v6119_v60, %v4000_v47  ;;  %v8640_v60 = vld [vmem:[#allocation26_spill] sm:$0xff] }
 0xf0c   : > { %v3749_v18 = vmul.f32 1.0614054, %v7900_v56  ;;  %v4114_v29 = vmul.f32 1.442695, %v4068_v38  ;;  %v7910_v43 = vmul.f32 0.5, %v7756_v13  ;;  %v7913_v61 = vsel %vm3523_vm2, -1.0, %v8629_v39 }
 0xf0d   : > { %v6123_v44 = vpop.eup %6122  ;;  %v3967_v35 = vadd.f32 0.2548296, %v3935_v21  ;;  %v3906_v31 = vadd.f32 -0.28449672, %v3874_v55  ;;  %6128 = vpow2.f32 %v4110_v53  ;;  %v4222_v11 = vmul.f32 %v4190_v30, %v7774_v1 }
 0xf0e   : > { %v3781_v16 = vadd.f32 -1.4531521, %v3749_v18  ;;  %v3908_v50 = vadd.f32 -0.28449672, %v3876_v58  ;;  %v7917_v10 = vand.u32 2147483647, %v7904_v26  ;;  %v7921_v42 = vadd.f32 %v8640_v60, %v7413_v4 }
 0xf0f   : > { %v3937_v13 = vmul.f32 %v7796_v51, %v3905_v59  ;;  %v3843_v2 = vadd.f32 1.4214138, %v3811_v41  ;;  %v4067_v47 = vmul.f32 %v4035_v14, %v7787_v48  ;;  %v4037_v38 = vsub.f32 0.0, %v7826_v0 }
 0xf10   : > { %v4192_v21 = vsub.f32 1.0, %v4160_v7  ;;  %6130 = vpow2.f32 %v4114_v29  ;;  %v3813_v55 = vmul.f32 %v7900_v56, %v3781_v16  ;;  %v3624_v1 = vmul.f32 0.3275911, %v7917_v10 }
 0xf11   : > { %v3999_v53 = vmul.f32 %v7769_v54, %v3967_v35  ;;  %v3938_v30 = vmul.f32 %v7828_v63, %v3906_v31  ;;  %v7931_v58 = vmul.f32 0.5, %v7781_v45  ;;  %vm3525_vm3 = vcmp.lt.f32.partialorder %v7803_v15, 0.0 }
 0xf12   : > { %v7934_v59 = vpop.eup %6124  ;;  %v4254_v48 = vadd.f32 1.0, %v4222_v11  ;;  %v3940_v41 = vmul.f32 %v7832_v62, %v3908_v50  ;;  %v3656_v14 = vadd.f32 1.0, %v3624_v1  ;;  %v7938_v18 = vmul.f32 0.70710677, %v7921_v42  ;;  %v8641_v1 = vld [vmem:[#allocation27_spill] sm:$0xff] }
 0xf13   : > { %v3969_v7 = vadd.f32 0.2548296, %v3937_v13  ;;  %v3875_v29 = vmul.f32 %v7869_v25, %v3843_v2  ;;  %v4112_v54 = vmul.f32 1.442695, %v4067_v47  ;;  %v4069_v35 = vmul.f32 %v4037_v38, %v7826_v0 }
 0xf14   : > { %v6127_v31 = vpop.eup %6126  ;;  %v4224_v45 = vmul.f32 %v4192_v21, %v7810_v12  ;;  %v7944_v15 = vsel %vm3525_vm3, -1.0, %v8629_v39  ;;  %v3845_v16 = vadd.f32 1.4214138, %v3813_v55  ;;  %6132 = vrcp.f32 %v3656_v14 }
 0xf15   : > { %v4159_v11 = vmul.f32 %v6123_v44, %v3999_v53  ;;  %v3970_v50 = vadd.f32 0.2548296, %v3938_v30  ;;  %v3750_v60 = vmul.f32 1.0614054, %v7934_v59  ;;  %v7949_v13 = vadd.f32 %v8641_v1, %v7415_v33 }
 0xf16   : > { %v7952_v2 = vmul.f32 %v4254_v48, %v7759_v37  ;;  %v3972_v0 = vadd.f32 0.2548296, %v3940_v41  ;;  %v4038_v47 = vsub.f32 0.0, %v7861_v3  ;;  %v7956_v12 = vand.u32 2147483647, %v7938_v18 }
 0xf17   : > { %v6129_v38 = vpop.eup %6128  ;;  %v4001_v21 = vmul.f32 %v7796_v51, %v3969_v7  ;;  %v3907_v44 = vadd.f32 -0.28449672, %v3875_v29  ;;  %6134 = vpow2.f32 %v4112_v54  ;;  %v4116_v55 = vmul.f32 1.442695, %v4069_v35  ;;  %v8643_v54 = vld [vmem:[#allocation28_spill] sm:$0xff] }
 0xf18   : > { %8642 = vst [vmem:[#allocation25_spill] sm:$0xff] %v7952_v2  ;;  %v4256_v53 = vadd.f32 1.0, %v4224_v45  ;;  %v3877_v30 = vmul.f32 %v7900_v56, %v3845_v16  ;;  %vm3526_vm4 = vcmp.lt.f32.partialorder %v7841_v5, 0.0  ;;  %v3623_v37 = vmul.f32 0.3275911, %v7956_v12 }
 0xf19   : > { %v4191_v48 = vsub.f32 1.0, %v4159_v11  ;;  %v4002_v41 = vmul.f32 %v7828_v63, %v3970_v50  ;;  %v3782_v14 = vadd.f32 -1.4531521, %v3750_v60  ;;  %v7964_v1 = vmul.f32 0.70710677, %v7949_v13 }
 0xf1a   : > { %v6131_v2 = vpop.eup %6130  ;;  %v4004_v51 = vmul.f32 %v7832_v62, %v3972_v0  ;;  %v4070_v7 = vmul.f32 %v4038_v47, %v7861_v3  ;;  %v3655_v29 = vadd.f32 1.0, %v3623_v37  ;;  %v7970_v35 = vadd.f32 %v8643_v54, %v7405_v20 }
 0xf1b   : > { %v4161_v45 = vmul.f32 %v6127_v31, %v4001_v21  ;;  %v3939_v16 = vmul.f32 %v7869_v25, %v3907_v44  ;;  %6136 = vpow2.f32 %v4116_v55  ;;  %v7974_v63 = vand.u32 2147483647, %v7964_v1 }
 0xf1c   : > { %v3909_v11 = vadd.f32 -0.28449672, %v3877_v30  ;;  %v7977_v50 = vmul.f32 0.5, %v7819_v57  ;;  %v7982_v62 = vsel %vm3526_vm4, -1.0, %v8629_v39  ;;  %6138 = vrcp.f32 %v3655_v29 }
 0xf1d   : > { %v4223_v3 = vmul.f32 %v4191_v48, %v7814_v17  ;;  %v4162_v60 = vmul.f32 %v6129_v38, %v4002_v41  ;;  %v3814_v31 = vmul.f32 %v7934_v59, %v3782_v14  ;;  %v3625_v0 = vmul.f32 0.3275911, %v7974_v63  ;;  %v8645_v17 = vld [vmem:[#allocation29_spill] sm:$0xff] }
 0xf1e   : > { %v7987_v47 = vpop.eup %6132  ;;  %v7990_v21 = vmul.f32 %v4256_v53, %v7790_v40  ;;  %v4164_v57 = vmul.f32 %v6131_v2, %v4004_v51  ;;  %v4118_v44 = vmul.f32 1.442695, %v4070_v7  ;;  %v7993_v55 = vmul.f32 0.70710677, %v7970_v35 }
 0xf1f   : > { %v4193_v5 = vsub.f32 1.0, %v4161_v45  ;;  %v3971_v30 = vadd.f32 0.2548296, %v3939_v16  ;;  %v3657_v37 = vadd.f32 1.0, %v3625_v0  ;;  %v7997_v38 = vadd.f32 %v8645_v17, %v7409_v6 }
 0xf20   : > { %8644 = vst [vmem:[#allocation26_spill] sm:$0xff] %v7990_v21  ;;  %v3941_v48 = vmul.f32 %v7900_v56, %v3909_v11  ;;  %v8001_v41 = vmul.f32 0.5, %v7879_v49  ;;  %v3752_v40 = vmul.f32 1.0614054, %v7987_v47  ;;  %v8005_v2 = vand.u32 2147483647, %v7993_v55 }
 0xf21   : > { %v6135_v53 = vpop.eup %6134  ;;  %v4255_v14 = vadd.f32 1.0, %v4223_v3  ;;  %v4194_v51 = vsub.f32 1.0, %v4162_v60  ;;  %v3846_v7 = vadd.f32 1.4214138, %v3814_v31  ;;  %6140 = vrcp.f32 %v3657_v37  ;;  %v8646_v31 = vld [vmem:[#allocation30_spill] sm:$0xff] }
 0xf22   : > { %v4196_v29 = vsub.f32 1.0, %v4164_v57  ;;  %6142 = vpow2.f32 %v4118_v44  ;;  %v4040_v54 = vsub.f32 0.0, %v7917_v10  ;;  %v3626_v45 = vmul.f32 0.3275911, %v8005_v2 }
 0xf23   : > { %v4225_v16 = vmul.f32 %v4193_v5, %v7852_v19  ;;  %v4003_v49 = vmul.f32 %v7869_v25, %v3971_v30  ;;  %vm3528_vm5 = vcmp.lt.f32.partialorder %v7904_v26, 0.0  ;;  %v8013_v11 = vmul.f32 0.70710677, %v7997_v38 }
 0xf24   : > { %v3973_v0 = vadd.f32 0.2548296, %v3941_v48  ;;  %v3784_v3 = vadd.f32 -1.4531521, %v3752_v40  ;;  %v3658_v60 = vadd.f32 1.0, %v3626_v45  ;;  %v8017_v57 = vadd.f32 %v8646_v31, %v7413_v4 }
 0xf25   : > { %v6137_v44 = vpop.eup %6136  ;;  %v8020_v37 = vmul.f32 %v4255_v14, %v7800_v52  ;;  %v4226_v19 = vmul.f32 %v4194_v51, %v7885_v22  ;;  %v3878_v25 = vmul.f32 %v7934_v59, %v3846_v7  ;;  %v8025_v26 = vand.u32 2147483647, %v8013_v11 }
 0xf26   : > { %v8027_v5 = vpop.eup %6138  ;;  %v4228_v30 = vmul.f32 %v4196_v29, %v7894_v36  ;;  %v8031_v17 = vsel %vm3528_vm5, -1.0, %v8629_v39  ;;  %v4072_v48 = vmul.f32 %v4040_v54, %v7917_v10  ;;  %6144 = vrcp.f32 %v3658_v60 }
 0xf27   : > { %8647 = vst [vmem:[#allocation27_spill] sm:$0xff] %v8020_v37  ;;  %v4257_v40 = vadd.f32 1.0, %v4225_v16  ;;  %v4163_v52 = vmul.f32 %v6135_v53, %v4003_v49  ;;  %v3751_v14 = vmul.f32 1.0614054, %v8027_v5  ;;  %v3628_v22 = vmul.f32 0.3275911, %v8025_v26 }
 0xf28   : > { %v4005_v51 = vmul.f32 %v7900_v56, %v3973_v0  ;;  %v3816_v7 = vmul.f32 %v7987_v47, %v3784_v3  ;;  %v8039_v45 = vmul.f32 0.5, %v7921_v42  ;;  %v8042_v36 = vmul.f32 0.70710677, %v8017_v57  ;;  %v8648_v56 = vld [vmem:[#allocation31_spill] sm:$0xff] }
 0xf29   : > { %v4258_v29 = vadd.f32 1.0, %v4226_v19  ;;  %v3910_v31 = vadd.f32 -0.28449672, %v3878_v25  ;;  %vm3527_vm6 = vcmp.lt.f32.partialorder %v7938_v18, 0.0  ;;  %v3660_v10 = vadd.f32 1.0, %v3628_v22 }
 0xf2a   : > { %v4260_v53 = vadd.f32 1.0, %v4228_v30  ;;  %v4122_v54 = vmul.f32 1.442695, %v4072_v48  ;;  %v8046_v16 = vand.u32 2147483647, %v8042_v36  ;;  %v8050_v49 = vadd.f32 %v8648_v56, %v7415_v33 }
 0xf2b   : > { %v8052_v0 = vpop.eup %6140  ;;  %v8055_v42 = vmul.f32 %v4257_v40, %v7823_v8  ;;  %v4195_v3 = vsub.f32 1.0, %v4163_v52  ;;  %v3783_v60 = vadd.f32 -1.4531521, %v3751_v14  ;;  %6146 = vrcp.f32 %v3660_v10 }
 0xf2c   : > { %v6143_v19 = vpop.eup %6142  ;;  %v4165_v25 = vmul.f32 %v6137_v44, %v4005_v51  ;;  %v3848_v22 = vadd.f32 1.4214138, %v3816_v7  ;;  %v3753_v30 = vmul.f32 1.0614054, %v8052_v0  ;;  %v3627_v48 = vmul.f32 0.3275911, %v8046_v16 }
 0xf2d   : > { %8649 = vst [vmem:[#allocation28_spill] sm:$0xff] %v8055_v42  ;;  %v8060_v21 = vmul.f32 %v4258_v29, %v7855_v23  ;;  %v3942_v56 = vmul.f32 %v7934_v59, %v3910_v31  ;;  %v8066_v8 = vsel %vm3527_vm6, -1.0, %v8629_v39  ;;  %v4039_v40 = vsub.f32 0.0, %v7956_v12 }
 0xf2e   : > { %v8070_v52 = vmul.f32 %v4260_v53, %v7888_v24  ;;  %6148 = vpow2.f32 %v4122_v54  ;;  %v3659_v44 = vadd.f32 1.0, %v3627_v48  ;;  %v8073_v14 = vmul.f32 0.70710677, %v8050_v49 }
 0xf2f   : > { %8650 = vst [vmem:[#allocation29_spill] sm:$0xff] %v8060_v21  ;;  %v4227_v23 = vmul.f32 %v4195_v3, %v7913_v61  ;;  %v3815_v51 = vmul.f32 %v8027_v5, %v3783_v60  ;;  %v3785_v7 = vadd.f32 -1.4531521, %v3753_v30  ;;  %v4041_v29 = vsub.f32 0.0, %v7974_v63  ;;  %v8652_v61 = vld [vmem:[#allocation32_spill] sm:$0xff] }
 0xf30   : > { %8651 = vst [vmem:[#allocation30_spill] sm:$0xff] %v8070_v52  ;;  %v8078_v18 = vpop.eup %6144  ;;  %v4197_v31 = vsub.f32 1.0, %v4165_v25  ;;  %v3880_v10 = vmul.f32 %v7987_v47, %v3848_v22  ;;  %6150 = vrcp.f32 %v3659_v44  ;;  %v8082_v24 = vand.u32 2147483647, %v8073_v14 }
 0xf31   : > { %v3974_v53 = vadd.f32 0.2548296, %v3942_v56  ;;  %v4071_v54 = vmul.f32 %v4039_v40, %v7956_v12  ;;  %v3754_v48 = vmul.f32 1.0614054, %v8078_v18  ;;  %v8088_v3 = vadd.f32 %v8652_v61, %v7405_v20 }
 0xf32   : > { %v8091_v60 = vmul.f32 0.5, %v7949_v13  ;;  %vm3529_vm7 = vcmp.lt.f32.partialorder %v7964_v1, 0.0  ;;  %v8095_v25 = vmul.f32 0.5, %v7970_v35  ;;  %v3629_v22 = vmul.f32 0.3275911, %v8082_v24 }
 0xf33   : > { %v4259_v30 = vadd.f32 1.0, %v4227_v23  ;;  %v3847_v56 = vadd.f32 1.4214138, %v3815_v51  ;;  %v3817_v12 = vmul.f32 %v8052_v0, %v3785_v7  ;;  %v3786_v40 = vadd.f32 -1.4531521, %v3754_v48 }
 0xf34   : > { %v4229_v44 = vmul.f32 %v4197_v31, %v7944_v15  ;;  %v3912_v52 = vadd.f32 -0.28449672, %v3880_v10  ;;  %v4073_v61 = vmul.f32 %v4041_v29, %v7974_v63  ;;  %v3661_v21 = vadd.f32 1.0, %v3629_v22 }
 0xf35   : > { %v8101_v13 = vpop.eup %6146  ;;  %v4006_v1 = vmul.f32 %v7934_v59, %v3974_v53  ;;  %v4120_v42 = vmul.f32 1.442695, %v4071_v54  ;;  %v8105_v35 = vsel %vm3529_vm7, -1.0, %v8629_v39  ;;  %v8108_v23 = vmul.f32 0.70710677, %v8088_v3 }
 0xf36   : > { %v3818_v51 = vmul.f32 %v8078_v18, %v3786_v40  ;;  %v4042_v7 = vsub.f32 0.0, %v8005_v2  ;;  %v3756_v15 = vmul.f32 1.0614054, %v8101_v13  ;;  %6152 = vrcp.f32 %v3661_v21 }
 0xf37   : > { %v8114_v63 = vmul.f32 %v4259_v30, %v7910_v43  ;;  %v3879_v29 = vmul.f32 %v8027_v5, %v3847_v56  ;;  %v3849_v59 = vadd.f32 1.4214138, %v3817_v12  ;;  %vm3530_vm8 = vcmp.lt.f32.partialorder %v7993_v55, 0.0 }
 0xf38   : > { %v6149_v31 = vpop.eup %6148  ;;  %v4261_v10 = vadd.f32 1.0, %v4229_v44  ;;  %v3944_v53 = vmul.f32 %v7987_v47, %v3912_v52  ;;  %v4124_v54 = vmul.f32 1.442695, %v4073_v61  ;;  %v3788_v48 = vadd.f32 -1.4531521, %v3756_v15 }
 0xf39   : > { %8653 = vst [vmem:[#allocation31_spill] sm:$0xff] %v8114_v63  ;;  %v4166_v22 = vmul.f32 %v6143_v19, %v4006_v1  ;;  %6154 = vpow2.f32 %v4120_v42  ;;  %v8120_v40 = vmul.f32 0.5, %v7997_v38  ;;  %v8123_v21 = vand.u32 2147483647, %v8108_v23  ;;  %v8654_v38 = vld [vmem:[#allocation33_spill] sm:$0xff] }
 0xf3a   : > { %v8125_v43 = vpop.eup %6150  ;;  %v8128_v30 = vsel %vm3530_vm8, -1.0, %v8629_v39  ;;  %v3850_v55 = vadd.f32 1.4214138, %v3818_v51  ;;  %v4074_v56 = vmul.f32 %v4042_v7, %v8005_v2  ;;  %v3820_v52 = vmul.f32 %v8101_v13, %v3788_v48 }
 0xf3b   : > { %v3911_v12 = vadd.f32 -0.28449672, %v3879_v29  ;;  %v3881_v19 = vmul.f32 %v8052_v0, %v3849_v59  ;;  %v3755_v42 = vmul.f32 1.0614054, %v8125_v43  ;;  %v8136_v44 = vadd.f32 %v8654_v38, %v7409_v6 }
 0xf3c   : > { %v8139_v61 = vmul.f32 %v4261_v10, %v7931_v58  ;;  %v3976_v1 = vadd.f32 0.2548296, %v3944_v53  ;;  %6156 = vpow2.f32 %v4124_v54  ;;  %v3630_v51 = vmul.f32 0.3275911, %v8123_v21 }
 0xf3d   : > { %8655 = vst [vmem:[#allocation32_spill] sm:$0xff] %v8136_v44  ;;  %v4198_v15 = vsub.f32 1.0, %v4166_v22  ;;  %vm3532_vm9 = vcmp.lt.f32.partialorder %v8013_v11, 0.0  ;;  %v3852_v2 = vadd.f32 1.4214138, %v3820_v52  ;;  %v3882_v29 = vmul.f32 %v8078_v18, %v3850_v55  ;;  %v8658_v55 = vld [vmem:[#allocation34_spill] sm:$0xff] }
 0xf3e   : > { %8656 = vst [vmem:[#allocation33_spill] sm:$0xff] %v8139_v61  ;;  %v3787_v7 = vadd.f32 -1.4531521, %v3755_v42  ;;  %v4126_v59 = vmul.f32 1.442695, %v4074_v56  ;;  %v4044_v48 = vsub.f32 0.0, %v8025_v26  ;;  %v3943_v38 = vmul.f32 %v8027_v5, %v3911_v12 }
 0xf3f   : > { %v3662_v63 = vadd.f32 1.0, %v3630_v51  ;;  %v3913_v37 = vadd.f32 -0.28449672, %v3881_v19  ;;  %v8148_v10 = vmul.f32 0.70710677, %v8136_v44  ;;  %v4008_v54 = vmul.f32 %v7987_v47, %v3976_v1 }
 0xf40   : > { %v3819_v58 = vmul.f32 %v8125_v43, %v3787_v7  ;;  %v8150_v53 = vpop.eup %6152  ;;  %v4043_v22 = vsub.f32 0.0, %v8046_v16  ;;  %v8156_v56 = vadd.f32 %v8658_v55, %v7413_v4  ;;  %v8161_v52 = vsel %vm3532_vm9, -1.0, %v8629_v39 }
 0xf41   : > { %8657 = vst [vmem:[#allocation42_spill] sm:$0xff] %v8148_v10  ;;  %6158 = vrcp.f32 %v3662_v63  ;;  %v3884_v12 = vmul.f32 %v8101_v13, %v3852_v2  ;;  %v3757_v42 = vmul.f32 1.0614054, %v8150_v53  ;;  %v4230_v51 = vmul.f32 %v4198_v15, %v7982_v62 }
 0xf42   : > { %8659 = vst [vmem:[#allocation34_spill] sm:$0xff] %v8156_v56  ;;  %v3851_v19 = vadd.f32 1.4214138, %v3819_v58  ;;  %v3914_v47 = vadd.f32 -0.28449672, %v3882_v29  ;;  %6160 = vpow2.f32 %v4126_v59  ;;  %v4076_v63 = vmul.f32 %v4044_v48, %v8025_v26 }
 0xf43   : > { %v6155_v1 = vpop.eup %6154  ;;  %v3975_v7 = vadd.f32 0.2548296, %v3943_v38  ;;  %v3945_v55 = vmul.f32 %v8052_v0, %v3913_v37  ;;  %v3789_v44 = vadd.f32 -1.4531521, %v3757_v42  ;;  %v8169_v11 = vand.u32 2147483647, %v8148_v10 }
 0xf44   : > { %v4168_v61 = vmul.f32 %v6149_v31, %v4008_v54  ;;  %v4075_v2 = vmul.f32 %v4043_v22, %v8046_v16  ;;  %v4045_v58 = vsub.f32 0.0, %v8082_v24  ;;  %v8174_v9 = vmul.f32 0.70710677, %v8156_v56 }
 0xf45   : > { %v3916_v62 = vadd.f32 -0.28449672, %v3884_v12  ;;  %v3883_v15 = vmul.f32 %v8125_v43, %v3851_v19  ;;  %v3821_v26 = vmul.f32 %v8150_v53, %v3789_v44  ;;  %v3632_v29 = vmul.f32 0.3275911, %v8169_v11 }
 0xf46   : > { %v6157_v37 = vpop.eup %6156  ;;  %v4262_v59 = vadd.f32 1.0, %v4230_v51  ;;  %v3946_v48 = vmul.f32 %v8078_v18, %v3914_v47  ;;  %v4130_v38 = vmul.f32 1.442695, %v4076_v63  ;;  %v8181_v31 = vmul.f32 0.5, %v8017_v57 }
 0xf47   : > { %v4007_v16 = vmul.f32 %v8027_v5, %v3975_v7  ;;  %v3977_v54 = vadd.f32 0.2548296, %v3945_v55  ;;  %v3853_v22 = vadd.f32 1.4214138, %v3821_v26  ;;  %v3664_v42 = vadd.f32 1.0, %v3632_v29 }
 0xf48   : > { %v4200_v12 = vsub.f32 1.0, %v4168_v61  ;;  %v4128_v56 = vmul.f32 1.442695, %v4075_v2  ;;  %v4077_v19 = vmul.f32 %v4045_v58, %v8082_v24  ;;  %v8186_v44 = vand.u32 2147483647, %v8174_v9 }
 0xf49   : > { %v3948_v51 = vmul.f32 %v8101_v13, %v3916_v62  ;;  %v3915_v10 = vadd.f32 -0.28449672, %v3883_v15  ;;  %v3885_v47 = vmul.f32 %v8150_v53, %v3853_v22  ;;  %6162 = vrcp.f32 %v3664_v42 }
 0xf4a   : > { %v3978_v63 = vadd.f32 0.2548296, %v3946_v48  ;;  %6164 = vpow2.f32 %v4130_v38  ;;  %vm3531_vm10 = vcmp.lt.f32.partialorder %v8042_v36, 0.0  ;;  %v3631_v5 = vmul.f32 0.3275911, %v8186_v44 }
 0xf4b   : > { %v8190_v57 = vpop.eup %6158  ;;  %v8195_v61 = vmul.f32 %v4262_v59, %v7977_v50  ;;  %v4167_v24 = vmul.f32 %v6155_v1, %v4007_v16  ;;  %v4009_v7 = vmul.f32 %v8052_v0, %v3977_v54  ;;  %v4232_v58 = vmul.f32 %v4200_v12, %v8031_v17 }
 0xf4c   : > { %v3758_v55 = vmul.f32 1.0614054, %v8190_v57  ;;  %v6161_v2 = vpop.eup %6160  ;;  %6166 = vpow2.f32 %v4128_v56  ;;  %v3917_v62 = vadd.f32 -0.28449672, %v3885_v47  ;;  %v3663_v15 = vadd.f32 1.0, %v3631_v5 }
 0xf4d   : > { %v3980_v26 = vadd.f32 0.2548296, %v3948_v51  ;;  %v3947_v29 = vmul.f32 %v8125_v43, %v3915_v10  ;;  %v4132_v48 = vmul.f32 1.442695, %v4077_v19  ;;  %v8203_v38 = vadd.f32 %v7611_v34, %v7415_v33 }
 0xf4e   : > { %v4010_v50 = vmul.f32 %v8078_v18, %v3978_v63  ;;  %v8209_v0 = vsel %vm3531_vm10, -1.0, %v8629_v39  ;;  %6168 = vrcp.f32 %v3663_v15  ;;  %v8213_v17 = vadd.f32 %v7615_v28, %v7405_v20 }
 0xf4f   : > { %v4199_v56 = vsub.f32 1.0, %v4167_v24  ;;  %v4169_v1 = vmul.f32 %v6157_v37, %v4009_v7  ;;  %vm3533_vm11 = vcmp.lt.f32.partialorder %v8073_v14, 0.0  ;;  %v3790_v10 = vadd.f32 -1.4531521, %v3758_v55 }
 0xf50   : > { %v4264_v59 = vadd.f32 1.0, %v4232_v58  ;;  %v8217_v34 = vmul.f32 0.5, %v8050_v49  ;;  %v3949_v18 = vmul.f32 %v8150_v53, %v3917_v62  ;;  %v8221_v36 = vmul.f32 0.70710677, %v8203_v38 }
 0xf51   : > { %v4012_v16 = vmul.f32 %v8101_v13, %v3980_v26  ;;  %v3979_v54 = vadd.f32 0.2548296, %v3947_v29  ;;  %6170 = vpow2.f32 %v4132_v48  ;;  %v4046_v20 = vsub.f32 0.0, %v8123_v21 }
 0xf52   : > { %v4170_v28 = vmul.f32 %v6161_v2, %v4010_v50  ;;  %v8226_v37 = vsel %vm3533_vm11, -1.0, %v8629_v39  ;;  %v8229_v14 = vand.u32 2147483647, %v8221_v36  ;;  %v8232_v49 = vmul.f32 0.70710677, %v8213_v17 }
 0xf53   : > { %v8234_v22 = vpop.eup %6162  ;;  %v4231_v42 = vmul.f32 %v4199_v56, %v8066_v8  ;;  %v4201_v12 = vsub.f32 1.0, %v4169_v1  ;;  %v8238_v13 = vmul.f32 0.5, %v8088_v3  ;;  %v3822_v19 = vmul.f32 %v8190_v57, %v3790_v10 }
 0xf54   : > { %v6165_v51 = vpop.eup %6164  ;;  %v3981_v47 = vadd.f32 0.2548296, %v3949_v18  ;;  %v3760_v63 = vmul.f32 1.0614054, %v8234_v22  ;;  %v3633_v5 = vmul.f32 0.3275911, %v8229_v14  ;;  %v8245_v24 = vadd.f32 %v7619_v46, %v7409_v6 }
 0xf55   : > { %v8248_v7 = vmul.f32 %v4264_v59, %v8001_v41  ;;  %v4172_v8 = vmul.f32 %v6165_v51, %v4012_v16  ;;  %v4011_v55 = vmul.f32 %v8125_v43, %v3979_v54  ;;  %v4078_v3 = vmul.f32 %v4046_v20, %v8123_v21 }
 0xf56   : > { %v6167_v2 = vpop.eup %6166  ;;  %v4202_v58 = vsub.f32 1.0, %v4170_v28  ;;  %v4048_v62 = vsub.f32 0.0, %v8169_v11  ;;  %v3665_v15 = vadd.f32 1.0, %v3633_v5  ;;  %v8254_v26 = vand.u32 2147483647, %v8232_v49 }
 0xf57   : > { %v4263_v29 = vadd.f32 1.0, %v4231_v42  ;;  %v4233_v6 = vmul.f32 %v4201_v12, %v8105_v35  ;;  %v3854_v46 = vadd.f32 1.4214138, %v3822_v19  ;;  %v3792_v48 = vadd.f32 -1.4531521, %v3760_v63 }
 0xf58   : > { %v8257_v41 = vpop.eup %6168  ;;  %v4013_v50 = vmul.f32 %v8150_v53, %v3981_v47  ;;  %6172 = vrcp.f32 %v3665_v15  ;;  %v3634_v21 = vmul.f32 0.3275911, %v8254_v26  ;;  %v8262_v43 = vmul.f32 0.70710677, %v8245_v24 }
 0xf59   : > { %v4204_v56 = vsub.f32 1.0, %v4172_v8  ;;  %v4171_v1 = vmul.f32 %v6167_v2, %v4011_v55  ;;  %v3759_v10 = vmul.f32 1.0614054, %v8257_v41  ;;  %v4047_v59 = vsub.f32 0.0, %v8186_v44 }
 0xf5a   : > { %v4234_v35 = vmul.f32 %v4202_v58, %v8128_v30  ;;  %v4134_v18 = vmul.f32 1.442695, %v4078_v3  ;;  %v4080_v16 = vmul.f32 %v4048_v62, %v8169_v11  ;;  %v3666_v54 = vadd.f32 1.0, %v3634_v21 }
 0xf5b   : > { %v6171_v20 = vpop.eup %6170  ;;  %v4265_v53 = vadd.f32 1.0, %v4233_v6  ;;  %v3886_v28 = vmul.f32 %v8190_v57, %v3854_v46  ;;  %v3824_v42 = vmul.f32 %v8234_v22, %v3792_v48  ;;  %v8272_v12 = vadd.f32 %v7642_v32, %v7413_v4 }
 0xf5c   : > { %v4173_v19 = vmul.f32 %v6171_v20, %v4013_v50  ;;  %v3791_v51 = vadd.f32 -1.4531521, %v3759_v10  ;;  %6174 = vrcp.f32 %v3666_v54  ;;  %v8275_v47 = vand.u32 2147483647, %v8262_v43 }
 0xf5d   : > { %v8278_v30 = vmul.f32 %v4263_v29, %v8039_v45  ;;  %v4236_v11 = vmul.f32 %v4204_v56, %v8161_v52  ;;  %v4203_v63 = vsub.f32 1.0, %v4171_v1  ;;  %v4079_v5 = vmul.f32 %v4047_v59, %v8186_v44 }
 0xf5e   : > { %v4266_v8 = vadd.f32 1.0, %v4234_v35  ;;  %6176 = vpow2.f32 %v4134_v18  ;;  %v4138_v55 = vmul.f32 1.442695, %v4080_v16  ;;  %v3636_v4 = vmul.f32 0.3275911, %v8275_v47 }
 0xf5f   : > { %v8284_v32 = vmul.f32 %v4265_v53, %v8091_v60  ;;  %v3918_v3 = vadd.f32 -0.28449672, %v3886_v28  ;;  %v3856_v2 = vadd.f32 1.4214138, %v3824_v42  ;;  %v8287_v58 = vmul.f32 0.70710677, %v8272_v12 }
 0xf60   : > { %v4205_v45 = vsub.f32 1.0, %v4173_v19  ;;  %v3823_v62 = vmul.f32 %v8257_v41, %v3791_v51  ;;  %v3668_v52 = vadd.f32 1.0, %v3636_v4  ;;  %v8292_v44 = vadd.f32 %v7661_v27, %v7415_v33 }
 0xf61   : > { %v4268_v15 = vadd.f32 1.0, %v4236_v11  ;;  %v4235_v29 = vmul.f32 %v4203_v63, %v8209_v0  ;;  %v4136_v6 = vmul.f32 1.442695, %v4079_v5  ;;  %v8296_v60 = vand.u32 2147483647, %v8287_v58 }
 0xf62   : > { %v8298_v46 = vpop.eup %6172  ;;  %v8301_v48 = vmul.f32 %v4266_v8, %v8095_v25  ;;  %v4049_v50 = vsub.f32 0.0, %v8229_v14  ;;  %v4050_v21 = vsub.f32 0.0, %v8254_v26  ;;  %6178 = vrcp.f32 %v3668_v52 }
 0xf63   : > { %v3950_v33 = vmul.f32 %v8190_v57, %v3918_v3  ;;  %v3888_v27 = vmul.f32 %v8234_v22, %v3856_v2  ;;  %6180 = vpow2.f32 %v4138_v55  ;;  %v3761_v0 = vmul.f32 1.0614054, %v8298_v46 }
 0xf64   : > { %v4237_v56 = vmul.f32 %v4205_v45, %v8226_v37  ;;  %v3855_v1 = vadd.f32 1.4214138, %v3823_v62  ;;  %v3635_v10 = vmul.f32 0.3275911, %v8296_v60  ;;  %v8311_v25 = vmul.f32 0.70710677, %v8292_v44 }
 0xf65   : > { %v8314_v59 = vmul.f32 %v4268_v15, %v8120_v40  ;;  %v4267_v35 = vadd.f32 1.0, %v4235_v29  ;;  %6182 = vpow2.f32 %v4136_v6  ;;  %v3793_v18 = vadd.f32 -1.4531521, %v3761_v0  ;;  %v8660_v45 = vld [vmem:[#allocation39_spill] sm:$0xff]  ;;  %v8661_v62 = vld [vmem:[#allocation40_spill] sm:$0xff] }
 0xf66   : > { %v8316_v16 = vpop.eup %6174  ;;  %v4081_v54 = vmul.f32 %v4049_v50, %v8229_v14  ;;  %v4082_v20 = vmul.f32 %v4050_v21, %v8254_v26  ;;  %v3667_v53 = vadd.f32 1.0, %v3635_v10  ;;  %v8321_v37 = vand.u32 2147483647, %v8311_v25  ;;  %v8662_v50 = vld [vmem:[#allocation24_spill] sm:$0xff]  ;;  %v8663_v21 = vld [vmem:[#allocation41_spill] sm:$0xff] }
 0xf67   : > { %v3982_v28 = vadd.f32 0.2548296, %v3950_v33  ;;  %v3920_v42 = vadd.f32 -0.28449672, %v3888_v27  ;;  %v3825_v19 = vmul.f32 %v8298_v46, %v3793_v18  ;;  %v3762_v40 = vmul.f32 1.0614054, %v8316_v16 }
 0xf68   : > { %v6177_v51 = vpop.eup %6176  ;;  %v4269_v11 = vadd.f32 1.0, %v4237_v56  ;;  %vm3534_vm12 = vcmp.lt.f32.partialorder %v8108_v23, 0.0  ;;  %v3887_v63 = vmul.f32 %v8257_v41, %v3855_v1  ;;  %6184 = vrcp.f32 %v3667_v53  ;;  %v8664_v56 = vld [vmem:[#allocation27_spill] sm:$0xff] }
 0xf69   : > { %v3637_v14 = vmul.f32 0.3275911, %v8321_v37  ;;  %v8329_v26 = vmul.f32 %v4267_v35, %v8181_v31  ;;  %v3857_v5 = vadd.f32 1.4214138, %v3825_v19  ;;  %v3794_v8 = vadd.f32 -1.4531521, %v3762_v40 }
 0xf6a   : > { %v4052_v55 = vsub.f32 0.0, %v8275_v47  ;;  %v4140_v4 = vmul.f32 1.442695, %v4081_v54  ;;  %v4142_v3 = vmul.f32 1.442695, %v4082_v20  ;;  %v4311_v52 = vpack.c.bf16 %v8661_v62, %v8660_v45  ;;  %v8665_v1 = vld [vmem:[#allocation31_spill] sm:$0xff] }
 0xf6b   : > { %v3669_v2 = vadd.f32 1.0, %v3637_v14  ;;  %v4014_v15 = vmul.f32 %v8190_v57, %v3982_v28  ;;  %v3952_v29 = vmul.f32 %v8234_v22, %v3920_v42  ;;  %v3826_v6 = vmul.f32 %v8316_v16, %v3794_v8  ;;  %v8666_v20 = vld [vmem:[#allocation36_spill] sm:$0xff]  ;;  %v8667_v53 = vld [vmem:[#allocation35_spill] sm:$0xff]  ;;  %v8670_v19 = vld [vmem:[#allocation33_spill] sm:$0xff] }
 0xf6c   : > { %v4313_v31 = vpack.c.bf16 %v8663_v21, %v8662_v50  ;;  %v8339_v33 = vpop.eup %6178  ;;  %v4301_v27 = vmul.f32 %v4269_v11, %v8217_v34  ;;  %v3919_v0 = vadd.f32 -0.28449672, %v3887_v63  ;;  %4621 = vmatprep.mubr.bf16.mxu1 %v4311_v52  ;;  %v4315_v10 = vpack.c.bf16 %v8665_v1, %v8664_v56  ;;  %v8669_v42 = vld [vmem:[#allocation28_spill] sm:$0xff]  ;;  %v8671_v63 = vld [vmem:[#allocation38_spill] sm:$0xff]  ;;  %v8672_v14 = vld [vmem:[#allocation37_spill] sm:$0xff] }
 0xf6d   : > { %6186 = vrcp.f32 %v3669_v2  ;;  %v6181_v35 = vpop.eup %6180  ;;  %v3889_v57 = vmul.f32 %v8298_v46, %v3857_v5  ;;  %v3858_v18 = vadd.f32 1.4214138, %v3826_v6  ;;  %v4084_v54 = vmul.f32 %v4052_v55, %v8275_v47  ;;  %v8674_v5 = vld [vmem:[#allocation25_spill] sm:$0xff]  ;;  %v8677_v6 = vld [vmem:[#allocation30_spill] sm:$0xff] }
 0xf6e   : > { %4686 = vmatprep.mubr.bf16.mxu0 %v4313_v31  ;;  %v8668_v28 = vpack.c.bf16 %v8666_v20, %v8667_v53  ;;  %v4317_v34 = vpack.c.bf16 %v8670_v19, %v8669_v42  ;;  %6188 = vpow2.f32 %v4142_v3  ;;  %v3764_v40 = vmul.f32 1.0614054, %v8339_v33  ;;  %v8675_v47 = vld [vmem:[#allocation29_spill] sm:$0xff]  ;;  %v8676_v3 = vld [vmem:[#allocation26_spill] sm:$0xff] }
 0xf6f   : > { %v4051_v11 = vsub.f32 0.0, %v8296_v60  ;;  %v8673_v8 = vpack.c.bf16 %v8671_v63, %v8672_v14  ;;  %v4314_v55 = vpack.c.bf16 %v8675_v47, %v8674_v5  ;;  %v8358_v2 = vpop.eup %6182  ;;  %v4174_v45 = vmul.f32 %v6177_v51, %v4014_v15 }
 0xf70   : > { %4622 = vmatmul.mubr.bf16.vlgmr.msra.gmra.mrb[64].mxu1 %v8668_v28  ;;  %v3984_v62 = vadd.f32 0.2548296, %v3952_v29  ;;  %v3890_v52 = vmul.f32 %v8316_v16, %v3858_v18  ;;  %v4316_v50 = vpack.c.bf16 %v8677_v6, %v8676_v3  ;;  %v3951_v21 = vmul.f32 %v8257_v41, %v3919_v0 }
 0xf71   : > { %4687 = vmatmul.mubr.bf16.vlgmr.msra.gmra.mrb[64].mxu0 %v8673_v8  ;;  %4629 = vmatprep.mubr.bf16.mxu1 %v4315_v10  ;;  %v3796_v31 = vadd.f32 -1.4531521, %v3764_v40  ;;  %v4319_v56 = vpack.c.bf16 %v8329_v26, %v8278_v30  ;;  %v4321_v1 = vpack.c.bf16 %v4301_v27, %v8284_v32  ;;  %v3921_v10 = vadd.f32 -0.28449672, %v3889_v57  ;;  %v8678_v32 = vld [vmem:[#allocation42_spill] sm:$0xff] }
 0xf72   : > { %4694 = vmatprep.mubr.bf16.mxu0 %v4317_v34  ;;  %v3922_v20 = vadd.f32 -0.28449672, %v3890_v52  ;;  %v4146_v53 = vmul.f32 1.442695, %v4084_v54  ;;  %v4318_v51 = vpack.c.bf16 %v8301_v48, %v8195_v61  ;;  %v8369_v15 = vpop.eup %6184  ;;  %v4083_v18 = vmul.f32 %v4051_v11, %v8296_v60 }
 0xf73   : > { %v3828_v29 = vmul.f32 %v8339_v33, %v3796_v31  ;;  %v4053_v0 = vsub.f32 0.0, %v8321_v37  ;;  %v4320_v28 = vpack.c.bf16 %v8314_v59, %v8248_v7  ;;  %v3566_v30 = vsel %vm3534_vm12, -1.0, %v8629_v39 }
 0xf74   : > { %vm3536_vm13 = vcmp.lt.f32.partialorder %v8678_v32, 0.0  ;;  %v3954_v26 = vmul.f32 %v8316_v16, %v3922_v20  ;;  %v3763_v61 = vmul.f32 1.0614054, %v8369_v15  ;;  %v4206_v48 = vsub.f32 1.0, %v4174_v45 }
 0xf75   : > { %v4016_v27 = vmul.f32 %v8234_v22, %v3984_v62  ;;  %v3983_v57 = vadd.f32 0.2548296, %v3951_v21  ;;  %v3860_v60 = vadd.f32 1.4214138, %v3828_v29  ;;  %v3953_v54 = vmul.f32 %v8298_v46, %v3921_v10 }
 0xf76   : > { %v3986_v42 = vadd.f32 0.2548296, %v3954_v26  ;;  %6190 = vpow2.f32 %v4146_v53  ;;  %v3795_v7 = vadd.f32 -1.4531521, %v3763_v61  ;;  %v4144_v19 = vmul.f32 1.442695, %v4083_v18 }
 0xf77   : > { %v8384_v59 = vpop.eup %6186  ;;  %6192 = vpow2.f32 %v4140_v4  ;;  %v3892_v23 = vmul.f32 %v8339_v33, %v3860_v60  ;;  %v4085_v34 = vmul.f32 %v4053_v0, %v8321_v37  ;;  %vm3538_vm14 = vcmp.lt.f32.partialorder %v8232_v49, 0.0 }
 0xf78   : > { %4630 = vmatmul.mubr.bf16.gmra.mrb[68].mxu1 %v4314_v55  ;;  %v4018_v22 = vmul.f32 %v8316_v16, %v3986_v42  ;;  %v3827_v40 = vmul.f32 %v8369_v15, %v3795_v7  ;;  %v3765_v11 = vmul.f32 1.0614054, %v8384_v59  ;;  %v6189_v63 = vpop.eup %6188  ;;  %v4238_v14 = vmul.f32 %v4206_v48, %v3566_v30 }
 0xf79   : > { %4695 = vmatmul.mubr.bf16.gmra.mrb[68].mxu0 %v4316_v50  ;;  %4637 = vmatprep.mubr.bf16.mxu1 %v4319_v56  ;;  %v4176_v8 = vmul.f32 %v6181_v35, %v4016_v27  ;;  %v4015_v4 = vmul.f32 %v8257_v41, %v3983_v57  ;;  %v3924_v5 = vadd.f32 -0.28449672, %v3892_v23  ;;  %v3985_v47 = vadd.f32 0.2548296, %v3953_v54 }
 0xf7a   : > { %4702 = vmatprep.mubr.bf16.mxu0 %v4321_v1  ;;  %v4178_v55 = vmul.f32 %v6189_v63, %v4018_v22  ;;  %v3859_v37 = vadd.f32 1.4214138, %v3827_v40  ;;  %v3797_v45 = vadd.f32 -1.4531521, %v3765_v11  ;;  %v3568_v62 = vsel %vm3536_vm13, -1.0, %v8629_v39  ;;  %v8679_v40 = vld [vmem:[#allocation32_spill] sm:$0xff] }
 0xf7b   : > { %v3956_v16 = vmul.f32 %v8339_v33, %v3924_v5  ;;  %6194 = vpow2.f32 %v4144_v19  ;;  %v4148_v52 = vmul.f32 1.442695, %v4085_v34  ;;  %v3570_v3 = vsel %vm3538_vm14, -1.0, %v8629_v39 }
 0xf7c   : > { %v4210_v35 = vsub.f32 1.0, %v4178_v55  ;;  %v3891_v41 = vmul.f32 %v8369_v15, %v3859_v37  ;;  %v3829_v6 = vmul.f32 %v8384_v59, %v3797_v45  ;;  %v4270_v50 = vadd.f32 1.0, %v4238_v14 }
 0xf7d   : > { %v4208_v21 = vsub.f32 1.0, %v4176_v8  ;;  %v4175_v31 = vmul.f32 %v8358_v2, %v4015_v4  ;;  %v3988_v56 = vadd.f32 0.2548296, %v3956_v16  ;;  %v4017_v1 = vmul.f32 %v8298_v46, %v3985_v47 }
 0xf7e   : > { %v4242_v10 = vmul.f32 %v4210_v35, %v3570_v3  ;;  %v3923_v20 = vadd.f32 -0.28449672, %v3891_v41  ;;  %v3861_v53 = vadd.f32 1.4214138, %v3829_v6  ;;  %vm3535_vm15 = vcmp.lt.f32.partialorder %v8174_v9, 0.0 }
 0xf7f   : > { %v3474_v49 = vmul.f32 0.5, %v8213_v17  ;;  %v4020_v29 = vmul.f32 %v8339_v33, %v3988_v56  ;;  %6196 = vpow2.f32 %v4148_v52  ;;  %vm3540_vm0 = vcmp.lt.f32.partialorder %v8262_v43, 0.0  ;;  %v8680_v52 = vld [vmem:[#allocation34_spill] sm:$0xff] }
 0xf80   : > { %4638 = vmatmul.mubr.bf16.gmra.mrb[72].mxu1 %v4318_v51  ;;  %v6191_v18 = vpop.eup %6190  ;;  %v4274_v0 = vadd.f32 1.0, %v4242_v10  ;;  %v3955_v2 = vmul.f32 %v8369_v15, %v3923_v20  ;;  %v3893_v46 = vmul.f32 %v8384_v59, %v3861_v53  ;;  %v4302_v32 = vmul.f32 %v4270_v50, %v8238_v13 }
 0xf81   : > { %4703 = vmatmul.mubr.bf16.gmra.mrb[72].mxu0 %v4320_v28  ;;  %v6193_v30 = vpop.eup %6192  ;;  %v4240_v51 = vmul.f32 %v4208_v21, %v3568_v62  ;;  %v4207_v26 = vsub.f32 1.0, %v4175_v31  ;;  %v4180_v61 = vmul.f32 %v6191_v18, %v4020_v29  ;;  %v3567_v28 = vsel %vm3535_vm15, -1.0, %v8629_v39  ;;  %v8435_v29 = vld [vmem:[%s714_s23] ss:$0 sm:$0xff]  ;;  %s8689_s23 = sld [smem:[#allocation47_spill]] (!%p5225_p9) }
 0xf82   : > { %v4177_v48 = vmul.f32 %v6193_v30, %v4017_v1  ;;  %v4306_v17 = vmul.f32 %v4274_v0, %v3474_v49  ;;  %v3987_v27 = vadd.f32 0.2548296, %v3955_v2  ;;  %v3925_v33 = vadd.f32 -0.28449672, %v3893_v46 }
 0xf83   : > { %v4212_v57 = vsub.f32 1.0, %v4180_v61  ;;  %v3572_v43 = vsel %vm3540_vm0, -1.0, %v8629_v39  ;;  %v4272_v7 = vadd.f32 1.0, %v4240_v51  ;;  %vm3537_vm1 = vcmp.lt.f32.partialorder %v8221_v36, 0.0 }
 0xf84   : > { %v4019_v60 = vmul.f32 %v8369_v15, %v3987_v27  ;;  %v3957_v54 = vmul.f32 %v8384_v59, %v3925_v33  ;;  %v4322_v42 = vpack.c.bf16 %v4306_v17, %v4302_v32  ;;  %vm3539_vm2 = vcmp.lt.f32.partialorder %v8287_v58, 0.0  ;;  %v8681_v27 = vld [vmem:[#allocation16_spill] sm:$0xff] }
 0xf85   : > { %v6195_v13 = vpop.eup %6194  ;;  %v4244_v23 = vmul.f32 %v4212_v57, %v3572_v43  ;;  %v4239_v19 = vmul.f32 %v4207_v26, %v3567_v28  ;;  %v4209_v34 = vsub.f32 1.0, %v4177_v48  ;;  %v3472_v11 = vmul.f32 0.5, %v8679_v40 }
 0xf86   : > { %v4179_v22 = vmul.f32 %v6195_v13, %v4019_v60  ;;  %v3989_v9 = vadd.f32 0.2548296, %v3957_v54  ;;  %v3476_v63 = vmul.f32 0.5, %v8245_v24  ;;  %v3569_v15 = vsel %vm3537_vm1, -1.0, %v8629_v39  ;;  %v8682_v54 = vld [vmem:[#allocation17_spill] sm:$0xff] }
 0xf87   : > { %v4276_v14 = vadd.f32 1.0, %v4244_v23  ;;  %v4304_v47 = vmul.f32 %v4272_v7, %v3472_v11  ;;  %v3571_v55 = vsel %vm3539_vm2, -1.0, %v8629_v39  ;;  %vm3541_vm3 = vcmp.lt.f32.partialorder %v8311_v25, 0.0  ;;  %s8690_s2 = smov (!%p5225_p9), %s8689_s23 }
 0xf88   : > { %v4211_v8 = vsub.f32 1.0, %v4179_v22  ;;  %v4021_v4 = vmul.f32 %v8384_v59, %v3989_v9  ;;  %v4271_v58 = vadd.f32 1.0, %v4239_v19  ;;  %v4241_v37 = vmul.f32 %v4209_v34, %v3569_v15 }
 0xf89   : > { %v6197_v5 = vpop.eup %6196  ;;  %v4308_v36 = vmul.f32 %v4276_v14, %v3476_v63  ;;  %v3471_v24 = vmul.f32 0.5, %v8680_v52  ;;  %v3475_v3 = vmul.f32 0.5, %v8272_v12  ;;  %v3573_v59 = vsel %vm3541_vm3, -1.0, %v8629_v39 }
 0xf8a   : > { %v4243_v45 = vmul.f32 %v4211_v8, %v3571_v55  ;;  %v4181_v62 = vmul.f32 %v6197_v5, %v4021_v4  ;;  %v4273_v50 = vadd.f32 1.0, %v4241_v37  ;;  %v3473_v25 = vmul.f32 0.5, %v8203_v38  ;;  %v8683_v8 = vld [vmem:[#allocation19_spill] sm:$0xff] }
 0xf8b   : > { %v4324_v16 = vpack.c.bf16 %v4308_v36, %v4304_v47  ;;  %v4303_v6 = vmul.f32 %v4271_v58, %v3471_v24  ;;  %v3477_v56 = vmul.f32 0.5, %v8292_v44  ;;  %v8684_v58 = vld [vmem:[#allocation18_spill] sm:$0xff] }
 0xf8c   : > { %v4275_v35 = vadd.f32 1.0, %v4243_v45  ;;  %v4213_v41 = vsub.f32 1.0, %v4181_v62  ;;  %v4305_v20 = vmul.f32 %v4273_v50, %v3473_v25 }
 0xf8e   : > { %v4307_v21 = vmul.f32 %v4275_v35, %v3475_v3  ;;  %v4245_v31 = vmul.f32 %v4213_v41, %v3573_v59 }
 0xf90   : > { %v4277_v1 = vadd.f32 1.0, %v4245_v31  ;;  %v4323_v10 = vpack.c.bf16 %v4307_v21, %v4303_v6  ;;  %v8685_v31 = vld [vmem:[#allocation20_spill] sm:$0xff] }
 0xf92   : > { %v4309_v53 = vmul.f32 %v4277_v1, %v3477_v56  ;;  %4645 = vmatprep.mubr.bf16.mxu1 %v4323_v10  ;;  %v8686_v1 = vld [vmem:[#allocation21_spill] sm:$0xff] }
 0xf93   : > { %4646 = vmatmul.mubr.bf16.gmra.mrb[76].mxu1 %v4322_v42 }
 0xf94   : > { %v4325_v12 = vpack.c.bf16 %v4309_v53, %v4305_v20 }
 0xf96   : > { %4710 = vmatprep.mubr.bf16.mxu0 %v4325_v12 }
 0xf97   : > { %4711 = vmatmul.mubr.bf16.gmra.mrb[76].mxu0 %v4324_v16 }
0x1043   : > { %v5346_v49 = vpop.f32.mrb[64].mxu1 }
0x1044   : > { %v5386_v39 = vpop.f32.mrb[64].mxu0  ;;  %v5347_v38 = vpop.f32.mrb[65].mxu1 }
0x1045   : > { %v5348_v18 = vadd.f32 %v5347_v38, %v5346_v49  ;;  %v5387_v44 = vpop.f32.mrb[65].mxu0  ;;  %v5349_v0 = vpop.f32.mrb[66].mxu1 }
0x1046   : > { %v5388_v2 = vadd.f32 %v5387_v44, %v5386_v39  ;;  %v5389_v46 = vpop.f32.mrb[66].mxu0  ;;  %v5350_v30 = vpop.f32.mrb[67].mxu1 }
0x1047   : > { %v4624_v32 = vadd.f32 %v5348_v18, %v8435_v29  ;;  %v5351_v51 = vadd.f32 %v5350_v30, %v5349_v0  ;;  %v5390_v26 = vpop.f32.mrb[67].mxu0 }
0x1048   : > { %v5391_v61 = vadd.f32 %v5390_v26, %v5389_v46 }
0x1049   : > { %v4689_v48 = vadd.f32 %v5388_v2, %v4624_v32  ;;  %v4627_v17 = vadd.f32 %v5351_v51, %v8435_v29 }
0x104b   : > { %v8440_v33 = vadd.f32 %v4689_v48, %v8681_v27  ;;  %v4692_v28 = vadd.f32 %v5391_v61, %v4627_v17  ;;  %v5352_v57 = vpop.f32.mrb[68].mxu1  ;;  %v8687_v61 = vld [vmem:[#allocation22_spill] sm:$0xff]  ;;  %v8688_v27 = vld [vmem:[#allocation23_spill] sm:$0xff] }
0x104c   : > { %v5392_v43 = vpop.f32.mrb[68].mxu0  ;;  %v5353_v60 = vpop.f32.mrb[69].mxu1 }
0x104d   : > { %4727 = vst [vmem:[#allocation2] sm:$0xff] %v8440_v33  ;;  %v8444_v42 = vadd.f32 %v4692_v28, %v8682_v54  ;;  %v5354_v13 = vadd.f32 %v5353_v60, %v5352_v57  ;;  %v5393_v7 = vpop.f32.mrb[69].mxu0  ;;  %v5355_v23 = vpop.f32.mrb[70].mxu1  ;;  %v6206_v57 = vld [vmem:[%s8689_s23] sm:$0xff] (!%p5225_p9)   ;;  %v6208_v54 = vld [vmem:[%s8690_s2 + $0x10] sm:$0xff] (!%p5225_p9)  }
0x104e   : > { %v5394_v19 = vadd.f32 %v5393_v7, %v5392_v43  ;;  %v5395_v34 = vpop.f32.mrb[70].mxu0  ;;  %v5356_v22 = vpop.f32.mrb[71].mxu1  ;;  %5598 = vmatprep.subr.bf16.mxu0 (!%p5225_p9), %v6206_v57  ;;  %5622 = vmatprep.subr.bf16.mxu1 (!%p5225_p9), %v6206_v57  ;;  %v6212_v7 = vld [vmem:[%s8690_s2 + $0x30] sm:$0xff] (!%p5225_p9)  }
0x104f   : > { %4728 = vst [vmem:[#allocation2 + $0x8] sm:$0xff] %v8444_v42  ;;  %v4632_v9 = vadd.f32 %v5354_v13, %v8435_v29  ;;  %v5357_v40 = vadd.f32 %v5356_v22, %v5355_v23  ;;  %v5396_v11 = vpop.f32.mrb[71].mxu0  ;;  %v4739_v43 = vpack.c.bf16 (!%p5225_p9), %v8444_v42, %v8440_v33  ;;  %5599 = vmatpush3.bf16.msra.mxu0 (!%p5225_p9), %v6206_v57  ;;  %v6209_v33 = vld [vmem:[%s8690_s2 + $0x18] sm:$0xff] (!%p5225_p9)   ;;  %v6210_v42 = vld [vmem:[%s8690_s2 + $0x20] sm:$0xff] (!%p5225_p9)   ;;  %v6211_v13 = vld [vmem:[%s8690_s2 + $0x28] sm:$0xff] (!%p5225_p9)  }
0x1050   : > { %v5397_v63 = vadd.f32 %v5396_v11, %v5395_v34  ;;  %5630 = vmatpush3.bf16.msra.mxu1 (!%p5225_p9), %v6206_v57  ;;  %v6213_v23 = vld [vmem:[%s8690_s2 + $0x38] sm:$0xff] (!%p5225_p9)   ;;  %v5226_v22 = vld [vmem:[%s8691_s7] ss:$0 sm:$0xff] (!%p5225_p9) }
0x1051   : > { %v4697_v14 = vadd.f32 %v5394_v19, %v4632_v9  ;;  %v4635_v15 = vadd.f32 %v5357_v40, %v8435_v29  ;;  %5614 = vmatprep.mubr.bf16.mxu0 (!%p5225_p9), %v4739_v43 }
0x1053   : > { %v8450_v4 = vadd.f32 %v4697_v14, %v8683_v8  ;;  %v4700_v5 = vadd.f32 %v5397_v63, %v4635_v15  ;;  %v5358_v47 = vpop.f32.mrb[72].mxu1 }
0x1054   : > { %v5398_v36 = vpop.f32.mrb[72].mxu0  ;;  %v5359_v55 = vpop.f32.mrb[73].mxu1 }
0x1055   : > { %4729 = vst [vmem:[#allocation2 + $0x10] sm:$0xff] %v8450_v4  ;;  %v8454_v37 = vadd.f32 %v4700_v5, %v8684_v58  ;;  %v5360_v45 = vadd.f32 %v5359_v55, %v5358_v47  ;;  %v5399_v62 = vpop.f32.mrb[73].mxu0  ;;  %v5361_v16 = vpop.f32.mrb[74].mxu1 }
0x1056   : > { %v5400_v52 = vadd.f32 %v5399_v62, %v5398_v36  ;;  %v5401_v24 = vpop.f32.mrb[74].mxu0  ;;  %v5362_v3 = vpop.f32.mrb[75].mxu1 }
0x1057   : > { %4730 = vst [vmem:[#allocation2 + $0x18] sm:$0xff] %v8454_v37  ;;  %v4640_v35 = vadd.f32 %v5360_v45, %v8435_v29  ;;  %v5363_v41 = vadd.f32 %v5362_v3, %v5361_v16  ;;  %v5402_v59 = vpop.f32.mrb[75].mxu0  ;;  %v4740_v19 = vpack.c.bf16 (!%p5225_p9), %v8454_v37, %v8450_v4 }
0x1058   : > { %v5403_v6 = vadd.f32 %v5402_v59, %v5401_v24 }
0x1059   : > { %v4705_v50 = vadd.f32 %v5400_v52, %v4640_v35  ;;  %v4643_v21 = vadd.f32 %v5363_v41, %v8435_v29 }
0x105b   : > { %v4723_v25 = vadd.f32 %v4705_v50, %v8685_v31  ;;  %v4708_v56 = vadd.f32 %v5403_v6, %v4643_v21 }
0x105d   : > { %4731 = vst [vmem:[#allocation2 + $0x20] sm:$0xff] %v4723_v25  ;;  %v4724_v10 = vadd.f32 %v4708_v56, %v8686_v1 }
0x105f   : > { %4732 = vst [vmem:[#allocation2 + $0x28] sm:$0xff] %v4724_v10  ;;  %v4741_v60 = vpack.c.bf16 (!%p5225_p9), %v4724_v10, %v4723_v25 }
0x1061   : > { %5618 = vmatprep.mubr.bf16.mxu1 (!%p5225_p9), %v4741_v60 }
0x1066   : > { %v5364_v20 = vpop.f32.mrb[76].mxu1 }
0x1067   : > { %v5365_v53 = vpop.f32.mrb[77].mxu1 }
0x1068   : > { %v5366_v12 = vadd.f32 %v5365_v53, %v5364_v20  ;;  %v5367_v49 = vpop.f32.mrb[78].mxu1 }
0x1069   : > { %v5368_v39 = vpop.f32.mrb[79].mxu1 }
0x106a   : > { %v5404_v38 = vpop.f32.mrb[76].mxu0  ;;  %v4648_v18 = vadd.f32 %v5366_v12, %v8435_v29  ;;  %v5369_v44 = vadd.f32 %v5368_v39, %v5367_v49 }
0x106b   : > { %v5405_v0 = vpop.f32.mrb[77].mxu0 }
0x106c   : > { %v5406_v2 = vadd.f32 %v5405_v0, %v5404_v38  ;;  %v5407_v46 = vpop.f32.mrb[78].mxu0  ;;  %v4651_v30 = vadd.f32 %v5369_v44, %v8435_v29  ;;  %v6207_v29 = vld [vmem:[%s8690_s2 + $0x8] sm:$0xff] (!%p5225_p9)  }
0x106d   : > { %v5408_v32 = vpop.f32.mrb[79].mxu0  ;;  %5600 = vmatprep.subr.bf16.mxu0 (!%p5225_p9), %v6207_v29  ;;  %5623 = vmatprep.subr.bf16.mxu1 (!%p5225_p9), %v6207_v29 }
0x106e   : > { %v4713_v51 = vadd.f32 %v5406_v2, %v4648_v18  ;;  %v5409_v26 = vadd.f32 %v5408_v32, %v5407_v46  ;;  %4738 = sbr.rel (%p5225_p9) target bundleno = 4449 (0x1161), region = 92  ;;  %5601 = vmatpush3.bf16.msra.mxu0 (!%p5225_p9), %v6207_v29  ;;  %5631 = vmatpush3.bf16.msra.mxu1 (!%p5225_p9), %v6207_v29 }
0x106f   : > { %5602 = vmatprep.subr.bf16.mxu0 (!%p5225_p9), %v6208_v54  ;;  %5624 = vmatprep.subr.bf16.mxu1 (!%p5225_p9), %v6208_v54 }
0x1070   : > { %v4725_v48 = vadd.f32 %v4713_v51, %v8687_v61  ;;  %v4716_v17 = vadd.f32 %v5409_v26, %v4651_v30 }
0x1072   : > { %4733 = vst [vmem:[#allocation2 + $0x30] sm:$0xff] %v4725_v48  ;;  %v4726_v28 = vadd.f32 %v4716_v17, %v8688_v27  ;;  %5603 = vmatpush3.bf16.msra.mxu0 (!%p5225_p9), %v6208_v54  ;;  %5632 = vmatpush3.bf16.msra.mxu1 (!%p5225_p9), %v6208_v54 }
0x1073   : > { %5604 = vmatprep.subr.bf16.mxu0 (!%p5225_p9), %v6209_v33  ;;  %5625 = vmatprep.subr.bf16.mxu1 (!%p5225_p9), %v6209_v33 }
0x1074   : > { %4734 = vst [vmem:[#allocation2 + $0x38] sm:$0xff] %v4726_v28  ;;  %v4742_v34 = vpack.c.bf16 (!%p5225_p9), %v4726_v28, %v4725_v48 }
0x1076   : > { %5605 = vmatpush3.bf16.msra.mxu0 %v6209_v33  ;;  %5633 = vmatpush3.bf16.msra.mxu1 %v6209_v33 }
0x1077   : > { %5606 = vmatprep.subr.bf16.mxu0 %v6210_v42  ;;  %5626 = vmatprep.subr.bf16.mxu1 %v6210_v42 }
0x107a   : > { %5607 = vmatpush3.bf16.msra.mxu0 %v6210_v42  ;;  %5634 = vmatpush3.bf16.msra.mxu1 %v6210_v42 }
0x107b   : > { %5608 = vmatprep.subr.bf16.mxu0 %v6211_v13  ;;  %5627 = vmatprep.subr.bf16.mxu1 %v6211_v13 }
0x107e   : > { %5609 = vmatpush3.bf16.msra.mxu0 %v6211_v13  ;;  %5635 = vmatpush3.bf16.msra.mxu1 %v6211_v13 }
0x107f   : > { %5610 = vmatprep.subr.bf16.mxu0 %v6212_v7  ;;  %5628 = vmatprep.subr.bf16.mxu1 %v6212_v7 }
0x1082   : > { %5611 = vmatpush3.bf16.msra.mxu0 %v6212_v7  ;;  %5636 = vmatpush3.bf16.msra.mxu1 %v6212_v7 }
0x1083   : > { %5612 = vmatprep.subr.bf16.mxu0 %v6213_v23  ;;  %5629 = vmatprep.subr.bf16.mxu1 %v6213_v23 }
0x1086   : > { %5613 = vmatpush3.bf16.msra.mxu0 %v6213_v23  ;;  %5637 = vmatpush3.bf16.msra.mxu1 %v6213_v23 }
0x1089   : > { %5615 = vmatmul.mubr.bf16.vlgmr.msra.gmra.mrb[0].mxu0 %v4740_v19  ;;  %5619 = vmatmul.mubr.bf16.vlgmr.msra.gmra.mrb[0].mxu1 %v4742_v34 }
0x115c   : > { %v5616_v9 = vpop.f32.mrb[0].mxu0  ;;  %v5620_v40 = vpop.f32.mrb[0].mxu1 }
0x115d   : > { %v4848_v11 = vpop.f32.mrb[1].mxu0  ;;  %v4861_v63 = vpop.f32.mrb[1].mxu1 }
0x115e   : > { %v4849_v14 = vadd.f32 %v5226_v22, %v4848_v11  ;;  %v4862_v15 = vadd.f32 %v5226_v22, %v4861_v63  ;;  %v5617_v8 = vpop.f32.mrb[2].mxu0  ;;  %v5621_v5 = vpop.f32.mrb[2].mxu1 }
0x115f   : > { %v4851_v47 = vpop.f32.mrb[3].mxu0  ;;  %v4864_v36 = vpop.f32.mrb[3].mxu1 }
0x1160   : > { %4873 = vst [vmem:[#allocation6] sm:$0x1] %v4849_v14  ;;  %4874 = vst [vmem:[#allocation6 + $0x1] sm:$0x1] %v4862_v15 }
0x1161 PF: > { %s8692_s24 = sld [smem:[#allocation12_spill]]  ;;  %s6335_s23 = smov [#allocation6]  }
0x1162   : > { %s4884_s18 = sshll.u32 %s6335_s23, 4  ;;  %s4885_s18 = int_to_ptr.vmem [resolvable:$true] %s4884_s18 }
0x1163   : > { %s6244_s20 = scalar_lea.vmem %s4885_s18, 32  ;;  %p6251_p12 = scmp.lt.s32.totalorder %s4885_s18, %s4885_s18 }
0x1164   : > { %p6245_p6 = scmp.ne.s32.totalorder %s4885_s18, %s6244_s20  ;;  %p6252_p0 = scmp.lt.s32.totalorder %s6244_s20, %s6244_s20 }
0x1166   : > { %p6253_p1 = por %p6252_p0, %p6251_p12 }
0x1167   : > { %s8693_s13 = sadd.s32 4294967295, %s8692_s24  }
0x1168   : > { %p8499_p5 = scmp.eq.s32.totalorder %s8693_s13, 1 }
0x116a   : > { %p6246_p8 = pnand %p6245_p6, %p8499_p5 }
0x116c   : > { %p6247_p10 = pneg %p6246_p8 }
0x116e   : > { %p6254_p2 = pnand %p6253_p1, %p6247_p10 }
0x1170   : > { %6257 = shalt.err (!%p6254_p2)
}
0x1171   : > { %s8695_s16 = sld [smem:[#allocation49_spill]] }
0x1177   : > { %s6258_s19 = scalar_lea.hbm %s8695_s16, 32 }
0x1178   : > { %p6259_p11 = scmp.ne.s32.totalorder %s8695_s16, %s6258_s19  ;;  %p6264_p4 = scmp.lt.u32.totalorder %s6258_s19, %s8695_s16 }
0x117a   : > { %p6260_p13 = pnand %p6259_p11, %p8499_p5 }
0x117c   : > { %p6261_p3 = pneg %p6260_p13 }
0x117e   : > { %p6266_p7 = pnand %p6264_p4, %p6261_p3 }
0x1180   : > { %6269 = shalt.err (!%p6266_p7)
}
0x1181   : > { %s6336_s26 = smov 16   ;;  %s6337_s27 = smov 1  }
0x1182   : > { %5661 = dma.vmem_to_hbm [thread:$0]  (%p8499_p5), %s4885_s18, 32, %s8695_s16, [#allocation5], %s6336_s26, %s6336_s26, %s6337_s27  }
0x1183   : > { %6299 = dma.done.wait (%p8499_p5), [#allocation5], 32  }
0x1184   : > { %6301 = vsyncadd (%p8499_p5), [#allocation5], 4294967264 }
0x1185 PF: > { %s8696_s29 = sld [smem:[#allocation12_spill]]  ;;  %s8697_s18 = sld [smem:[#allocation9_spill]] }
0x1186   : > { %s8698_s19 = sld [smem:[#allocation10_spill]]  ;;  %s8699_s20 = sld [smem:[#allocation14_spill]] }
0x1187   : > { %s8700_s21 = sld [smem:[#allocation11_spill]]  ;;  %s8701_s22 = sld [smem:[#allocation13_spill]] }
0x118b   : > { %s29_s23 = sadd.s32 1, %s8696_s29  }
0x118c   : > { %p26_p9 = scmp.ge.s32.totalorder %s29_s23, 4  }
0x118e   :  { %28 = sbr.rel (!%p26_p9) target bundleno = 13 (0xd), region = 162 }
0x1195   :  { %4900 = vsyncpa [#allocation4], 1 }
0x1196   :  { %4902 = vsyncpa [#allocation4 + $0x1], 1 }
0x1197   :  { %4903 = vsyncpa [#allocation5], 1 }
0x1198   :  { %4905 = vsyncpa [#allocation5 + $0x1], 1 }

</bundles_post_ra>
